<compile_context>
chip_gen: v5e
topology: v5e:2x2
jax: 0.10.0
libtpu: 0.0.40
codegen_flags: <defaults>
</compile_context>

<pallas_src>
import functools
import math

import jax
import jax.numpy as jnp
from jax import lax
from jax.experimental import pallas as pl
from jax.experimental.pallas import tpu as pltpu


# ---------------- config ----------------

CFG = dict(
    hidden_size=256,
    num_heads=4,
    qk_nope_head_dim=64,
    qk_rope_head_dim=32,
    v_head_dim=64,
    q_lora_rank=64,
    kv_lora_rank=128,
    rope_theta=10000.0,
    rope_scaling=None,
    rms_norm_eps=1e-6,
)

_VMEM_LIMIT = 32 * 1024 * 1024  # explicit scoped-VMEM budget (tiny tiles here; resize for real dims)


def yarn_get_mscale(scale: float = 1, mscale: float = 1) -> float:
    if scale <= 1:
        return 1.0
    return 0.1 * mscale * math.log(scale) + 1.0


def compute_scaling(cfg):
    qk_head_dim = cfg["qk_nope_head_dim"] + cfg["qk_rope_head_dim"]
    scaling = qk_head_dim ** (-0.5)
    if cfg.get("rope_scaling"):
        mscale = yarn_get_mscale(cfg["rope_scaling"]["factor"],
                                 float(cfg["rope_scaling"].get("mscale_all_dim", False)))
        scaling = scaling * mscale * mscale
    return scaling


# ---------------- kernel 1: fused projections (q/kv LoRA paths + rotary) ----------------

def _proj_kernel(hs_ref, wqa_ref, qln_ref, wqbn_ref, wqbp_ref, wqbps_ref,
                 wkvac_ref, wkvap_ref, wkvaps_ref, kvln_ref,
                 wkvbk_ref, wkvbv_ref, cos_ref, sin_ref,
                 qn_ref, qp_ref, kn_ref, v_ref, kpe_ref,
                 qcn_sc, kvcn_sc, *, eps):
    h = pl.program_id(0)

    def rmsnorm(x, w):  # f32 in / f32 out
        var = jnp.mean(x * x, axis=-1, keepdims=True)
        return x * lax.rsqrt(var + eps) * w

    @pl.when(h == 0)
    def _():
        hs = hs_ref[...]
        # q LoRA down-projection + RMSNorm (shared across heads, kept in VMEM scratch)
        q_c = jnp.dot(hs, wqa_ref[...], preferred_element_type=jnp.float32)
        qcn_sc[...] = rmsnorm(q_c, qln_ref[...]).astype(qcn_sc.dtype)
        # kv latent down-projection + RMSNorm (shared across heads)
        kv_c = jnp.dot(hs, wkvac_ref[...], preferred_element_type=jnp.float32)
        kvcn_sc[...] = rmsnorm(kv_c, kvln_ref[...]).astype(kvcn_sc.dtype)
        # shared (MQA) k_pe: rope slice of kv_a projection, rotary in half-split layout
        kpe = jnp.dot(hs, wkvap_ref[...], preferred_element_type=jnp.float32)
        kpe_sw = jnp.dot(hs, wkvaps_ref[...], preferred_element_type=jnp.float32)
        kpe_ref[...] = (kpe * cos_ref[...] + kpe_sw * sin_ref[...]).astype(kpe_ref.dtype)

    q_cn = qcn_sc[...]
    kv_cn = kvcn_sc[...]
    # per-head q (softmax scale already folded into the weights)
    qn_ref[0] = jnp.dot(q_cn, wqbn_ref[0],
                        preferred_element_type=jnp.float32).astype(qn_ref.dtype)
    qp = jnp.dot(q_cn, wqbp_ref[0], preferred_element_type=jnp.float32)
    qp_sw = jnp.dot(q_cn, wqbps_ref[0], preferred_element_type=jnp.float32)
    qp_ref[0] = (qp * cos_ref[...] + qp_sw * sin_ref[...]).astype(qp_ref.dtype)
    # per-head k_nope / v from the kv_b projection of the normalized latent
    kn_ref[0] = jnp.dot(kv_cn, wkvbk_ref[0],
                        preferred_element_type=jnp.float32).astype(kn_ref.dtype)
    v_ref[0] = jnp.dot(kv_cn, wkvbv_ref[0],
                       preferred_element_type=jnp.float32).astype(v_ref.dtype)


def mla_projections(hs, kp, cos2, sin2, cfg):
    T, hid = hs.shape
    H = cfg["num_heads"]
    nope, rope = cfg["qk_nope_head_dim"], cfg["qk_rope_head_dim"]
    vdim = cfg["v_head_dim"]
    qr, kvr = cfg["q_lora_rank"], cfg["kv_lora_rank"]
    eps = cfg["rms_norm_eps"]

    full2 = lambda shape: pl.BlockSpec(shape, lambda h: (0, 0))
    head3 = lambda d1, d2: pl.BlockSpec((1, d1, d2), lambda h: (h, 0, 0))

    kern = functools.partial(_proj_kernel, eps=eps)
    out_shapes = (
        jax.ShapeDtypeStruct((H, T, nope), jnp.bfloat16),  # q_nope (pre-scaled)
        jax.ShapeDtypeStruct((H, T, rope), jnp.bfloat16),  # q_pe   (rotary + pre-scaled)
        jax.ShapeDtypeStruct((H, T, nope), jnp.bfloat16),  # k_nope
        jax.ShapeDtypeStruct((H, T, vdim), jnp.bfloat16),  # v
        jax.ShapeDtypeStruct((T, rope), jnp.bfloat16),     # k_pe (shared across heads)
    )
    return pl.pallas_call(
        kern,
        out_shape=out_shapes,
        grid=(H,),
        in_specs=[
            full2((T, hid)),        # hidden_states
            full2((hid, qr)),       # w_q_a
            full2((1, qr)),         # q_a_layernorm weight
            head3(qr, nope),        # w_q_b (nope part, per head)
            head3(qr, rope),        # w_q_b (rope part, half-split)
            head3(qr, rope),        # w_q_b (rope part, half-swapped)
            full2((hid, kvr)),      # w_kv_a (latent part)
            full2((hid, rope)),     # w_kv_a (rope part, half-split)
            full2((hid, rope)),     # w_kv_a (rope part, half-swapped)
            full2((1, kvr)),        # kv_a_layernorm weight
            head3(kvr, nope),       # w_kv_b (k_nope part, per head)
            head3(kvr, vdim),       # w_kv_b (v part, per head)
            full2((T, rope)),       # cos table
            full2((T, rope)),       # +/- sin table
        ],
        out_specs=(
            pl.BlockSpec((1, T, nope), lambda h: (h, 0, 0)),
            pl.BlockSpec((1, T, rope), lambda h: (h, 0, 0)),
            pl.BlockSpec((1, T, nope), lambda h: (h, 0, 0)),
            pl.BlockSpec((1, T, vdim), lambda h: (h, 0, 0)),
            pl.BlockSpec((T, rope), lambda h: (0, 0)),
        ),
        scratch_shapes=[pltpu.VMEM((T, qr), jnp.bfloat16),
                        pltpu.VMEM((T, kvr), jnp.bfloat16)],
        compiler_params=pltpu.CompilerParams(
            # "arbitrary": head 0 produces the shared latent scratch used by later heads.
            dimension_semantics=("arbitrary",),
            vmem_limit_bytes=_VMEM_LIMIT),
    )(hs, kp["w_q_a"], kp["q_a_ln"], kp["w_q_b_nope"], kp["w_q_b_pe"], kp["w_q_b_pe_sw"],
      kp["w_kv_a_c"], kp["w_kv_a_pe"], kp["w_kv_a_pe_sw"], kp["kv_a_ln"],
      kp["w_kv_b_k"], kp["w_kv_b_v"], cos2, sin2)


# ---------------- kernel 2: flash-style causal attention fused with o_proj ----------------

def _mla_attn_oproj_kernel(qn_ref, qp_ref, kn_ref, kp_ref, v_ref, wo_ref, o_ref,
                           m_sc, l_sc, acc_sc, oacc_sc, *, tile):
    qi = pl.program_id(0)
    h = pl.program_id(1)
    kv = pl.program_id(2)
    nh = pl.num_programs(1)
    nkv = pl.num_programs(2)

    @pl.when((h == 0) & (kv == 0))
    def _():
        oacc_sc[...] = jnp.zeros_like(oacc_sc)

    @pl.when(kv == 0)
    def _():
        m_sc[...] = jnp.full_like(m_sc, -jnp.inf)
        l_sc[...] = jnp.zeros_like(l_sc)
        acc_sc[...] = jnp.zeros_like(acc_sc)

    # Causal tile skip: with tq == tkv, kv tiles strictly above the diagonal contribute
    # nothing (their k/v index_maps are clamped so no extra HBM traffic is issued).
    @pl.when(kv <= qi)
    def _():
        qn = qn_ref[0]       # (tile, nope)  bf16, pre-scaled
        qp = qp_ref[0]       # (tile, rope)  bf16, pre-scaled + rotary
        kn = kn_ref[0]       # (tile, nope)  bf16
        kp = kp_ref[...]     # (tile, rope)  bf16, shared across heads
        v = v_ref[0]         # (tile, vdim)  bf16

        dn = (((1,), (1,)), ((), ()))  # contract last dims: q @ k^T without a transpose
        s = lax.dot_general(qn, kn, dn, preferred_element_type=jnp.float32)
        s = s + lax.dot_general(qp, kp, dn, preferred_element_type=jnp.float32)

        def _mask(x):  # only the diagonal tile needs the iota mask; scores stay f32
            row = qi * tile + lax.broadcasted_iota(jnp.int32, (tile, tile), 0)
            col = kv * tile + lax.broadcasted_iota(jnp.int32, (tile, tile), 1)
            return jnp.where(col <= row, x, -1e30)
        s = lax.cond(kv == qi, _mask, lambda x: x, s)

        # online softmax update (all statistics kept in f32)
        m_prev = m_sc[...]
        m_new = jnp.maximum(m_prev, jnp.max(s, axis=-1, keepdims=True))
        alpha = jnp.exp(m_prev - m_new)
        p = jnp.exp(s - m_new)
        l_sc[...] = alpha * l_sc[...] + jnp.sum(p, axis=-1, keepdims=True)
        acc_sc[...] = alpha * acc_sc[...] + jnp.dot(
            p.astype(v.dtype), v, preferred_element_type=jnp.float32)
        m_sc[...] = m_new

    # per-head finalize: fold this head's output straight into the o_proj accumulator
    @pl.when(kv == nkv - 1)
    def _():
        inv_l = pl.reciprocal(l_sc[...], approx=True)
        o_h = (acc_sc[...] * inv_l).astype(wo_ref.dtype)          # (tile, vdim) bf16
        oacc_sc[...] += jnp.dot(o_h, wo_ref[0], preferred_element_type=jnp.float32)

    # single lane-dense write of the (tile, hidden) output slab
    @pl.when((h == nh - 1) & (kv == nkv - 1))
    def _():
        o_ref[...] = oacc_sc[...].astype(o_ref.dtype)


def mla_attention_oproj(q_nope, q_pe, k_nope, k_pe, v, w_o, *, tile=128,
                        out_dtype=jnp.float32):
    H, T, nope = q_nope.shape
    rope = q_pe.shape[-1]
    vdim = v.shape[-1]
    hid = w_o.shape[-1]
    assert T % tile == 0, (T, tile)
    nq = T // tile
    nkv = T // tile

    clamp = lambda kv, qi: jnp.minimum(kv, qi)  # never fetch tiles above the diagonal
    kern = functools.partial(_mla_attn_oproj_kernel, tile=tile)
    return pl.pallas_call(
        kern,
        out_shape=jax.ShapeDtypeStruct((T, hid), out_dtype),
        grid=(nq, H, nkv),
        in_specs=[
            pl.BlockSpec((1, tile, nope), lambda qi, h, kv: (h, qi, 0)),
            pl.BlockSpec((1, tile, rope), lambda qi, h, kv: (h, qi, 0)),
            pl.BlockSpec((1, tile, nope), lambda qi, h, kv: (h, clamp(kv, qi), 0)),
            pl.BlockSpec((tile, rope),    lambda qi, h, kv: (clamp(kv, qi), 0)),
            pl.BlockSpec((1, tile, vdim), lambda qi, h, kv: (h, clamp(kv, qi), 0)),
            pl.BlockSpec((1, vdim, hid),  lambda qi, h, kv: (h, 0, 0)),
        ],
        out_specs=pl.BlockSpec((tile, hid), lambda qi, h, kv: (qi, 0)),
        scratch_shapes=[
            pltpu.VMEM((tile, 1), jnp.float32),     # running max
            pltpu.VMEM((tile, 1), jnp.float32),     # running denom
            pltpu.VMEM((tile, vdim), jnp.float32),  # per-head pv accumulator
            pltpu.VMEM((tile, hid), jnp.float32),   # o_proj accumulator (all heads)
        ],
        compiler_params=pltpu.CompilerParams(
            dimension_semantics=("parallel", "arbitrary", "arbitrary"),
            vmem_limit_bytes=_VMEM_LIMIT),
    )(q_nope, q_pe, k_nope, k_pe, v, w_o)


# ---------------- parameter prep (torch layout -> kernel layout, bf16) ----------------

def init_params(key, cfg):
    h = cfg["hidden_size"]
    H = cfg["num_heads"]
    nope, rope = cfg["qk_nope_head_dim"], cfg["qk_rope_head_dim"]
    qk_head_dim = nope + rope
    vdim = cfg["v_head_dim"]
    qr, kvr = cfg["q_lora_rank"], cfg["kv_lora_rank"]
    ks = jax.random.split(key, 6)
    s = 0.02
    return {
        "w_q_a": jax.random.normal(ks[0], (h, qr), jnp.float32) * s,
        "q_a_ln": jnp.ones((qr,), jnp.float32),
        "w_q_b": jax.random.normal(ks[1], (qr, H * qk_head_dim), jnp.float32) * s,
        "w_kv_a": jax.random.normal(ks[2], (h, kvr + rope), jnp.float32) * s,
        "kv_a_ln": jnp.ones((kvr,), jnp.float32),
        "w_kv_b": jax.random.normal(ks[3], (kvr, H * (nope + vdim)), jnp.float32) * s,
        "w_o": jax.random.normal(ks[4], (H * vdim, h), jnp.float32) * s,
    }


def prepare_kernel_params(raw, cfg, dtype=jnp.bfloat16):
    H = cfg["num_heads"]
    nope, rope = cfg["qk_nope_head_dim"], cfg["qk_rope_head_dim"]
    vdim = cfg["v_head_dim"]
    qr, kvr = cfg["q_lora_rank"], cfg["kv_lora_rank"]
    hid = cfg["hidden_size"]
    qk = nope + rope
    r2 = rope // 2
    scaling = compute_scaling(cfg)

    # interleaved -> half-split column permutation for the rope dims; applying the same
    # permutation to q_pe and k_pe leaves all attention scores unchanged, and in the
    # half-split layout the non-neox rotary becomes rotate-half, realized below with a
    # second, half-swapped copy of the rope weights (pure matmuls + FMA in-kernel).
    perm = jnp.concatenate([jnp.arange(0, rope, 2), jnp.arange(1, rope, 2)])

    wqb = raw["w_q_b"].reshape(qr, H, qk)
    wqb_n = jnp.transpose(wqb[..., :nope], (1, 0, 2)) * scaling               # (H, qr, nope)
    wqb_p = jnp.transpose(jnp.take(wqb[..., nope:], perm, axis=-1), (1, 0, 2)) * scaling
    wqb_ps = jnp.concatenate([wqb_p[..., r2:], wqb_p[..., :r2]], axis=-1)

    wkva = raw["w_kv_a"]
    wkva_c = wkva[:, :kvr]
    wkva_p = jnp.take(wkva[:, kvr:], perm, axis=-1)                           # (hid, rope)
    wkva_ps = jnp.concatenate([wkva_p[:, r2:], wkva_p[:, :r2]], axis=-1)

    wkvb = raw["w_kv_b"].reshape(kvr, H, nope + vdim)
    wkvb_k = jnp.transpose(wkvb[..., :nope], (1, 0, 2))                       # (H, kvr, nope)
    wkvb_v = jnp.transpose(wkvb[..., nope:], (1, 0, 2))                       # (H, kvr, vdim)

    w_o = raw["w_o"].reshape(H, vdim, hid)

    c = lambda x: x.astype(dtype)
    return {
        "w_q_a": c(raw["w_q_a"]),
        "q_a_ln": raw["q_a_ln"].reshape(1, qr).astype(jnp.float32),
        "w_q_b_nope": c(wqb_n), "w_q_b_pe": c(wqb_p), "w_q_b_pe_sw": c(wqb_ps),
        "w_kv_a_c": c(wkva_c), "w_kv_a_pe": c(wkva_p), "w_kv_a_pe_sw": c(wkva_ps),
        "kv_a_ln": raw["kv_a_ln"].reshape(1, kvr).astype(jnp.float32),
        "w_kv_b_k": c(wkvb_k), "w_kv_b_v": c(wkvb_v),
        "w_o": c(w_o),
    }


# ---------------- module forward ----------------

def deepseek_v2_mla_attention(kparams, positions, hidden_states, cfg, *, tile=128):
    T = hidden_states.shape[0]
    rope = cfg["qk_rope_head_dim"]
    theta = cfg["rope_theta"]
    tile = min(tile, T)

    hs = hidden_states.astype(jnp.bfloat16)

    # rotary tables in the half-split layout used by the kernels
    inv_freq = 1.0 / (theta ** (jnp.arange(0, rope, 2, dtype=jnp.float32) / rope))
    freqs = positions.astype(jnp.float32)[:, None] * inv_freq[None, :]
    cos, sin = jnp.cos(freqs), jnp.sin(freqs)
    cos2 = jnp.concatenate([cos, cos], axis=-1)        # (T, rope)
    sin2 = jnp.concatenate([-sin, sin], axis=-1)       # (T, rope)

    q_nope, q_pe, k_nope, v, k_pe = mla_projections(hs, kparams, cos2, sin2, cfg)
    return mla_attention_oproj(q_nope, q_pe, k_nope, k_pe, v, kparams["w_o"], tile=tile)


# ---------------- pure-JAX f32 reference (mirrors the PyTorch module) ----------------

def reference_forward(raw, positions, hidden_states, cfg):
    T = hidden_states.shape[0]
    H = cfg["num_heads"]
    nope, rope = cfg["qk_nope_head_dim"], cfg["qk_rope_head_dim"]
    vdim = cfg["v_head_dim"]
    kvr = cfg["kv_lora_rank"]
    eps = cfg["rms_norm_eps"]
    scaling = compute_scaling(cfg)

    def rms(x, w):
        var = jnp.mean(x * x, axis=-1, keepdims=True)
        return x * lax.rsqrt(var + eps) * w

    q_c = rms(hidden_states @ raw["w_q_a"], raw["q_a_ln"])
    q = (q_c @ raw["w_q_b"]).reshape(T, H, nope + rope)

    kv = hidden_states @ raw["w_kv_a"]
    kv_c, k_pe = kv[:, :kvr], kv[:, kvr:]
    kv_cn = rms(kv_c, raw["kv_a_ln"])

    inv_freq = 1.0 / (cfg["rope_theta"] ** (
        jnp.arange(0, rope, 2, dtype=jnp.float32) / rope))
    freqs = positions.astype(jnp.float32)[:, None] * inv_freq[None, :]
    cos, sin = jnp.cos(freqs), jnp.sin(freqs)

    def rot(x, c, s):  # non-neox / interleaved rotary
        x1, x2 = x[..., 0::2], x[..., 1::2]
        return jnp.stack([x1 * c - x2 * s, x2 * c + x1 * s], axis=-1).reshape(x.shape)

    q_pe = rot(q[..., nope:], cos[:, None, :], sin[:, None, :])
    k_pe_r = rot(k_pe, cos, sin)

    kv_b = (kv_cn @ raw["w_kv_b"]).reshape(T, H, nope + vdim)
    k_nope, v = kv_b[..., :nope], kv_b[..., nope:]

    qf = jnp.concatenate([q[..., :nope], q_pe], axis=-1)
    kf = jnp.concatenate(
        [k_nope, jnp.broadcast_to(k_pe_r[:, None, :], (T, H, rope))], axis=-1)

    s = jnp.einsum("thd,shd->hts", qf, kf) * scaling
    mask = jnp.tril(jnp.ones((T, T), dtype=bool))
    s = jnp.where(mask[None], s, -jnp.inf)
    p = jax.nn.softmax(s, axis=-1)
    o = jnp.einsum("hts,shd->thd", p, v).reshape(T, H * vdim)
    return o @ raw["w_o"]


if __name__ == "__main__":
    key = jax.random.PRNGKey(0)
    pkey, xkey = jax.random.split(key)

    T = 128
    raw = init_params(pkey, CFG)
    kparams = prepare_kernel_params(raw, CFG)
    hidden_states = jax.random.normal(xkey, (T, CFG["hidden_size"]), jnp.float32)
    positions = jnp.arange(T, dtype=jnp.int32)

    out = deepseek_v2_mla_attention(kparams, positions, hidden_states, CFG)
    out = jax.block_until_ready(out)

    assert out.shape == (T, CFG["hidden_size"])
    assert bool(jnp.all(jnp.isfinite(out)))

    # correctness check vs an f32 reference (kernels run bf16 inputs / f32 accumulation)
    ref = reference_forward(raw, positions, hidden_states, CFG)
    err = float(jnp.max(jnp.abs(out - ref)))
    scale = float(jnp.max(jnp.abs(ref))) + 1e-6
    assert err <= 0.1 * scale + 5e-4, (err, scale)

    print("KERNEL_OK")
</pallas_src>

<mosaic_0001>
module attributes {stable_mosaic.version = 11 : i64} {
  func.func @_proj_kernel(%arg0: i32, %arg1: memref<128x256xbf16, #tpu.memory_space<vmem>>, %arg2: memref<256x64xbf16, #tpu.memory_space<vmem>>, %arg3: memref<1x64xf32, #tpu.memory_space<vmem>>, %arg4: memref<1x64x64xbf16, #tpu.memory_space<vmem>>, %arg5: memref<1x64x32xbf16, #tpu.memory_space<vmem>>, %arg6: memref<1x64x32xbf16, #tpu.memory_space<vmem>>, %arg7: memref<256x128xbf16, #tpu.memory_space<vmem>>, %arg8: memref<256x32xbf16, #tpu.memory_space<vmem>>, %arg9: memref<256x32xbf16, #tpu.memory_space<vmem>>, %arg10: memref<1x128xf32, #tpu.memory_space<vmem>>, %arg11: memref<1x128x64xbf16, #tpu.memory_space<vmem>>, %arg12: memref<1x128x64xbf16, #tpu.memory_space<vmem>>, %arg13: memref<128x32xf32, #tpu.memory_space<vmem>>, %arg14: memref<128x32xf32, #tpu.memory_space<vmem>>, %arg15: memref<1x128x64xbf16, #tpu.memory_space<vmem>>, %arg16: memref<1x128x32xbf16, #tpu.memory_space<vmem>>, %arg17: memref<1x128x64xbf16, #tpu.memory_space<vmem>>, %arg18: memref<1x128x64xbf16, #tpu.memory_space<vmem>>, %arg19: memref<128x32xbf16, #tpu.memory_space<vmem>>, %arg20: memref<128x64xbf16, #tpu.memory_space<vmem>>, %arg21: memref<128x128xbf16, #tpu.memory_space<vmem>>) attributes {dimension_semantics = [#tpu.dimension_semantics<arbitrary>], iteration_bounds = array<i64: 4>, scalar_prefetch = 0 : i64, scratch_operands = 2 : i64, tpu.core_type = #tpu.core_type<tc>, window_params = [{pipeline_mode = #tpu.pipeline_mode<synchronous>, transform_indices = @transform_0, window_bounds = array<i64: 128, 256>}, {pipeline_mode = #tpu.pipeline_mode<synchronous>, transform_indices = @transform_1, window_bounds = array<i64: 256, 64>}, {pipeline_mode = #tpu.pipeline_mode<synchronous>, transform_indices = @transform_2, window_bounds = array<i64: 1, 64>}, {transform_indices = @transform_3, window_bounds = array<i64: 1, 64, 64>}, {transform_indices = @transform_4, window_bounds = array<i64: 1, 64, 32>}, {transform_indices = @transform_5, window_bounds = array<i64: 1, 64, 32>}, {pipeline_mode = #tpu.pipeline_mode<synchronous>, transform_indices = @transform_6, window_bounds = array<i64: 256, 128>}, {pipeline_mode = #tpu.pipeline_mode<synchronous>, transform_indices = @transform_7, window_bounds = array<i64: 256, 32>}, {pipeline_mode = #tpu.pipeline_mode<synchronous>, transform_indices = @transform_8, window_bounds = array<i64: 256, 32>}, {pipeline_mode = #tpu.pipeline_mode<synchronous>, transform_indices = @transform_9, window_bounds = array<i64: 1, 128>}, {transform_indices = @transform_10, window_bounds = array<i64: 1, 128, 64>}, {transform_indices = @transform_11, window_bounds = array<i64: 1, 128, 64>}, {pipeline_mode = #tpu.pipeline_mode<synchronous>, transform_indices = @transform_12, window_bounds = array<i64: 128, 32>}, {pipeline_mode = #tpu.pipeline_mode<synchronous>, transform_indices = @transform_13, window_bounds = array<i64: 128, 32>}, {transform_indices = @transform_14, window_bounds = array<i64: 1, 128, 64>}, {transform_indices = @transform_15, window_bounds = array<i64: 1, 128, 32>}, {transform_indices = @transform_16, window_bounds = array<i64: 1, 128, 64>}, {transform_indices = @transform_17, window_bounds = array<i64: 1, 128, 64>}, {pipeline_mode = #tpu.pipeline_mode<synchronous>, transform_indices = @transform_18, window_bounds = array<i64: 128, 32>}]} {
    %c0_i32 = arith.constant 0 : i32
    %0 = arith.cmpi eq, %arg0, %c0_i32 : i32
    %1 = arith.extui %0 : i1 to i32
    %c0_i32_0 = arith.constant 0 : i32
    %2 = arith.cmpi ne, %1, %c0_i32_0 : i32
    scf.if %2 {
      %c0_39 = arith.constant 0 : index
      %c0_40 = arith.constant 0 : index
      %41 = vector.load %arg1[%c0_39, %c0_40] : memref<128x256xbf16, #tpu.memory_space<vmem>>, vector<128x256xbf16>
      %c0_41 = arith.constant 0 : index
      %c0_42 = arith.constant 0 : index
      %42 = vector.load %arg2[%c0_41, %c0_42] : memref<256x64xbf16, #tpu.memory_space<vmem>>, vector<256x64xbf16>
      %cst_43 = arith.constant dense<0.000000e+00> : vector<128x64xf32>
      %43 = tpu.matmul %41, %42, %cst_43 {dimension_numbers = #tpu.dot_dimension_numbers<[1], [0], [0], [1], [0, 0, 1, 1], [], []>} : vector<128x256xbf16>, vector<256x64xbf16>, vector<128x64xf32> -> vector<128x64xf32>
      %c0_44 = arith.constant 0 : index
      %c0_45 = arith.constant 0 : index
      %44 = vector.load %arg3[%c0_44, %c0_45] : memref<1x64xf32, #tpu.memory_space<vmem>>, vector<1x64xf32>
      %45 = arith.mulf %43, %43 : vector<128x64xf32>
      %cst_46 = arith.constant dense<0.000000e+00> : vector<128xf32>
      %46 = vector.multi_reduction <add>, %45, %cst_46 [1] : vector<128x64xf32> to vector<128xf32>
      %47 = vector.shape_cast %46 : vector<128xf32> to vector<128x1xf32>
      %cst_47 = arith.constant 6.400000e+01 : f32
      %48 = vector.broadcast %cst_47 : f32 to vector<128x1xf32>
      %49 = arith.divf %47, %48 : vector<128x1xf32>
      %cst_48 = arith.constant 9.99999997E-7 : f32
      %50 = vector.broadcast %cst_48 : f32 to vector<128x1xf32>
      %51 = arith.addf %49, %50 : vector<128x1xf32>
      %52 = math.rsqrt %51 : vector<128x1xf32>
      %53 = vector.broadcast %52 : vector<128x1xf32> to vector<128x64xf32>
      %54 = arith.mulf %43, %53 : vector<128x64xf32>
      %55 = vector.broadcast %44 : vector<1x64xf32> to vector<128x64xf32>
      %56 = arith.mulf %54, %55 : vector<128x64xf32>
      %57 = arith.truncf %56 : vector<128x64xf32> to vector<128x64xbf16>
      %c0_49 = arith.constant 0 : index
      %c0_50 = arith.constant 0 : index
      %58 = vector.load %arg20[%c0_49, %c0_50] : memref<128x64xbf16, #tpu.memory_space<vmem>>, vector<128x64xbf16>
      tpu.vector_store %arg20[%c0_49, %c0_50], %57 {strides = array<i32>} : memref<128x64xbf16, #tpu.memory_space<vmem>>, vector<128x64xbf16>,
      %c0_51 = arith.constant 0 : index
      %c0_52 = arith.constant 0 : index
      %59 = vector.load %arg7[%c0_51, %c0_52] : memref<256x128xbf16, #tpu.memory_space<vmem>>, vector<256x128xbf16>
      %cst_53 = arith.constant dense<0.000000e+00> : vector<128x128xf32>
      %60 = tpu.matmul %41, %59, %cst_53 {dimension_numbers = #tpu.dot_dimension_numbers<[1], [0], [0], [1], [0, 0, 1, 1], [], []>} : vector<128x256xbf16>, vector<256x128xbf16>, vector<128x128xf32> -> vector<128x128xf32>
      %c0_54 = arith.constant 0 : index
      %c0_55 = arith.constant 0 : index
      %61 = vector.load %arg10[%c0_54, %c0_55] : memref<1x128xf32, #tpu.memory_space<vmem>>, vector<1x128xf32>
      %62 = arith.mulf %60, %60 : vector<128x128xf32>
      %cst_56 = arith.constant dense<0.000000e+00> : vector<128xf32>
      %63 = vector.multi_reduction <add>, %62, %cst_56 [1] : vector<128x128xf32> to vector<128xf32>
      %64 = vector.shape_cast %63 : vector<128xf32> to vector<128x1xf32>
      %cst_57 = arith.constant 1.280000e+02 : f32
      %65 = vector.broadcast %cst_57 : f32 to vector<128x1xf32>
      %66 = arith.divf %64, %65 : vector<128x1xf32>
      %cst_58 = arith.constant 9.99999997E-7 : f32
      %67 = vector.broadcast %cst_58 : f32 to vector<128x1xf32>
      %68 = arith.addf %66, %67 : vector<128x1xf32>
      %69 = math.rsqrt %68 : vector<128x1xf32>
      %70 = vector.broadcast %69 : vector<128x1xf32> to vector<128x128xf32>
      %71 = arith.mulf %60, %70 : vector<128x128xf32>
      %72 = vector.broadcast %61 : vector<1x128xf32> to vector<128x128xf32>
      %73 = arith.mulf %71, %72 : vector<128x128xf32>
      %74 = arith.truncf %73 : vector<128x128xf32> to vector<128x128xbf16>
      %c0_59 = arith.constant 0 : index
      %c0_60 = arith.constant 0 : index
      %75 = vector.load %arg21[%c0_59, %c0_60] : memref<128x128xbf16, #tpu.memory_space<vmem>>, vector<128x128xbf16>
      tpu.vector_store %arg21[%c0_59, %c0_60], %74 {strides = array<i32>} : memref<128x128xbf16, #tpu.memory_space<vmem>>, vector<128x128xbf16>,
      %c0_61 = arith.constant 0 : index
      %c0_62 = arith.constant 0 : index
      %76 = vector.load %arg8[%c0_61, %c0_62] : memref<256x32xbf16, #tpu.memory_space<vmem>>, vector<256x32xbf16>
      %cst_63 = arith.constant dense<0.000000e+00> : vector<128x32xf32>
      %77 = tpu.matmul %41, %76, %cst_63 {dimension_numbers = #tpu.dot_dimension_numbers<[1], [0], [0], [1], [0, 0, 1, 1], [], []>} : vector<128x256xbf16>, vector<256x32xbf16>, vector<128x32xf32> -> vector<128x32xf32>
      %c0_64 = arith.constant 0 : index
      %c0_65 = arith.constant 0 : index
      %78 = vector.load %arg9[%c0_64, %c0_65] : memref<256x32xbf16, #tpu.memory_space<vmem>>, vector<256x32xbf16>
      %cst_66 = arith.constant dense<0.000000e+00> : vector<128x32xf32>
      %79 = tpu.matmul %41, %78, %cst_66 {dimension_numbers = #tpu.dot_dimension_numbers<[1], [0], [0], [1], [0, 0, 1, 1], [], []>} : vector<128x256xbf16>, vector<256x32xbf16>, vector<128x32xf32> -> vector<128x32xf32>
      %c0_67 = arith.constant 0 : index
      %c0_68 = arith.constant 0 : index
      %80 = vector.load %arg13[%c0_67, %c0_68] : memref<128x32xf32, #tpu.memory_space<vmem>>, vector<128x32xf32>
      %81 = arith.mulf %77, %80 : vector<128x32xf32>
      %c0_69 = arith.constant 0 : index
      %c0_70 = arith.constant 0 : index
      %82 = vector.load %arg14[%c0_69, %c0_70] : memref<128x32xf32, #tpu.memory_space<vmem>>, vector<128x32xf32>
      %83 = arith.mulf %79, %82 : vector<128x32xf32>
      %84 = arith.addf %81, %83 : vector<128x32xf32>
      %85 = arith.truncf %84 : vector<128x32xf32> to vector<128x32xbf16>
      %c0_71 = arith.constant 0 : index
      %c0_72 = arith.constant 0 : index
      %86 = vector.load %arg19[%c0_71, %c0_72] : memref<128x32xbf16, #tpu.memory_space<vmem>>, vector<128x32xbf16>
      tpu.vector_store %arg19[%c0_71, %c0_72], %85 {strides = array<i32>} : memref<128x32xbf16, #tpu.memory_space<vmem>>, vector<128x32xbf16>,
    } else {
    }
    %c0 = arith.constant 0 : index
    %c0_1 = arith.constant 0 : index
    %3 = vector.load %arg20[%c0, %c0_1] : memref<128x64xbf16, #tpu.memory_space<vmem>>, vector<128x64xbf16>
    %c0_2 = arith.constant 0 : index
    %c0_3 = arith.constant 0 : index
    %4 = vector.load %arg21[%c0_2, %c0_3] : memref<128x128xbf16, #tpu.memory_space<vmem>>, vector<128x128xbf16>
    %c0_4 = arith.constant 0 : index
    %c0_5 = arith.constant 0 : index
    %c0_6 = arith.constant 0 : index
    %5 = vector.load %arg4[%c0_4, %c0_5, %c0_6] : memref<1x64x64xbf16, #tpu.memory_space<vmem>>, vector<1x64x64xbf16>
    %6 = vector.shape_cast %5 : vector<1x64x64xbf16> to vector<64x64xbf16>
    %cst = arith.constant dense<0.000000e+00> : vector<128x64xf32>
    %7 = tpu.matmul %3, %6, %cst {dimension_numbers = #tpu.dot_dimension_numbers<[1], [0], [0], [1], [0, 0, 1, 1], [], []>} : vector<128x64xbf16>, vector<64x64xbf16>, vector<128x64xf32> -> vector<128x64xf32>
    %8 = arith.truncf %7 : vector<128x64xf32> to vector<128x64xbf16>
    %c0_7 = arith.constant 0 : index
    %c0_8 = arith.constant 0 : index
    %c0_9 = arith.constant 0 : index
    %9 = vector.load %arg15[%c0_7, %c0_8, %c0_9] : memref<1x128x64xbf16, #tpu.memory_space<vmem>>, vector<1x128x64xbf16>
    %10 = vector.shape_cast %9 : vector<1x128x64xbf16> to vector<128x64xbf16>
    %11 = vector.shape_cast %8 : vector<128x64xbf16> to vector<1x128x64xbf16>
    tpu.vector_store %arg15[%c0_7, %c0_8, %c0_9], %11 {strides = array<i32>} : memref<1x128x64xbf16, #tpu.memory_space<vmem>>, vector<1x128x64xbf16>,
    %c0_10 = arith.constant 0 : index
    %c0_11 = arith.constant 0 : index
    %c0_12 = arith.constant 0 : index
    %12 = vector.load %arg5[%c0_10, %c0_11, %c0_12] : memref<1x64x32xbf16, #tpu.memory_space<vmem>>, vector<1x64x32xbf16>
    %13 = vector.shape_cast %12 : vector<1x64x32xbf16> to vector<64x32xbf16>
    %cst_13 = arith.constant dense<0.000000e+00> : vector<128x32xf32>
    %14 = tpu.matmul %3, %13, %cst_13 {dimension_numbers = #tpu.dot_dimension_numbers<[1], [0], [0], [1], [0, 0, 1, 1], [], []>} : vector<128x64xbf16>, vector<64x32xbf16>, vector<128x32xf32> -> vector<128x32xf32>
    %c0_14 = arith.constant 0 : index
    %c0_15 = arith.constant 0 : index
    %c0_16 = arith.constant 0 : index
    %15 = vector.load %arg6[%c0_14, %c0_15, %c0_16] : memref<1x64x32xbf16, #tpu.memory_space<vmem>>, vector<1x64x32xbf16>
    %16 = vector.shape_cast %15 : vector<1x64x32xbf16> to vector<64x32xbf16>
    %cst_17 = arith.constant dense<0.000000e+00> : vector<128x32xf32>
    %17 = tpu.matmul %3, %16, %cst_17 {dimension_numbers = #tpu.dot_dimension_numbers<[1], [0], [0], [1], [0, 0, 1, 1], [], []>} : vector<128x64xbf16>, vector<64x32xbf16>, vector<128x32xf32> -> vector<128x32xf32>
    %c0_18 = arith.constant 0 : index
    %c0_19 = arith.constant 0 : index
    %18 = vector.load %arg13[%c0_18, %c0_19] : memref<128x32xf32, #tpu.memory_space<vmem>>, vector<128x32xf32>
    %19 = arith.mulf %14, %18 : vector<128x32xf32>
    %c0_20 = arith.constant 0 : index
    %c0_21 = arith.constant 0 : index
    %20 = vector.load %arg14[%c0_20, %c0_21] : memref<128x32xf32, #tpu.memory_space<vmem>>, vector<128x32xf32>
    %21 = arith.mulf %17, %20 : vector<128x32xf32>
    %22 = arith.addf %19, %21 : vector<128x32xf32>
    %23 = arith.truncf %22 : vector<128x32xf32> to vector<128x32xbf16>
    %c0_22 = arith.constant 0 : index
    %c0_23 = arith.constant 0 : index
    %c0_24 = arith.constant 0 : index
    %24 = vector.load %arg16[%c0_22, %c0_23, %c0_24] : memref<1x128x32xbf16, #tpu.memory_space<vmem>>, vector<1x128x32xbf16>
    %25 = vector.shape_cast %24 : vector<1x128x32xbf16> to vector<128x32xbf16>
    %26 = vector.shape_cast %23 : vector<128x32xbf16> to vector<1x128x32xbf16>
    tpu.vector_store %arg16[%c0_22, %c0_23, %c0_24], %26 {strides = array<i32>} : memref<1x128x32xbf16, #tpu.memory_space<vmem>>, vector<1x128x32xbf16>,
    %c0_25 = arith.constant 0 : index
    %c0_26 = arith.constant 0 : index
    %c0_27 = arith.constant 0 : index
    %27 = vector.load %arg11[%c0_25, %c0_26, %c0_27] : memref<1x128x64xbf16, #tpu.memory_space<vmem>>, vector<1x128x64xbf16>
    %28 = vector.shape_cast %27 : vector<1x128x64xbf16> to vector<128x64xbf16>
    %cst_28 = arith.constant dense<0.000000e+00> : vector<128x64xf32>
    %29 = tpu.matmul %4, %28, %cst_28 {dimension_numbers = #tpu.dot_dimension_numbers<[1], [0], [0], [1], [0, 0, 1, 1], [], []>} : vector<128x128xbf16>, vector<128x64xbf16>, vector<128x64xf32> -> vector<128x64xf32>
    %30 = arith.truncf %29 : vector<128x64xf32> to vector<128x64xbf16>
    %c0_29 = arith.constant 0 : index
    %c0_30 = arith.constant 0 : index
    %c0_31 = arith.constant 0 : index
    %31 = vector.load %arg17[%c0_29, %c0_30, %c0_31] : memref<1x128x64xbf16, #tpu.memory_space<vmem>>, vector<1x128x64xbf16>
    %32 = vector.shape_cast %31 : vector<1x128x64xbf16> to vector<128x64xbf16>
    %33 = vector.shape_cast %30 : vector<128x64xbf16> to vector<1x128x64xbf16>
    tpu.vector_store %arg17[%c0_29, %c0_30, %c0_31], %33 {strides = array<i32>} : memref<1x128x64xbf16, #tpu.memory_space<vmem>>, vector<1x128x64xbf16>,
    %c0_32 = arith.constant 0 : index
    %c0_33 = arith.constant 0 : index
    %c0_34 = arith.constant 0 : index
    %34 = vector.load %arg12[%c0_32, %c0_33, %c0_34] : memref<1x128x64xbf16, #tpu.memory_space<vmem>>, vector<1x128x64xbf16>
    %35 = vector.shape_cast %34 : vector<1x128x64xbf16> to vector<128x64xbf16>
    %cst_35 = arith.constant dense<0.000000e+00> : vector<128x64xf32>
    %36 = tpu.matmul %4, %35, %cst_35 {dimension_numbers = #tpu.dot_dimension_numbers<[1], [0], [0], [1], [0, 0, 1, 1], [], []>} : vector<128x128xbf16>, vector<128x64xbf16>, vector<128x64xf32> -> vector<128x64xf32>
    %37 = arith.truncf %36 : vector<128x64xf32> to vector<128x64xbf16>
    %c0_36 = arith.constant 0 : index
    %c0_37 = arith.constant 0 : index
    %c0_38 = arith.constant 0 : index
    %38 = vector.load %arg18[%c0_36, %c0_37, %c0_38] : memref<1x128x64xbf16, #tpu.memory_space<vmem>>, vector<1x128x64xbf16>
    %39 = vector.shape_cast %38 : vector<1x128x64xbf16> to vector<128x64xbf16>
    %40 = vector.shape_cast %37 : vector<128x64xbf16> to vector<1x128x64xbf16>
    tpu.vector_store %arg18[%c0_36, %c0_37, %c0_38], %40 {strides = array<i32>} : memref<1x128x64xbf16, #tpu.memory_space<vmem>>, vector<1x128x64xbf16>,
    return
  }
  func.func @transform_0(%arg0: i32) -> (i32, i32) {
    %c0_i32 = arith.constant 0 : i32
    %c0_i32_0 = arith.constant 0 : i32
    %c0_i32_1 = arith.constant 0 : i32
    return %c0_i32, %c0_i32_0 : i32, i32
  }
  func.func @transform_1(%arg0: i32) -> (i32, i32) {
    %c0_i32 = arith.constant 0 : i32
    %c0_i32_0 = arith.constant 0 : i32
    %c0_i32_1 = arith.constant 0 : i32
    return %c0_i32, %c0_i32_0 : i32, i32
  }
  func.func @transform_2(%arg0: i32) -> (i32, i32) {
    %c0_i32 = arith.constant 0 : i32
    %c0_i32_0 = arith.constant 0 : i32
    %c0_i32_1 = arith.constant 0 : i32
    return %c0_i32, %c0_i32_0 : i32, i32
  }
  func.func @transform_3(%arg0: i32) -> (i32, i32, i32) {
    %c0_i32 = arith.constant 0 : i32
    %c0_i32_0 = arith.constant 0 : i32
    %c0_i32_1 = arith.constant 0 : i32
    return %arg0, %c0_i32, %c0_i32_0 : i32, i32, i32
  }
  func.func @transform_4(%arg0: i32) -> (i32, i32, i32) {
    %c0_i32 = arith.constant 0 : i32
    %c0_i32_0 = arith.constant 0 : i32
    %c0_i32_1 = arith.constant 0 : i32
    return %arg0, %c0_i32, %c0_i32_0 : i32, i32, i32
  }
  func.func @transform_5(%arg0: i32) -> (i32, i32, i32) {
    %c0_i32 = arith.constant 0 : i32
    %c0_i32_0 = arith.constant 0 : i32
    %c0_i32_1 = arith.constant 0 : i32
    return %arg0, %c0_i32, %c0_i32_0 : i32, i32, i32
  }
  func.func @transform_6(%arg0: i32) -> (i32, i32) {
    %c0_i32 = arith.constant 0 : i32
    %c0_i32_0 = arith.constant 0 : i32
    %c0_i32_1 = arith.constant 0 : i32
    return %c0_i32, %c0_i32_0 : i32, i32
  }
  func.func @transform_7(%arg0: i32) -> (i32, i32) {
    %c0_i32 = arith.constant 0 : i32
    %c0_i32_0 = arith.constant 0 : i32
    %c0_i32_1 = arith.constant 0 : i32
    return %c0_i32, %c0_i32_0 : i32, i32
  }
  func.func @transform_8(%arg0: i32) -> (i32, i32) {
    %c0_i32 = arith.constant 0 : i32
    %c0_i32_0 = arith.constant 0 : i32
    %c0_i32_1 = arith.constant 0 : i32
    return %c0_i32, %c0_i32_0 : i32, i32
  }
  func.func @transform_9(%arg0: i32) -> (i32, i32) {
    %c0_i32 = arith.constant 0 : i32
    %c0_i32_0 = arith.constant 0 : i32
    %c0_i32_1 = arith.constant 0 : i32
    return %c0_i32, %c0_i32_0 : i32, i32
  }
  func.func @transform_10(%arg0: i32) -> (i32, i32, i32) {
    %c0_i32 = arith.constant 0 : i32
    %c0_i32_0 = arith.constant 0 : i32
    %c0_i32_1 = arith.constant 0 : i32
    return %arg0, %c0_i32, %c0_i32_0 : i32, i32, i32
  }
  func.func @transform_11(%arg0: i32) -> (i32, i32, i32) {
    %c0_i32 = arith.constant 0 : i32
    %c0_i32_0 = arith.constant 0 : i32
    %c0_i32_1 = arith.constant 0 : i32
    return %arg0, %c0_i32, %c0_i32_0 : i32, i32, i32
  }
  func.func @transform_12(%arg0: i32) -> (i32, i32) {
    %c0_i32 = arith.constant 0 : i32
    %c0_i32_0 = arith.constant 0 : i32
    %c0_i32_1 = arith.constant 0 : i32
    return %c0_i32, %c0_i32_0 : i32, i32
  }
  func.func @transform_13(%arg0: i32) -> (i32, i32) {
    %c0_i32 = arith.constant 0 : i32
    %c0_i32_0 = arith.constant 0 : i32
    %c0_i32_1 = arith.constant 0 : i32
    return %c0_i32, %c0_i32_0 : i32, i32
  }
  func.func @transform_14(%arg0: i32) -> (i32, i32, i32) {
    %c0_i32 = arith.constant 0 : i32
    %c0_i32_0 = arith.constant 0 : i32
    %c0_i32_1 = arith.constant 0 : i32
    return %arg0, %c0_i32, %c0_i32_0 : i32, i32, i32
  }
  func.func @transform_15(%arg0: i32) -> (i32, i32, i32) {
    %c0_i32 = arith.constant 0 : i32
    %c0_i32_0 = arith.constant 0 : i32
    %c0_i32_1 = arith.constant 0 : i32
    return %arg0, %c0_i32, %c0_i32_0 : i32, i32, i32
  }
  func.func @transform_16(%arg0: i32) -> (i32, i32, i32) {
    %c0_i32 = arith.constant 0 : i32
    %c0_i32_0 = arith.constant 0 : i32
    %c0_i32_1 = arith.constant 0 : i32
    return %arg0, %c0_i32, %c0_i32_0 : i32, i32, i32
  }
  func.func @transform_17(%arg0: i32) -> (i32, i32, i32) {
    %c0_i32 = arith.constant 0 : i32
    %c0_i32_0 = arith.constant 0 : i32
    %c0_i32_1 = arith.constant 0 : i32
    return %arg0, %c0_i32, %c0_i32_0 : i32, i32, i32
  }
  func.func @transform_18(%arg0: i32) -> (i32, i32) {
    %c0_i32 = arith.constant 0 : i32
    %c0_i32_0 = arith.constant 0 : i32
    %c0_i32_1 = arith.constant 0 : i32
    return %c0_i32, %c0_i32_0 : i32, i32
  }
}

</mosaic_0001>

<bundles_post_ra>
// kernel: tpu_custom_call.1
= control target key start
LH: loop header
LB: loop body
LE: loop exit
PB: predicated region body
PF: predicated region fallthrough
CT: control target
= control target key end

     0   :  { %s4413_s27 = smov 0   ;;  %s6057_s0 = inlined_call_operand.vmem [shape: bf16[128,256], index: 0, kind: input, shape index: {}]   ;;  %s6058_s1 = inlined_call_operand.vmem [shape: bf16[256,64], index: 1, kind: input, shape index: {}]   ;;  %s6059_s2 = inlined_call_operand.vmem [shape: f32[1,64], index: 2, kind: input, shape index: {}]   ;;  %s6060_s3 = inlined_call_operand.vmem [shape: bf16[4,64,64], index: 3, kind: input, shape index: {}]   ;;  %s6061_s4 = inlined_call_operand.vmem [shape: bf16[4,64,32], index: 4, kind: input, shape index: {}]   ;;  %s6062_s5 = inlined_call_operand.vmem [shape: bf16[4,64,32], index: 5, kind: input, shape index: {}]   ;;  %s6063_s6 = inlined_call_operand.vmem [shape: bf16[256,128], index: 6, kind: input, shape index: {}]   ;;  %s6064_s7 = inlined_call_operand.vmem [shape: bf16[256,32], index: 7, kind: input, shape index: {}]   ;;  %s6065_s8 = inlined_call_operand.vmem [shape: bf16[256,32], index: 8, kind: input, shape index: {}]   ;;  %s6066_s9 = inlined_call_operand.vmem [shape: f32[1,128], index: 9, kind: input, shape index: {}]   ;;  %s6067_s10 = inlined_call_operand.vmem [shape: bf16[4,128,64], index: 10, kind: input, shape index: {}]   ;;  %s6068_s11 = inlined_call_operand.vmem [shape: bf16[4,128,64], index: 11, kind: input, shape index: {}]   ;;  %s6069_s12 = inlined_call_operand.vmem [shape: f32[128,32], index: 12, kind: input, shape index: {}]   ;;  %s6070_s13 = inlined_call_operand.vmem [shape: f32[128,32], index: 13, kind: input, shape index: {}]   ;;  %s6071_s14 = inlined_call_operand.vmem [shape: bf16[4,128,64], index: 14, kind: output, shape index: {0}]   ;;  %s6072_s15 = inlined_call_operand.vmem [shape: bf16[4,128,32], index: 15, kind: output, shape index: {1}]   ;;  %s6073_s16 = inlined_call_operand.vmem [shape: bf16[4,128,64], index: 16, kind: output, shape index: {2}]   ;;  %s6074_s17 = inlined_call_operand.vmem [shape: bf16[4,128,64], index: 17, kind: output, shape index: {3}]   ;;  %s6075_s18 = inlined_call_operand.vmem [shape: bf16[128,32], index: 18, kind: output, shape index: {4}]  }
   0x1   :  { %6082 = sst [smem:[#allocation5_spill]] %s6057_s0 }
   0x2   :  { %6083 = sst [smem:[#allocation6_spill]] %s6058_s1 }
   0x3   :  { %6084 = sst [smem:[#allocation7_spill]] %s6059_s2 }
   0x4   :  { %6085 = sst [smem:[#allocation8_spill]] %s6060_s3 }
   0x5   :  { %6086 = sst [smem:[#allocation9_spill]] %s6061_s4 }
   0x6   :  { %6087 = sst [smem:[#allocation10_spill]] %s6062_s5 }
   0x7   :  { %6088 = sst [smem:[#allocation11_spill]] %s6066_s9 }
   0x8   :  { %6089 = sst [smem:[#allocation12_spill]] %s6067_s10 }
   0x9   :  { %6090 = sst [smem:[#allocation13_spill]] %s6068_s11 }
   0xa   :  { %6091 = sst [smem:[#allocation14_spill]] %s6075_s18 }
   0xb LB: > { %6092 = sst [smem:[#allocation4_spill]] %s4314_s27  ;;  %s3488_s28 = sadd.s32 4294967295, %s4314_s27   ;;  %s4314_s27 = sphi %s4413_s27, %s29_s27  }
   0xc   : > { %p3492_p0 = scmp.ge.s32.totalorder %s4314_s27, 1  ;;  %p556_p1 = scmp.lt.s32.totalorder %s4314_s27, 5 }
   0xe   : > { %p557_p2 = pnand %p3492_p0, %p556_p1 }
   0xf   : > { %p645_p3 = scmp.lt.s32.totalorder (!%p557_p2), %s3488_s28, 3  ;;  %s6093_s3 = sld [smem:[#allocation8_spill]] (!%p557_p2) }
  0x10   : > { %560 = sbr.rel (%p557_p2) target bundleno = 789 (0x315), region = 76  ;;  %s6094_s4 = sld [smem:[#allocation9_spill]] (!%p557_p2) }
  0x11   : > { %s6095_s5 = sld [smem:[#allocation10_spill]] (!%p557_p2)  ;;  %p3511_p4 = scmp.ne.s32.totalorder (!%p557_p2), %s3488_s28, 0 }
  0x12   : > { %s6096_s10 = sld [smem:[#allocation12_spill]] (!%p557_p2) }
  0x13   : > { %s6097_s11 = sld [smem:[#allocation13_spill]] (!%p557_p2) }
  0x15   : > { %s646_s29 = scalar_select %p645_p3, %s3488_s28, 3 }
  0x16   : > { %s6098_s1 = sld [smem:[#allocation6_spill]] (!%p3511_p4) }
  0x17   : > { %s4034_s30 = sshll.u32 %s646_s29, 5  ;;  %s4037_s0 = sshll.u32 %s646_s29, 6 }
  0x18   : > { %s4424_s20 = scalar_lea.vmem %s6093_s3, %s4034_s30  ;;  %s4429_s2 = scalar_lea.vmem %s6094_s4, %s4034_s30 }
  0x19   : > { %s4434_s25 = scalar_lea.vmem %s6095_s5, %s4034_s30  ;;  %s4439_s9 = scalar_lea.vmem %s6096_s10, %s4037_s0 }
  0x1a   : > { %s4444_s19 = scalar_lea.vmem %s6097_s11, %s4037_s0  ;;  %s4449_s21 = scalar_lea.vmem %s6071_s14, %s4037_s0 }
  0x1b   : > { %s4454_s30 = scalar_lea.vmem %s6072_s15, %s4037_s0  ;;  %s4459_s27 = scalar_lea.vmem %s6073_s16, %s4037_s0 }
  0x1c   : > { %s4464_s18 = scalar_lea.vmem %s6074_s17, %s4037_s0  ;;  %694 = sbr.rel (%p3511_p4) target bundleno = 472 (0x1d8), region = 80 }
  0x1d   : > { %s6099_s11 = sld [smem:[#allocation5_spill]] (!%p3511_p4) }
  0x1e   : > { %s6100_s24 = sld [smem:[#allocation7_spill]] (!%p3511_p4) }
  0x1f   : > { %s6101_s29 = sld [smem:[#allocation14_spill]] (!%p3511_p4) }
  0x20   : > { %s6104_s3 = sld [smem:[#allocation11_spill]] (!%p3511_p4) }
  0x21   : > { %v4066_v0 = vld [vmem:[%s6098_s1 + $0x38] sm:$0xff]  ;;  %v4065_v4 = vld [vmem:[%s6098_s1 + $0x30] sm:$0xff]  ;;  %v4064_v8 = vld [vmem:[%s6098_s1 + $0x28] sm:$0xff]  ;;  %vm1034_vm0 = vcmask 523264   ;;  %vm1333_vm5 = vcmask 519168   ;;  %vm2439_vm7 = vcmask 257024  }
  0x22   : > { %v4074_v1 = vld [vmem:[%s6098_s1 + $0x78] sm:$0xff]  ;;  %919 = vmatpush.bf16.msra.mxu0 %v4066_v0  ;;  %v4073_v5 = vld [vmem:[%s6098_s1 + $0x70] sm:$0xff]  ;;  %v4072_v9 = vld [vmem:[%s6098_s1 + $0x68] sm:$0xff] }
  0x23   : > { %v4082_v2 = vld [vmem:[%s6063_s6 + $0x38] sm:$0xff]  ;;  %968 = vmatpush.bf16.msra.mxu1 %v4074_v1  ;;  %v4081_v6 = vld [vmem:[%s6063_s6 + $0x30] sm:$0xff]  ;;  %v4080_v10 = vld [vmem:[%s6063_s6 + $0x28] sm:$0xff] }
  0x24   : > { %v4090_v3 = vld [vmem:[%s6063_s6 + $0x78] sm:$0xff]  ;;  %1478 = vmatpush.bf16.msra.mxu2 %v4082_v2  ;;  %v4089_v7 = vld [vmem:[%s6063_s6 + $0x70] sm:$0xff]  ;;  %v4088_v11 = vld [vmem:[%s6063_s6 + $0x68] sm:$0xff] }
  0x25   : > { %1527 = vmatpush.bf16.msra.mxu3 %v4090_v3  ;;  %v4063_v12 = vld [vmem:[%s6098_s1 + $0x20] sm:$0xff]  ;;  %v4062_v16 = vld [vmem:[%s6098_s1 + $0x18] sm:$0xff]  ;;  %v4061_v20 = vld [vmem:[%s6098_s1 + $0x10] sm:$0xff] }
  0x26   : > { %920 = vmatpush.bf16.msra.mxu0 %v4065_v4  ;;  %v4071_v13 = vld [vmem:[%s6098_s1 + $0x60] sm:$0xff]  ;;  %v4070_v17 = vld [vmem:[%s6098_s1 + $0x58] sm:$0xff]  ;;  %v4069_v21 = vld [vmem:[%s6098_s1 + $0x50] sm:$0xff] }
  0x27   : > { %969 = vmatpush.bf16.msra.mxu1 %v4073_v5  ;;  %v4079_v14 = vld [vmem:[%s6063_s6 + $0x20] sm:$0xff]  ;;  %v4078_v18 = vld [vmem:[%s6063_s6 + $0x18] sm:$0xff]  ;;  %v4077_v22 = vld [vmem:[%s6063_s6 + $0x10] sm:$0xff] }
  0x28   : > { %1479 = vmatpush.bf16.msra.mxu2 %v4081_v6  ;;  %v4087_v15 = vld [vmem:[%s6063_s6 + $0x60] sm:$0xff]  ;;  %v4086_v19 = vld [vmem:[%s6063_s6 + $0x58] sm:$0xff]  ;;  %v4085_v23 = vld [vmem:[%s6063_s6 + $0x50] sm:$0xff] }
  0x29   : > { %1528 = vmatpush.bf16.msra.mxu3 %v4089_v7  ;;  %v4060_v24 = vld [vmem:[%s6098_s1 + $0x8] sm:$0xff]  ;;  %v4059_v28 = vld [vmem:[%s6098_s1] sm:$0xff]  ;;  %v4114_v36 = vld [vmem:[%s6065_s8 + $0x38] sm:$0xff] }
  0x2a   : > { %921 = vmatpush.bf16.msra.mxu0 %v4064_v8  ;;  %v4068_v25 = vld [vmem:[%s6098_s1 + $0x48] sm:$0xff]  ;;  %v4067_v29 = vld [vmem:[%s6098_s1 + $0x40] sm:$0xff]  ;;  %v4122_v37 = vld [vmem:[%s6065_s8 + $0x78] sm:$0xff] }
  0x2b   : > { %970 = vmatpush.bf16.msra.mxu1 %v4072_v9  ;;  %v4076_v26 = vld [vmem:[%s6063_s6 + $0x8] sm:$0xff]  ;;  %v3514_v30 = vld [vmem:[%s6099_s11] sm:$0xf]  ;;  %v4043_v32 = vld [vmem:[%s6099_s11 + $0x4] sm:$0xf] }
  0x2c   : > { %1480 = vmatpush.bf16.msra.mxu2 %v4080_v10  ;;  %v4084_v27 = vld [vmem:[%s6063_s6 + $0x48] sm:$0xff]  ;;  %v4075_v34 = vld [vmem:[%s6063_s6] sm:$0xff]  ;;  %v4098_v40 = vld [vmem:[%s6064_s7 + $0x38] sm:$0xff] }
  0x2d   : > { %1529 = vmatpush.bf16.msra.mxu3 %v4088_v11  ;;  %v4044_v31 = vld [vmem:[%s6099_s11 + $0x4] sm:$0xf0]  ;;  %v3516_v33 = vld [vmem:[%s6099_s11 + $0x8] sm:$0xf0]  ;;  %v4083_v35 = vld [vmem:[%s6063_s6 + $0x40] sm:$0xff] }
  0x2e   : > { %922 = vmatpush.bf16.msra.mxu0 %v4063_v12  ;;  %v4580_v38 = vor.u32 %v4044_v31, %v3514_v30  ;;  %v4582_v39 = vor.u32 %v4043_v32, %v3516_v33  ;;  %v4106_v41 = vld [vmem:[%s6064_s7 + $0x78] sm:$0xff]  ;;  %v4113_v42 = vld [vmem:[%s6065_s8 + $0x30] sm:$0xff]  ;;  %v4112_v46 = vld [vmem:[%s6065_s8 + $0x28] sm:$0xff] }
  0x2f   : > { %971 = vmatpush.bf16.msra.mxu1 %v4071_v13  ;;  %v4121_v43 = vld [vmem:[%s6065_s8 + $0x70] sm:$0xff]  ;;  %v4120_v47 = vld [vmem:[%s6065_s8 + $0x68] sm:$0xff]  ;;  %v4046_v49 = vld [vmem:[%s6099_s11 + $0x14] sm:$0xf0] }
  0x30   : > { %1481 = vmatpush.bf16.msra.mxu2 %v4079_v14  ;;  %v4097_v44 = vld [vmem:[%s6064_s7 + $0x30] sm:$0xff]  ;;  %v3524_v51 = vld [vmem:[%s6099_s11 + $0x18] sm:$0xf0]  ;;  %v4096_v54 = vld [vmem:[%s6064_s7 + $0x28] sm:$0xff] }
  0x31   : > { %1530 = vmatpush.bf16.msra.mxu3 %v4087_v15  ;;  %v4105_v45 = vld [vmem:[%s6064_s7 + $0x70] sm:$0xff]  ;;  %v4104_v55 = vld [vmem:[%s6064_s7 + $0x68] sm:$0xff]  ;;  %v4111_v56 = vld [vmem:[%s6065_s8 + $0x20] sm:$0xff] }
  0x32   : > { %923 = vmatpush.bf16.msra.mxu0 %v4062_v16  ;;  %v3522_v48 = vld [vmem:[%s6099_s11 + $0x10] sm:$0xf]  ;;  %v4045_v50 = vld [vmem:[%s6099_s11 + $0x14] sm:$0xf]  ;;  %v4119_v57 = vld [vmem:[%s6065_s8 + $0x60] sm:$0xff] }
  0x33   : > { %972 = vmatpush.bf16.msra.mxu1 %v4070_v17  ;;  %v4624_v52 = vor.u32 %v4046_v49, %v3522_v48  ;;  %v4626_v53 = vor.u32 %v4045_v50, %v3524_v51  ;;  %v3530_v58 = vld [vmem:[%s6099_s11 + $0x20] sm:$0xf]  ;;  %v4048_v59 = vld [vmem:[%s6099_s11 + $0x24] sm:$0xf0]  ;;  %v4047_v60 = vld [vmem:[%s6099_s11 + $0x24] sm:$0xf] }
  0x34   : > { %1482 = vmatpush.bf16.msra.mxu2 %v4078_v18  ;;  %v3532_v61 = vld [vmem:[%s6099_s11 + $0x28] sm:$0xf0]  ;;  %v4656_v62 = vor.u32 %v4048_v59, %v3530_v58  ;;  %v4095_v0 = vld [vmem:[%s6064_s7 + $0x20] sm:$0xff]  ;;  %v4110_v2 = vld [vmem:[%s6065_s8 + $0x18] sm:$0xff] }
  0x35   : > { %1531 = vmatpush.bf16.msra.mxu3 %v4086_v19  ;;  %v4658_v63 = vor.u32 %v4047_v60, %v3532_v61  ;;  %v4103_v1 = vld [vmem:[%s6064_s7 + $0x60] sm:$0xff]  ;;  %v4118_v3 = vld [vmem:[%s6065_s8 + $0x58] sm:$0xff]  ;;  %v3538_v4 = vld [vmem:[%s6099_s11 + $0x30] sm:$0xf] }
  0x36   : > { %924 = vmatpush.bf16.msra.mxu0 %v4061_v20  ;;  %v4050_v5 = vld [vmem:[%s6099_s11 + $0x34] sm:$0xf0]  ;;  %v4049_v6 = vld [vmem:[%s6099_s11 + $0x34] sm:$0xf]  ;;  %v3540_v7 = vld [vmem:[%s6099_s11 + $0x38] sm:$0xf0] }
  0x37   : > { %973 = vmatpush.bf16.msra.mxu1 %v4069_v21  ;;  %v4688_v8 = vor.u32 %v4050_v5, %v3538_v4  ;;  %v4690_v9 = vor.u32 %v4049_v6, %v3540_v7  ;;  %v4094_v10 = vld [vmem:[%s6064_s7 + $0x18] sm:$0xff]  ;;  %v4109_v12 = vld [vmem:[%s6065_s8 + $0x10] sm:$0xff]  ;;  %v3546_v14 = vld [vmem:[%s6099_s11 + $0x40] sm:$0xf] }
  0x38   : > { %1483 = vmatpush.bf16.msra.mxu2 %v4077_v22  ;;  %v4102_v11 = vld [vmem:[%s6064_s7 + $0x58] sm:$0xff]  ;;  %v4117_v13 = vld [vmem:[%s6065_s8 + $0x50] sm:$0xff]  ;;  %v4052_v15 = vld [vmem:[%s6099_s11 + $0x44] sm:$0xf0] }
  0x39   : > { %1532 = vmatpush.bf16.msra.mxu3 %v4085_v23  ;;  %v4051_v16 = vld [vmem:[%s6099_s11 + $0x44] sm:$0xf]  ;;  %v3548_v17 = vld [vmem:[%s6099_s11 + $0x48] sm:$0xf0]  ;;  %v4720_v18 = vor.u32 %v4052_v15, %v3546_v14  ;;  %v4093_v20 = vld [vmem:[%s6064_s7 + $0x10] sm:$0xff] }
  0x3a   : > { %925 = vmatpush.bf16.msra.mxu0 %v4060_v24  ;;  %v4722_v19 = vor.u32 %v4051_v16, %v3548_v17  ;;  %v4101_v21 = vld [vmem:[%s6064_s7 + $0x50] sm:$0xff]  ;;  %v4108_v22 = vld [vmem:[%s6065_s8 + $0x8] sm:$0xff]  ;;  %v3562_v32 = vld [vmem:[%s6099_s11 + $0x60] sm:$0xf] }
  0x3b   : > { %974 = vmatpush.bf16.msra.mxu1 %v4068_v25  ;;  %v4116_v23 = vld [vmem:[%s6065_s8 + $0x48] sm:$0xff]  ;;  %v3554_v24 = vld [vmem:[%s6099_s11 + $0x50] sm:$0xf]  ;;  %v4054_v25 = vld [vmem:[%s6099_s11 + $0x54] sm:$0xf0] }
  0x3c   : > { %1484 = vmatpush.bf16.msra.mxu2 %v4076_v26  ;;  %v4053_v26 = vld [vmem:[%s6099_s11 + $0x54] sm:$0xf]  ;;  %v4092_v30 = vld [vmem:[%s6064_s7 + $0x8] sm:$0xff] }
  0x3d   : > { %1533 = vmatpush.bf16.msra.mxu3 %v4084_v27  ;;  %v3556_v27 = vld [vmem:[%s6099_s11 + $0x58] sm:$0xf0]  ;;  %v4100_v31 = vld [vmem:[%s6064_s7 + $0x48] sm:$0xff] }
  0x3e   : > { %926 = vmatpush.bf16.msra.mxu0 %v4059_v28  ;;  %v4752_v28 = vor.u32 %v4054_v25, %v3554_v24  ;;  %v4056_v33 = vld [vmem:[%s6099_s11 + $0x64] sm:$0xf0] }
  0x3f   : > { %975 = vmatpush.bf16.msra.mxu1 %v4067_v29  ;;  %v4754_v29 = vor.u32 %v4053_v26, %v3556_v27 }
  0x40   : > { %1485 = vmatpush.bf16.msra.mxu2 %v4075_v34  ;;  %v4055_v34 = vld [vmem:[%s6099_s11 + $0x64] sm:$0xf] }
  0x41   : > { %1534 = vmatpush.bf16.msra.mxu3 %v4083_v35  ;;  %927 = vmatmul.bf16.vlgmr.msra.gmra.mxu0 %v4580_v38  ;;  %v3564_v35 = vld [vmem:[%s6099_s11 + $0x68] sm:$0xf0] }
  0x42   : > { %976 = vmatmul.bf16.vlgmr.msra.gmra.mxu1 %v4582_v39  ;;  %2019 = vmatpush.bf16.msrb.mxu0 %v4098_v40  ;;  %v4107_v40 = vld [vmem:[%s6065_s8] sm:$0xff] }
  0x43   : > { %1486 = vmatmul.bf16.vlgmr.msra.gmra.mxu2 %v4580_v38  ;;  %2068 = vmatpush.bf16.msrb.mxu1 %v4106_v41  ;;  %v4115_v41 = vld [vmem:[%s6065_s8 + $0x40] sm:$0xff] }
  0x44   : > { %2245 = vmatpush.bf16.msrb.mxu2 %v4114_v36  ;;  %1535 = vmatmul.bf16.vlgmr.msra.gmra.mxu3 %v4582_v39  ;;  %v4778_v36 = vor.u32 %v4056_v33, %v3562_v32 }
  0x45   : > { %2294 = vmatpush.bf16.msrb.mxu3 %v4122_v37  ;;  %v4780_v37 = vor.u32 %v4055_v34, %v3564_v35 }
  0x46   : > { %2020 = vmatpush.bf16.msrb.mxu0 %v4097_v44  ;;  %v3570_v44 = vld [vmem:[%s6099_s11 + $0x70] sm:$0xf] }
  0x47   : > { %2069 = vmatpush.bf16.msrb.mxu1 %v4105_v45  ;;  %v4058_v45 = vld [vmem:[%s6099_s11 + $0x74] sm:$0xf0] }
  0x48   : > { %2246 = vmatpush.bf16.msrb.mxu2 %v4113_v42  ;;  %v4091_v42 = vld [vmem:[%s6064_s7] sm:$0xff]  ;;  %v4810_v48 = vor.u32 %v4058_v45, %v3570_v44 }
  0x49   : > { %2295 = vmatpush.bf16.msrb.mxu3 %v4121_v43  ;;  %v4099_v43 = vld [vmem:[%s6064_s7 + $0x40] sm:$0xff] }
  0x4a   : > { %2021 = vmatpush.bf16.msrb.mxu0 %v4096_v54 }
  0x4b   : > { %2070 = vmatpush.bf16.msrb.mxu1 %v4104_v55 }
  0x4c   : > { %2247 = vmatpush.bf16.msrb.mxu2 %v4112_v46  ;;  %v4057_v46 = vld [vmem:[%s6099_s11 + $0x74] sm:$0xf] }
  0x4d   : > { %2296 = vmatpush.bf16.msrb.mxu3 %v4120_v47  ;;  %v3572_v47 = vld [vmem:[%s6099_s11 + $0x78] sm:$0xf0] }
  0x4e   : > { %2022 = vmatpush.bf16.msrb.mxu0 %v4095_v0  ;;  %v4812_v49 = vor.u32 %v4057_v46, %v3572_v47 }
  0x4f   : > { %2071 = vmatpush.bf16.msrb.mxu1 %v4103_v1 }
  0x50   : > { %2248 = vmatpush.bf16.msrb.mxu2 %v4111_v56 }
  0x51   : > { %932 = vmatmul.bf16.gmra.mxu0 %v4624_v52  ;;  %2297 = vmatpush.bf16.msrb.mxu3 %v4119_v57 }
  0x52   : > { %981 = vmatmul.bf16.gmra.mxu1 %v4626_v53  ;;  %2023 = vmatpush.bf16.msrb.mxu0 %v4094_v10 }
  0x53   : > { %1491 = vmatmul.bf16.gmra.mxu2 %v4624_v52  ;;  %2072 = vmatpush.bf16.msrb.mxu1 %v4102_v11 }
  0x54   : > { %1540 = vmatmul.bf16.gmra.mxu3 %v4626_v53  ;;  %2249 = vmatpush.bf16.msrb.mxu2 %v4110_v2 }
  0x55   : > { %2298 = vmatpush.bf16.msrb.mxu3 %v4118_v3 }
  0x56   : > { %2024 = vmatpush.bf16.msrb.mxu0 %v4093_v20 }
  0x57   : > { %2073 = vmatpush.bf16.msrb.mxu1 %v4101_v21 }
  0x58   : > { %2250 = vmatpush.bf16.msrb.mxu2 %v4109_v12 }
  0x59   : > { %2299 = vmatpush.bf16.msrb.mxu3 %v4117_v13 }
  0x5a   : > { %2025 = vmatpush.bf16.msrb.mxu0 %v4092_v30 }
  0x5b   : > { %2074 = vmatpush.bf16.msrb.mxu1 %v4100_v31 }
  0x5c   : > { %2251 = vmatpush.bf16.msrb.mxu2 %v4108_v22 }
  0x5d   : > { %2300 = vmatpush.bf16.msrb.mxu3 %v4116_v23 }
  0x5e   : > { %2026 = vmatpush.bf16.msrb.mxu0 %v4091_v42 }
  0x5f   : > { %2075 = vmatpush.bf16.msrb.mxu1 %v4099_v43 }
  0x60   : > { %2252 = vmatpush.bf16.msrb.mxu2 %v4107_v40 }
  0x61   : > { %937 = vmatmul.bf16.gmra.mxu0 %v4656_v62  ;;  %2301 = vmatpush.bf16.msrb.mxu3 %v4115_v41 }
  0x62   : > { %986 = vmatmul.bf16.gmra.mxu1 %v4658_v63 }
  0x63   : > { %1496 = vmatmul.bf16.gmra.mxu2 %v4656_v62 }
  0x64   : > { %1545 = vmatmul.bf16.gmra.mxu3 %v4658_v63 }
  0x71   : > { %942 = vmatmul.bf16.gmra.mxu0 %v4688_v8 }
  0x72   : > { %991 = vmatmul.bf16.gmra.mxu1 %v4690_v9 }
  0x73   : > { %1501 = vmatmul.bf16.gmra.mxu2 %v4688_v8 }
  0x74   : > { %1550 = vmatmul.bf16.gmra.mxu3 %v4690_v9 }
  0x81   : > { %947 = vmatmul.bf16.gmra.mxu0 %v4720_v18 }
  0x82   : > { %996 = vmatmul.bf16.gmra.mxu1 %v4722_v19 }
  0x83   : > { %1506 = vmatmul.bf16.gmra.mxu2 %v4720_v18 }
  0x84   : > { %1555 = vmatmul.bf16.gmra.mxu3 %v4722_v19 }
  0x91   : > { %952 = vmatmul.bf16.gmra.mxu0 %v4752_v28 }
  0x92   : > { %1001 = vmatmul.bf16.gmra.mxu1 %v4754_v29 }
  0x93   : > { %1511 = vmatmul.bf16.gmra.mxu2 %v4752_v28 }
  0x94   : > { %1560 = vmatmul.bf16.gmra.mxu3 %v4754_v29 }
  0xa1   : > { %957 = vmatmul.bf16.gmra.mxu0 %v4778_v36 }
  0xa2   : > { %1006 = vmatmul.bf16.gmra.mxu1 %v4780_v37 }
  0xa3   : > { %1516 = vmatmul.bf16.gmra.mxu2 %v4778_v36 }
  0xa4   : > { %1565 = vmatmul.bf16.gmra.mxu3 %v4780_v37 }
  0xb1   : > { %962 = vmatmul.bf16.gmra.mxu0 %v4810_v48 }
  0xb2   : > { %1011 = vmatmul.bf16.gmra.mxu1 %v4812_v49 }
  0xb3   : > { %1521 = vmatmul.bf16.gmra.mxu2 %v4810_v48 }
  0xb4   : > { %1570 = vmatmul.bf16.gmra.mxu3 %v4812_v49 }
  0xbe   : > { %v928_v50 = vpop.f32.mrf.mxu0 }
  0xbf   : > { %v977_v51 = vpop.f32.mrf.mxu1 }
  0xc0   : > { %v4818_v54 = vadd.f32 %v977_v51, %v928_v50 }
  0xc1   : > { %2027 = vmatmul.bf16.vlgmr.msrb.gmra.mxu0 %v4580_v38 }
  0xc2   : > { %v1018_v55 = vmul.f32 %v4818_v54, %v4818_v54  ;;  %2076 = vmatmul.bf16.vlgmr.msrb.gmra.mxu1 %v4582_v39 }
  0xc3   : > { %2253 = vmatmul.bf16.vlgmr.msrb.gmra.mxu2 %v4580_v38 }
  0xc4   : > { %2302 = vmatmul.bf16.vlgmr.msrb.gmra.mxu3 %v4582_v39  ;;  %v1035_v56 = vsel %vm1034_vm0, %v1018_v55, 0.0 }
  0xc5   : > { %1036 = vadd.xlane.f32.xlu0 %v1035_v56 }
  0xc6   : > { %v1487_v57 = vpop.f32.mrf.mxu2  ;;  %v930_v60 = vpop.f32.mrf.mxu0 }
  0xc7   : > { %v1536_v58 = vpop.f32.mrf.mxu3  ;;  %v979_v61 = vpop.f32.mrf.mxu1 }
  0xc8   : > { %v4827_v59 = vadd.f32 %v1536_v58, %v1487_v57  ;;  %v4829_v0 = vadd.f32 %v979_v61, %v930_v60 }
  0xca   : > { %v1577_v1 = vmul.f32 %v4827_v59, %v4827_v59  ;;  %v1019_v2 = vmul.f32 %v4829_v0, %v4829_v0 }
  0xcc   : > { %1593 = vadd.xlane.f32.xlu1 %v1577_v1  ;;  %v1038_v38 = vsel %vm1034_vm0, %v1019_v2, 0.0 }
  0xcd   : > { %1039 = vadd.xlane.f32.xlu0 %v1038_v38 }
  0xce   : > { %v1489_v39 = vpop.f32.mrf.mxu2  ;;  %v933_v5 = vpop.f32.mrf.mxu0 }
  0xcf   : > { %v1538_v3 = vpop.f32.mrf.mxu3  ;;  %v982_v6 = vpop.f32.mrf.mxu1 }
  0xd0   : > { %v4836_v4 = vadd.f32 %v1538_v3, %v1489_v39  ;;  %v4838_v7 = vadd.f32 %v982_v6, %v933_v5 }
  0xd1   : > { %2032 = vmatmul.bf16.gmra.mxu0 %v4624_v52 }
  0xd2   : > { %v1578_v10 = vmul.f32 %v4836_v4, %v4836_v4  ;;  %v1020_v11 = vmul.f32 %v4838_v7, %v4838_v7  ;;  %2081 = vmatmul.bf16.gmra.mxu1 %v4626_v53 }
  0xd3   : > { %2258 = vmatmul.bf16.gmra.mxu2 %v4624_v52 }
  0xd4   : > { %1595 = vadd.xlane.f32.xlu2 %v1578_v10  ;;  %v1041_v12 = vsel %vm1034_vm0, %v1020_v11, 0.0  ;;  %2307 = vmatmul.bf16.gmra.mxu3 %v4626_v53 }
  0xd5   : > { %1042 = vadd.xlane.f32.xlu1 %v1041_v12 }
  0xd6   : > { %v1492_v13 = vpop.f32.mrf.mxu2  ;;  %v935_v16 = vpop.f32.mrf.mxu0 }
  0xd7   : > { %v1541_v14 = vpop.f32.mrf.mxu3  ;;  %v984_v17 = vpop.f32.mrf.mxu1 }
  0xd8   : > { %v4849_v15 = vadd.f32 %v1541_v14, %v1492_v13  ;;  %v4851_v20 = vadd.f32 %v984_v17, %v935_v16 }
  0xda   : > { %v1579_v21 = vmul.f32 %v4849_v15, %v4849_v15  ;;  %v1021_v22 = vmul.f32 %v4851_v20, %v4851_v20 }
  0xdc   : > { %1597 = vadd.xlane.f32.xlu0 %v1579_v21  ;;  %v1044_v52 = vsel %vm1034_vm0, %v1021_v22, 0.0 }
  0xdd   : > { %1045 = vadd.xlane.f32.xlu1 %v1044_v52 }
  0xde   : > { %v1494_v53 = vpop.f32.mrf.mxu2  ;;  %v938_v25 = vpop.f32.mrf.mxu0 }
  0xdf   : > { %v1543_v23 = vpop.f32.mrf.mxu3  ;;  %v987_v26 = vpop.f32.mrf.mxu1 }
  0xe0   : > { %v4858_v24 = vadd.f32 %v1543_v23, %v1494_v53  ;;  %v4860_v27 = vadd.f32 %v987_v26, %v938_v25 }
  0xe1   : > { %2037 = vmatmul.bf16.gmra.mxu0 %v4656_v62 }
  0xe2   : > { %v1022_v30 = vmul.f32 %v4860_v27, %v4860_v27  ;;  %2086 = vmatmul.bf16.gmra.mxu1 %v4658_v63  ;;  %v1580_v31 = vmul.f32 %v4858_v24, %v4858_v24 }
  0xe3   : > { %2263 = vmatmul.bf16.gmra.mxu2 %v4656_v62 }
  0xe4   : > { %v1047_v32 = vsel %vm1034_vm0, %v1022_v30, 0.0  ;;  %2312 = vmatmul.bf16.gmra.mxu3 %v4658_v63 }
  0xe5   : > { %1048 = vadd.xlane.f32.xlu2 %v1047_v32  ;;  %1599 = vadd.xlane.f32.xlu1 %v1580_v31 }
  0xe6   : > { %v1497_v33 = vpop.f32.mrf.mxu2  ;;  %v940_v40 = vpop.f32.mrf.mxu0 }
  0xe7   : > { %v1546_v34 = vpop.f32.mrf.mxu3  ;;  %v989_v41 = vpop.f32.mrf.mxu1 }
  0xe8   : > { %v4871_v35 = vadd.f32 %v1546_v34, %v1497_v33  ;;  %v4875_v43 = vadd.f32 %v989_v41, %v940_v40 }
  0xea   : > { %v1581_v42 = vmul.f32 %v4871_v35, %v4871_v35  ;;  %v1023_v47 = vmul.f32 %v4875_v43, %v4875_v43 }
  0xec   : > { %v1050_v55 = vsel %vm1034_vm0, %v1023_v47, 0.0 }
  0xed   : > { %1601 = vadd.xlane.f32.xlu2 %v1581_v42 }
  0xee   : > { %v1499_v44 = vpop.f32.mrf.mxu2  ;;  %v943_v46 = vpop.f32.mrf.mxu0 }
  0xef   : > { %v1548_v62 = vpop.f32.mrf.mxu3  ;;  %v992_v63 = vpop.f32.mrf.mxu1 }
  0xf0   : > { %v4877_v45 = vadd.f32 %v1548_v62, %v1499_v44  ;;  %v4883_v51 = vadd.f32 %v992_v63, %v943_v46 }
  0xf1   : > { %2042 = vmatmul.bf16.gmra.mxu0 %v4688_v8 }
  0xf2   : > { %v1582_v50 = vmul.f32 %v4877_v45, %v4877_v45  ;;  %2091 = vmatmul.bf16.gmra.mxu1 %v4690_v9  ;;  %v1024_v58 = vmul.f32 %v4883_v51, %v4883_v51 }
  0xf3   : > { %2268 = vmatmul.bf16.gmra.mxu2 %v4688_v8 }
  0xf4   : > { %1603 = vadd.xlane.f32.xlu0 %v1582_v50  ;;  %2317 = vmatmul.bf16.gmra.mxu3 %v4690_v9  ;;  %v1053_v8 = vsel %vm1034_vm0, %v1024_v58, 0.0 }
  0xf5   : > { %1051 = vadd.xlane.f32.xlu2 %v1050_v55 }
  0xf6   : > { %v1502_v56 = vpop.f32.mrf.mxu2  ;;  %v945_v61 = vpop.f32.mrf.mxu0 }
  0xf7   : > { %v1551_v57 = vpop.f32.mrf.mxu3  ;;  %v994_v1 = vpop.f32.mrf.mxu1 }
  0xf8   : > { %v4892_v60 = vadd.f32 %v1551_v57, %v1502_v56  ;;  %v4896_v38 = vadd.f32 %v994_v1, %v945_v61 }
  0xfa   : > { %v1583_v2 = vmul.f32 %v4892_v60, %v4892_v60  ;;  %v1025_v3 = vmul.f32 %v4896_v38, %v4896_v38 }
  0xfc   : > { %1605 = vadd.xlane.f32.xlu1 %v1583_v2  ;;  %1054 = vadd.xlane.f32.xlu0 %v1053_v8  ;;  %v1056_v13 = vsel %vm1034_vm0, %v1025_v3, 0.0  ;;  %v4317_v3 = vmov 128.0  }
  0xfe   : > { %v1504_v9 = vpop.f32.mrf.mxu2  ;;  %v948_v6 = vpop.f32.mrf.mxu0 }
  0xff   : > { %v1553_v39 = vpop.f32.mrf.mxu3  ;;  %v997_v10 = vpop.f32.mrf.mxu1 }
 0x100   : > { %v4901_v5 = vadd.f32 %v1553_v39, %v1504_v9  ;;  %v4905_v12 = vadd.f32 %v997_v10, %v948_v6 }
 0x101   : > { %2047 = vmatmul.bf16.gmra.mxu0 %v4720_v18 }
 0x102   : > { %v1584_v11 = vmul.f32 %v4901_v5, %v4901_v5  ;;  %2096 = vmatmul.bf16.gmra.mxu1 %v4722_v19  ;;  %v1026_v17 = vmul.f32 %v4905_v12, %v4905_v12 }
 0x103   : > { %2273 = vmatmul.bf16.gmra.mxu2 %v4720_v18 }
 0x104   : > { %1607 = vadd.xlane.f32.xlu2 %v1584_v11  ;;  %1057 = vadd.xlane.f32.xlu1 %v1056_v13  ;;  %v1059_v25 = vsel %vm1034_vm0, %v1026_v17, 0.0 }
 0x105   : > { %2322 = vmatmul.bf16.gmra.mxu3 %v4722_v19 }
 0x106   : > { %v1507_v14 = vpop.f32.mrf.mxu2  ;;  %v950_v22 = vpop.f32.mrf.mxu0 }
 0x107   : > { %v1556_v16 = vpop.f32.mrf.mxu3  ;;  %v999_v52 = vpop.f32.mrf.mxu1 }
 0x108   : > { %v4914_v21 = vadd.f32 %v1556_v16, %v1507_v14  ;;  %v4918_v23 = vadd.f32 %v999_v52, %v950_v22 }
 0x10a   : > { %v1585_v53 = vmul.f32 %v4914_v21, %v4914_v21  ;;  %v1027_v26 = vmul.f32 %v4918_v23, %v4918_v23 }
 0x10c   : > { %1060 = vadd.xlane.f32.xlu2 %v1059_v25  ;;  %1609 = vadd.xlane.f32.xlu0 %v1585_v53  ;;  %v1062_v40 = vsel %vm1034_vm0, %v1027_v26, 0.0 }
 0x10e   : > { %v1509_v18 = vpop.f32.mrf.mxu2  ;;  %v953_v31 = vpop.f32.mrf.mxu0 }
 0x10f   : > { %v1558_v19 = vpop.f32.mrf.mxu3  ;;  %v1002_v32 = vpop.f32.mrf.mxu1 }
 0x110   : > { %v4923_v30 = vadd.f32 %v1558_v19, %v1509_v18  ;;  %v4927_v34 = vadd.f32 %v1002_v32, %v953_v31 }
 0x111   : > { %2052 = vmatmul.bf16.gmra.mxu0 %v4752_v28 }
 0x112   : > { %v1586_v33 = vmul.f32 %v4923_v30, %v4923_v30  ;;  %2101 = vmatmul.bf16.gmra.mxu1 %v4754_v29  ;;  %v1028_v44 = vmul.f32 %v4927_v34, %v4927_v34 }
 0x113   : > { %2278 = vmatmul.bf16.gmra.mxu2 %v4752_v28  ;;  %v4316_v28 = vmov 64.0  }
 0x114   : > { %1611 = vadd.xlane.f32.xlu1 %v1586_v33  ;;  %1063 = vadd.xlane.f32.xlu0 %v1062_v40  ;;  %v1065_v55 = vsel %vm1034_vm0, %v1028_v44, 0.0  ;;  %4238 = vrcp.f32 %v4316_v28 }
 0x115   : > { %2327 = vmatmul.bf16.gmra.mxu3 %v4754_v29  ;;  %4240 = vrcp.f32 %v4317_v3 }
 0x116   : > { %v1512_v41 = vpop.f32.mrf.mxu2  ;;  %v955_v46 = vpop.f32.mrf.mxu0 }
 0x117   : > { %v1561_v42 = vpop.f32.mrf.mxu3  ;;  %v1004_v63 = vpop.f32.mrf.mxu1 }
 0x118   : > { %v4936_v62 = vadd.f32 %v1561_v42, %v1512_v41  ;;  %v4940_v50 = vadd.f32 %v1004_v63, %v955_v46 }
 0x11a   : > { %v1587_v47 = vmul.f32 %v4936_v62, %v4936_v62  ;;  %v1029_v57 = vmul.f32 %v4940_v50, %v4940_v50  ;;  %v4239_v39 = vpop.eup %4238 }
 0x11b   : > { %v1084_v13 = vmul.f32 64.0, %v4239_v39  ;;  %v4241_v52 = vpop.eup %4240  ;;  %vm1088_vm1 = vweird.f32 %v4239_v39 }
 0x11c   : > { %1613 = vadd.xlane.f32.xlu2 %v1587_v47  ;;  %1066 = vadd.xlane.f32.xlu1 %v1065_v55  ;;  %v1068_v9 = vsel %vm1034_vm0, %v1029_v57, 0.0  ;;  %v1626_v25 = vmul.f32 128.0, %v4241_v52  ;;  %vm1630_vm2 = vweird.f32 %v4241_v52 }
 0x11e   : > { %v1514_v29 = vpop.f32.mrf.mxu2  ;;  %v958_v61 = vpop.f32.mrf.mxu0  ;;  %v1627_v41 = vsub.f32 1.0, %v1626_v25 }
 0x11f   : > { %v1563_v56 = vpop.f32.mrf.mxu3  ;;  %v1007_v1 = vpop.f32.mrf.mxu1 }
 0x120   : > { %v4945_v58 = vadd.f32 %v1563_v56, %v1514_v29  ;;  %v4949_v8 = vadd.f32 %v1007_v1, %v958_v61  ;;  %v1628_v47 = vmul.f32 %v4241_v52, %v1627_v41 }
 0x121   : > { %2057 = vmatmul.bf16.gmra.mxu0 %v4778_v36 }
 0x122   : > { %v1588_v2 = vmul.f32 %v4945_v58, %v4945_v58  ;;  %2106 = vmatmul.bf16.gmra.mxu1 %v4780_v37  ;;  %v1030_v11 = vmul.f32 %v4949_v8, %v4949_v8  ;;  %v1629_v3 = vadd.f32 %v4241_v52, %v1628_v47 }
 0x123   : > { %2283 = vmatmul.bf16.gmra.mxu2 %v4778_v36 }
 0x124   : > { %1069 = vadd.xlane.f32.xlu2 %v1068_v9  ;;  %1615 = vadd.xlane.f32.xlu0 %v1588_v2  ;;  %v1071_v36 = vsel %vm1034_vm0, %v1030_v11, 0.0 }
 0x125   : > { %2332 = vmatmul.bf16.gmra.mxu3 %v4780_v37  ;;  %v1085_v37 = vsub.f32 1.0, %v1084_v13 }
 0x126   : > { %v1517_v6 = vpop.f32.mrf.mxu2  ;;  %v960_v16 = vpop.f32.mrf.mxu0 }
 0x127   : > { %v1566_v10 = vpop.f32.mrf.mxu3  ;;  %v1009_v17 = vpop.f32.mrf.mxu1  ;;  %v1086_v31 = vmul.f32 %v4239_v39, %v1085_v37 }
 0x128   : > { %v4958_v14 = vadd.f32 %v1566_v10, %v1517_v6  ;;  %v4962_v53 = vadd.f32 %v1009_v17, %v960_v16  ;;  %v4989_v10 = vsel %vm1630_vm2, %v4241_v52, %v1629_v3 }
 0x129   : > { %v1087_v46 = vadd.f32 %v4239_v39, %v1086_v31 }
 0x12a   : > { %v1589_v22 = vmul.f32 %v4958_v14, %v4958_v14  ;;  %v1031_v26 = vmul.f32 %v4962_v53, %v4962_v53 }
 0x12b   : > { %v4977_v29 = vsel %vm1088_vm1, %v4239_v39, %v1087_v46 }
 0x12c   : > { %1617 = vadd.xlane.f32.xlu1 %v1589_v22  ;;  %1072 = vadd.xlane.f32.xlu0 %v1071_v36  ;;  %v1074_v42 = vsel %vm1034_vm0, %v1031_v26, 0.0 }
 0x12e   : > { %v1519_v18 = vpop.f32.mrf.mxu2  ;;  %v963_v32 = vpop.f32.mrf.mxu0 }
 0x12f   : > { %v1568_v19 = vpop.f32.mrf.mxu3  ;;  %v1012_v33 = vpop.f32.mrf.mxu1 }
 0x130   : > { %v4967_v40 = vadd.f32 %v1012_v33, %v963_v32  ;;  %v4979_v56 = vadd.f32 %v1568_v19, %v1519_v18 }
 0x131   : > { %2062 = vmatmul.bf16.gmra.mxu0 %v4810_v48 }
 0x132   : > { %v1032_v44 = vmul.f32 %v4967_v40, %v4967_v40  ;;  %2111 = vmatmul.bf16.gmra.mxu1 %v4812_v49  ;;  %v1590_v6 = vmul.f32 %v4979_v56, %v4979_v56 }
 0x133   : > { %2288 = vmatmul.bf16.gmra.mxu2 %v4810_v48 }
 0x134   : > { %1075 = vadd.xlane.f32.xlu1 %v1074_v42  ;;  %v1077_v63 = vsel %vm1034_vm0, %v1032_v44, 0.0 }
 0x135   : > { %2337 = vmatmul.bf16.gmra.mxu3 %v4812_v49  ;;  %1078 = vadd.xlane.f32.xlu2 %v1077_v63  ;;  %v2343_v63 = vld [vmem:[%s6069_s12] sm:$0xff] }
 0x136   : > { %v1522_v55 = vpop.f32.mrf.mxu2  ;;  %v965_v57 = vpop.f32.mrf.mxu0 }
 0x137   : > { %v1571_v28 = vpop.f32.mrf.mxu3  ;;  %v1014_v61 = vpop.f32.mrf.mxu1 }
 0x138   : > { %v4981_v1 = vadd.f32 %v1014_v61, %v965_v57  ;;  %v1037_v2 = vpop.xlane.xlu0 %1036  ;;  %v4991_v16 = vadd.f32 %v1571_v28, %v1522_v55  ;;  %v2375_v57 = vld [vmem:[%s6070_s13] sm:$0xff] }
 0x139   : > { %v1090_v9 = vmul.f32 %v4977_v29, %v1037_v2 }
 0x13a   : > { %v1033_v48 = vmul.f32 %v4981_v1, %v4981_v1  ;;  %v1591_v33 = vmul.f32 %v4991_v16, %v4991_v16 }
 0x13b   : > { %v1106_v49 = vadd.f32 1e-06, %v1090_v9 }
 0x13c   : > { %v1080_v39 = vsel %vm1034_vm0, %v1033_v48, 0.0 }
 0x13d   : > { %4242 = vrsqrt.f32 %v1106_v49  ;;  %1619 = vadd.xlane.f32.xlu2 %v1590_v6  ;;  %1081 = vadd.xlane.f32.xlu0 %v1080_v39  ;;  %vm1128_vm4 = vweird.f32 %v1106_v49 }
 0x13e   : > { %v1524_v11 = vpop.f32.mrf.mxu2  ;;  %v2028_v36 = vpop.f32.mrf.mxu0 }
 0x13f   : > { %v1573_v13 = vpop.f32.mrf.mxu3  ;;  %v1594_v22 = vpop.xlane.xlu1 %1593 }
 0x140   : > { %v4993_v17 = vadd.f32 %v1573_v13, %v1524_v11  ;;  %v1632_v37 = vmul.f32 %v4989_v10, %v1594_v22  ;;  %v1040_v25 = vpop.xlane.xlu0 %1039  ;;  %v2077_v18 = vpop.f32.mrf.mxu1 }
 0x141   : > { %v1091_v19 = vmul.f32 %v4977_v29, %v1040_v25  ;;  %v2078_v42 = vadd.f32 %v2077_v18, %v2028_v36 }
 0x142   : > { %v1592_v52 = vmul.f32 %v4993_v17, %v4993_v17  ;;  %v4999_v26 = vadd.f32 1e-06, %v1632_v37 }
 0x143   : > { %v4243_v31 = vpop.eup %4242  ;;  %v5001_v32 = vadd.f32 1e-06, %v1091_v19  ;;  %v2359_v11 = vmul.f32 %v2343_v63, %v2078_v42 }
 0x144   : > { %1623 = vadd.xlane.f32.xlu1 %v1592_v52  ;;  %v1123_v41 = vmul.f32 %v4243_v31, %v1106_v49  ;;  %4244 = vrsqrt.f32 %v4999_v26  ;;  %vm1129_vm3 = vweird.f32 %v4243_v31  ;;  %vm1670_vm11 = vweird.f32 %v4999_v26 }
 0x145   : > { %4246 = vrsqrt.f32 %v5001_v32  ;;  %1621 = vadd.xlane.f32.xlu0 %v1591_v33  ;;  %vm1130_vm6 = vmor %vm1128_vm4, %vm1129_vm3  ;;  %vm1138_vm8 = vweird.f32 %v5001_v32 }
 0x146   : > { %v1124_v44 = vmul.f32 %v4243_v31, %v1123_v41  ;;  %v2254_v47 = vpop.f32.mrf.mxu2  ;;  %v2030_v61 = vpop.f32.mrf.mxu0  ;;  %v5031_v41 = vld [vmem:[%s6100_s24] ss:$0 sm:$0xff] }
 0x147   : > { %v1596_v46 = vpop.xlane.xlu2 %1595  ;;  %v2303_v28 = vpop.f32.mrf.mxu3 }
 0x148   : > { %v1633_v55 = vmul.f32 %v4989_v10, %v1596_v46  ;;  %v1125_v2 = vmul.f32 0.5, %v1124_v44  ;;  %v1043_v9 = vpop.xlane.xlu1 %1042  ;;  %v2304_v3 = vadd.f32 %v2303_v28, %v2254_v47  ;;  %v2079_v48 = vpop.f32.mrf.mxu1  ;;  %v2344_v44 = vld [vmem:[%s6069_s12 + $0x8] sm:$0xff] }
 0x149   : > { %v1092_v39 = vmul.f32 %v4977_v29, %v1043_v9  ;;  %v2080_v33 = vadd.f32 %v2079_v48, %v2030_v61 }
 0x14a   : > { %v5014_v6 = vadd.f32 1e-06, %v1633_v55  ;;  %v5017_v13 = vpop.eup %4244  ;;  %v1126_v22 = vsub.f32 1.5, %v1125_v2  ;;  %v2391_v36 = vmul.f32 %v2375_v57, %v2304_v3  ;;  %v2376_v3 = vld [vmem:[%s6070_s13 + $0x8] sm:$0xff] }
 0x14b   : > { %v5019_v37 = vpop.eup %4246  ;;  %v1665_v25 = vmul.f32 %v5017_v13, %v4999_v26  ;;  %v5026_v52 = vadd.f32 1e-06, %v1092_v39  ;;  %vm1671_vm10 = vweird.f32 %v5017_v13 }
 0x14c   : > { %4248 = vrsqrt.f32 %v5014_v6  ;;  %v1127_v18 = vmul.f32 %v4243_v31, %v1126_v22  ;;  %v1133_v19 = vmul.f32 %v5019_v37, %v5001_v32  ;;  %v2407_v42 = vadd.f32 %v2391_v36, %v2359_v11  ;;  %vm5077_vm14 = vmor %vm1670_vm11, %vm1671_vm10 }
 0x14d   : > { %v1666_v49 = vmul.f32 %v5017_v13, %v1665_v25  ;;  %4250 = vrsqrt.f32 %v5026_v52  ;;  %v2360_v11 = vmul.f32 %v2344_v44, %v2080_v33  ;;  %vm1139_vm9 = vweird.f32 %v5019_v37 }
 0x14e   : > { %v1131_v46 = vsel %vm1130_vm6, %v4243_v31, %v1127_v18  ;;  %v1134_v63 = vmul.f32 %v5019_v37, %v1133_v19  ;;  %v2256_v55 = vpop.f32.mrf.mxu2  ;;  %v2423_v61 = vpack.c.bf16 %v2407_v42, %v2407_v42  ;;  %v2033_v48 = vpop.f32.mrf.mxu0  ;;  %vm1140_vm12 = vmor %vm1138_vm8, %vm1139_vm9  ;;  %vm1680_vm13 = vweird.f32 %v5014_v6 }
 0x14f   : > { %v1598_v47 = vpop.xlane.xlu0 %1597  ;;  %v1282_v28 = vmul.f32 %v1131_v46, %v4818_v54  ;;  %v1667_v57 = vmul.f32 0.5, %v1666_v49  ;;  %v2305_v9 = vpop.f32.mrf.mxu3  ;;  %vm1148_vm2 = vweird.f32 %v5026_v52 }
 0x150   : > { %v1634_v2 = vmul.f32 %v4989_v10, %v1598_v47  ;;  %v1135_v31 = vmul.f32 0.5, %v1134_v63  ;;  %v1046_v39 = vpop.xlane.xlu1 %1045  ;;  %v2306_v22 = vadd.f32 %v2305_v9, %v2256_v55  ;;  %v2082_v36 = vpop.f32.mrf.mxu1  ;;  %2440 = vst.msk [vmem:[%s6101_s29] sm:$0xf] %vm2439_vm7, %v2423_v61 }
 0x151   : > { %v1301_v54 = vmul.f32 %v5031_v41, %v1282_v28  ;;  %v1668_v18 = vsub.f32 1.5, %v1667_v57  ;;  %v1093_v49 = vmul.f32 %v4977_v29, %v1046_v39  ;;  %v2083_v9 = vadd.f32 %v2082_v36, %v2033_v48 }
 0x152   : > { %v5045_v25 = vpop.eup %4248  ;;  %v5052_v19 = vadd.f32 1e-06, %v1634_v2  ;;  %v1136_v42 = vsub.f32 1.5, %v1135_v31  ;;  %v2392_v44 = vmul.f32 %v2376_v3, %v2306_v22  ;;  %v2345_v3 = vld [vmem:[%s6069_s12 + $0x10] sm:$0xff] }
 0x153   : > { %v1675_v33 = vmul.f32 %v5045_v25, %v5014_v6  ;;  %v1317_v46 = vpack.c.bf16 %v1301_v54, %v1301_v54  ;;  %v1669_v63 = vmul.f32 %v5017_v13, %v1668_v18  ;;  %v5061_v47 = vpop.eup %4250  ;;  %v5065_v57 = vadd.f32 1e-06, %v1093_v49 }
 0x154   : > { %4252 = vrsqrt.f32 %v5052_v19  ;;  %v1137_v55 = vmul.f32 %v5019_v37, %v1136_v42  ;;  %v2408_v61 = vadd.f32 %v2392_v44, %v2360_v11  ;;  %v1143_v2 = vmul.f32 %v5061_v47, %v5026_v52  ;;  %v2346_v52 = vld [vmem:[%s6069_s12 + $0x18] sm:$0xff] }
 0x155   : > { %v1676_v28 = vmul.f32 %v5045_v25, %v1675_v33  ;;  %1334 = vst.msk [vmem:[#allocation2] sm:$0xf] %vm1333_vm5, %v1317_v46  ;;  %vm1681_vm15 = vweird.f32 %v5045_v25  ;;  %4254 = vrsqrt.f32 %v5065_v57  ;;  %v1673_v48 = vsel %vm5077_vm14, %v5017_v13, %v1669_v63 }
 0x156   : > { %v1141_v39 = vsel %vm1140_vm12, %v5019_v37, %v1137_v55  ;;  %v2259_v32 = vpop.f32.mrf.mxu2  ;;  %v1144_v22 = vmul.f32 %v5061_v47, %v1143_v2  ;;  %v2424_v36 = vpack.c.bf16 %v2408_v61, %v2408_v61  ;;  %v2377_v37 = vld [vmem:[%s6070_s13 + $0x10] sm:$0xff]  ;;  %v2035_v18 = vpop.f32.mrf.mxu0  ;;  %vm1149_vm0 = vweird.f32 %v5061_v47  ;;  %v5105_v2 = vld [vmem:[%s6104_s3] ss:$0 sm:$0xff]  ;;  %vm1682_vm1 = vmor %vm1680_vm13, %vm1681_vm15 }
 0x157   : > { %v1677_v26 = vmul.f32 0.5, %v1676_v28  ;;  %v1283_v11 = vmul.f32 %v1141_v39, %v4829_v0  ;;  %v2308_v54 = vpop.f32.mrf.mxu3  ;;  %v2361_v44 = vmul.f32 %v2345_v3, %v2083_v9  ;;  %v1824_v9 = vmul.f32 %v1673_v48, %v4827_v59  ;;  %vm1150_vm3 = vmor %vm1148_vm2, %vm1149_vm0 }
 0x158   : > { %v1049_v42 = vpop.xlane.xlu2 %1048  ;;  %v1600_v33 = vpop.xlane.xlu1 %1599  ;;  %v2309_v46 = vadd.f32 %v2308_v54, %v2259_v32  ;;  %v1145_v13 = vmul.f32 0.5, %v1144_v22  ;;  %2441 = vst.msk [vmem:[%s6101_s29 + $0x4] sm:$0xf] %vm2439_vm7, %v2424_v36  ;;  %vm1690_vm8 = vweird.f32 %v5052_v19  ;;  %vm1158_vm10 = vweird.f32 %v5065_v57 }
 0x159   : > { %v1678_v49 = vsub.f32 1.5, %v1677_v26  ;;  %v1302_v0 = vmul.f32 %v5031_v41, %v1283_v11  ;;  %v1094_v63 = vmul.f32 %v4977_v29, %v1049_v42  ;;  %v1635_v28 = vmul.f32 %v4989_v10, %v1600_v33  ;;  %v2084_v61 = vpop.f32.mrf.mxu1 }
 0x15a   : > { %v5093_v55 = vpop.eup %4252  ;;  %v2393_v39 = vmul.f32 %v2377_v37, %v2309_v46  ;;  %v1146_v32 = vsub.f32 1.5, %v1145_v13  ;;  %v1843_v42 = vmul.f32 %v5105_v2, %v1824_v9  ;;  %v2085_v33 = vadd.f32 %v2084_v61, %v2035_v18  ;;  %v2378_v61 = vld [vmem:[%s6070_s13 + $0x18] sm:$0xff] }
 0x15b   : > { %v1679_v3 = vmul.f32 %v5045_v25, %v1678_v49  ;;  %v1685_v31 = vmul.f32 %v5093_v55, %v5052_v19  ;;  %v1318_v26 = vpack.c.bf16 %v1302_v0, %v1302_v0  ;;  %v5115_v11 = vadd.f32 1e-06, %v1094_v63  ;;  %v5119_v36 = vpop.eup %4254 }
 0x15c   : > { %v5117_v22 = vadd.f32 1e-06, %v1635_v28  ;;  %v2409_v54 = vadd.f32 %v2393_v39, %v2361_v44  ;;  %v1147_v49 = vmul.f32 %v5061_v47, %v1146_v32  ;;  %v1153_v6 = vmul.f32 %v5119_v36, %v5065_v57 }
 0x15d   : > { %v1683_v59 = vsel %vm1682_vm1, %v5045_v25, %v1679_v3  ;;  %v1686_v48 = vmul.f32 %v5093_v55, %v1685_v31  ;;  %1335 = vst.msk [vmem:[#allocation2 + $0x4] sm:$0xf] %vm1333_vm5, %v1318_v26  ;;  %4256 = vrsqrt.f32 %v5115_v11  ;;  %vm1691_vm4 = vweird.f32 %v5093_v55 }
 0x15e   : > { %v1825_v37 = vmul.f32 %v1683_v59, %v4836_v4  ;;  %v2261_v44 = vpop.f32.mrf.mxu2  ;;  %v1151_v4 = vsel %vm1150_vm3, %v5061_v47, %v1147_v49  ;;  %v1154_v0 = vmul.f32 %v5119_v36, %v1153_v6  ;;  %4258 = vrsqrt.f32 %v5117_v22  ;;  %v2038_v63 = vpop.f32.mrf.mxu0  ;;  %vm5160_vm9 = vmor %vm1690_vm8, %vm1691_vm4 }
 0x15f   : > { %v1687_v25 = vmul.f32 0.5, %v1686_v48  ;;  %v2310_v13 = vpop.f32.mrf.mxu3  ;;  %v1284_v28 = vmul.f32 %v1151_v4, %v4838_v7  ;;  %v2425_v3 = vpack.c.bf16 %v2409_v54, %v2409_v54  ;;  %vm1159_vm6 = vweird.f32 %v5119_v36 }
 0x160   : > { %v1844_v46 = vmul.f32 %v5105_v2, %v1825_v37  ;;  %v1602_v18 = vpop.xlane.xlu2 %1601  ;;  %v1155_v31 = vmul.f32 0.5, %v1154_v0  ;;  %v2311_v26 = vadd.f32 %v2310_v13, %v2261_v44  ;;  %v2362_v7 = vmul.f32 %v2346_v52, %v2085_v33  ;;  %vm1160_vm11 = vmor %vm1158_vm10, %vm1159_vm6  ;;  %v2347_v52 = vld [vmem:[%s6069_s12 + $0x20] sm:$0xff] }
 0x161   : > { %v1688_v9 = vsub.f32 1.5, %v1687_v25  ;;  %v1636_v39 = vmul.f32 %v4989_v10, %v1602_v18  ;;  %v2087_v32 = vpop.f32.mrf.mxu1  ;;  %v1303_v59 = vmul.f32 %v5031_v41, %v1284_v28  ;;  %2442 = vst.msk [vmem:[%s6101_s29 + $0x8] sm:$0xf] %vm2439_vm7, %v2425_v3  ;;  %v2379_v18 = vld [vmem:[%s6070_s13 + $0x20] sm:$0xff]  ;;  %vm1168_vm12 = vweird.f32 %v5115_v11 }
 0x162   : > { %v4170_v47 = vpack.c.bf16 %v1844_v46, %v1843_v42  ;;  %v1156_v54 = vsub.f32 1.5, %v1155_v31  ;;  %v2394_v49 = vmul.f32 %v2378_v61, %v2311_v26  ;;  %v2088_v4 = vadd.f32 %v2087_v32, %v2038_v63 }
 0x163   : > { %v1689_v48 = vmul.f32 %v5093_v55, %v1688_v9  ;;  %v5153_v37 = vadd.f32 1e-06, %v1636_v39  ;;  %v5155_v6 = vpop.eup %4256  ;;  %v1319_v42 = vpack.c.bf16 %v1303_v59, %v1303_v59  ;;  %vm1700_vm0 = vweird.f32 %v5117_v22 }
 0x164   : > { %4171 = vst [vmem:[#allocation3 + $0x30] sm:$0xff] %v4170_v47   ;;  %v5158_v25 = vpop.eup %4258  ;;  %v1157_v33 = vmul.f32 %v5119_v36, %v1156_v54  ;;  %v1163_v46 = vmul.f32 %v5155_v6, %v5115_v11  ;;  %v2410_v9 = vadd.f32 %v2394_v49, %v2362_v7  ;;  %vm1169_vm13 = vweird.f32 %v5155_v6 }
 0x165   : > { %1336 = vst.msk [vmem:[#allocation2 + $0x8] sm:$0xf] %vm1333_vm5, %v1319_v42  ;;  %v1695_v19 = vmul.f32 %v5158_v25, %v5117_v22  ;;  %4260 = vrsqrt.f32 %v5153_v37  ;;  %v1693_v13 = vsel %vm5160_vm9, %v5093_v55, %v1689_v48  ;;  %v2363_v48 = vmul.f32 %v2347_v52, %v2088_v4  ;;  %vm5210_vm15 = vmor %vm1168_vm12, %vm1169_vm13  ;;  %v2348_v22 = vld [vmem:[%s6069_s12 + $0x28] sm:$0xff] }
 0x166   : > { %v2264_v57 = vpop.f32.mrf.mxu2  ;;  %v1161_v63 = vsel %vm1160_vm11, %v5119_v36, %v1157_v33  ;;  %v1164_v28 = vmul.f32 %v5155_v6, %v1163_v46  ;;  %v2040_v61 = vpop.f32.mrf.mxu0  ;;  %v2426_v59 = vpack.c.bf16 %v2410_v9, %v2410_v9  ;;  %vm1701_vm14 = vweird.f32 %v5158_v25 }
 0x167   : > { %v1604_v0 = vpop.xlane.xlu0 %1603  ;;  %v2313_v3 = vpop.f32.mrf.mxu3  ;;  %v1285_v47 = vmul.f32 %v1161_v63, %v4851_v20  ;;  %v1696_v31 = vmul.f32 %v5158_v25, %v1695_v19  ;;  %vm1702_vm1 = vmor %vm1700_vm0, %vm1701_vm14  ;;  %vm1710_vm3 = vweird.f32 %v5153_v37 }
 0x168   : > { %v1637_v39 = vmul.f32 %v4989_v10, %v1604_v0  ;;  %v1052_v26 = vpop.xlane.xlu2 %1051  ;;  %v2314_v32 = vadd.f32 %v2313_v3, %v2264_v57  ;;  %v1165_v55 = vmul.f32 0.5, %v1164_v28  ;;  %2443 = vst.msk [vmem:[%s6101_s29 + $0xc] sm:$0xf] %vm2439_vm7, %v2426_v59  ;;  %v1826_v0 = vmul.f32 %v1693_v13, %v4849_v15 }
 0x169   : > { %v1095_v36 = vmul.f32 %v4977_v29, %v1052_v26  ;;  %v2089_v7 = vpop.f32.mrf.mxu1  ;;  %v1304_v54 = vmul.f32 %v5031_v41, %v1285_v47  ;;  %v1697_v49 = vmul.f32 0.5, %v1696_v31 }
 0x16a   : > { %v5190_v42 = vadd.f32 1e-06, %v1637_v39  ;;  %v2395_v44 = vmul.f32 %v2379_v18, %v2314_v32  ;;  %v1166_v33 = vsub.f32 1.5, %v1165_v55  ;;  %v2090_v13 = vadd.f32 %v2089_v7, %v2040_v61  ;;  %v2380_v61 = vld [vmem:[%s6070_s13 + $0x28] sm:$0xff] }
 0x16b   : > { %v5198_v20 = vadd.f32 1e-06, %v1095_v36  ;;  %v5200_v46 = vpop.eup %4260  ;;  %v1320_v4 = vpack.c.bf16 %v1304_v54, %v1304_v54  ;;  %v1698_v19 = vsub.f32 1.5, %v1697_v49 }
 0x16c   : > { %4262 = vrsqrt.f32 %v5190_v42  ;;  %v1167_v11 = vmul.f32 %v5155_v6, %v1166_v33  ;;  %v1705_v52 = vmul.f32 %v5200_v46, %v5153_v37  ;;  %v2411_v28 = vadd.f32 %v2395_v44, %v2363_v48 }
 0x16d   : > { %4264 = vrsqrt.f32 %v5198_v20  ;;  %1337 = vst.msk [vmem:[#allocation2 + $0xc] sm:$0xf] %vm1333_vm5, %v1320_v4  ;;  %v1699_v63 = vmul.f32 %v5158_v25, %v1698_v19  ;;  %v1845_v48 = vmul.f32 %v5105_v2, %v1826_v0  ;;  %vm1711_vm2 = vweird.f32 %v5200_v46 }
 0x16e   : > { %v1171_v3 = vsel %vm5210_vm15, %v5155_v6, %v1167_v11  ;;  %v1706_v18 = vmul.f32 %v5200_v46, %v1705_v52  ;;  %v2266_v39 = vpop.f32.mrf.mxu2  ;;  %v2427_v55 = vpack.c.bf16 %v2411_v28, %v2411_v28  ;;  %v2043_v36 = vpop.f32.mrf.mxu0  ;;  %vm1712_vm4 = vmor %vm1710_vm3, %vm1711_vm2  ;;  %vm1720_vm8 = vweird.f32 %v5190_v42 }
 0x16f   : > { %v1606_v9 = vpop.xlane.xlu1 %1605  ;;  %v1055_v15 = vpop.xlane.xlu0 %1054  ;;  %v1286_v6 = vmul.f32 %v1171_v3, %v4860_v27  ;;  %v1703_v32 = vsel %vm1702_vm1, %v5158_v25, %v1699_v63  ;;  %v2364_v25 = vmul.f32 %v2348_v22, %v2090_v13  ;;  %vm1178_vm10 = vweird.f32 %v5198_v20 }
 0x170   : > { %v1638_v47 = vmul.f32 %v4989_v10, %v1606_v9  ;;  %v1096_v31 = vmul.f32 %v4977_v29, %v1055_v15  ;;  %v2315_v26 = vpop.f32.mrf.mxu3  ;;  %v1827_v7 = vmul.f32 %v1703_v32, %v4858_v24  ;;  %v1707_v54 = vmul.f32 0.5, %v1706_v18  ;;  %2444 = vst.msk [vmem:[%s6101_s29 + $0x10] sm:$0xf] %vm2439_vm7, %v2427_v55 }
 0x171   : > { %v2316_v59 = vadd.f32 %v2315_v26, %v2266_v39  ;;  %v2092_v44 = vpop.f32.mrf.mxu1  ;;  %v1305_v4 = vmul.f32 %v5031_v41, %v1286_v6 }
 0x172   : > { %v5234_v49 = vadd.f32 1e-06, %v1638_v47  ;;  %v5236_v33 = vpop.eup %4262  ;;  %v5243_v27 = vadd.f32 1e-06, %v1096_v31  ;;  %v1846_v24 = vmul.f32 %v5105_v2, %v1827_v7  ;;  %v1708_v11 = vsub.f32 1.5, %v1707_v54 }
 0x173   : > { %v2396_v19 = vmul.f32 %v2380_v61, %v2316_v59  ;;  %v5245_v0 = vpop.eup %4264  ;;  %v1715_v52 = vmul.f32 %v5236_v33, %v5190_v42  ;;  %v1321_v57 = vpack.c.bf16 %v1305_v4, %v1305_v4  ;;  %v2093_v59 = vadd.f32 %v2092_v44, %v2043_v36  ;;  %v2381_v42 = vld [vmem:[%s6070_s13 + $0x30] sm:$0xff] }
 0x174   : > { %v1173_v63 = vmul.f32 %v5245_v0, %v5198_v20  ;;  %4266 = vrsqrt.f32 %v5234_v49  ;;  %v4175_v28 = vpack.c.bf16 %v1846_v24, %v1845_v48  ;;  %v1709_v9 = vmul.f32 %v5200_v46, %v1708_v11 }
 0x175   : > { %v1716_v15 = vmul.f32 %v5236_v33, %v1715_v52  ;;  %1338 = vst.msk [vmem:[#allocation2 + $0x10] sm:$0xf] %vm1333_vm5, %v1321_v57  ;;  %4268 = vrsqrt.f32 %v5243_v27  ;;  %v2412_v3 = vadd.f32 %v2396_v19, %v2364_v25  ;;  %vm1721_vm6 = vweird.f32 %v5236_v33 }
 0x176   : > { %v1174_v13 = vmul.f32 %v5245_v0, %v1173_v63  ;;  %4207 = vst [vmem:[#allocation3] sm:$0xff] %v4175_v28   ;;  %v1713_v31 = vsel %vm1712_vm4, %v5200_v46, %v1709_v9  ;;  %v2269_v26 = vpop.f32.mrf.mxu2  ;;  %v2045_v48 = vpop.f32.mrf.mxu0  ;;  %v2349_v46 = vld [vmem:[%s6069_s12 + $0x30] sm:$0xff]  ;;  %vm1179_vm9 = vweird.f32 %v5245_v0  ;;  %vm1722_vm11 = vmor %vm1720_vm8, %vm1721_vm6  ;;  %vm1730_vm12 = vweird.f32 %v5234_v49 }
 0x177   : > { %v1608_v18 = vpop.xlane.xlu2 %1607  ;;  %v1058_v47 = vpop.xlane.xlu1 %1057  ;;  %v1717_v22 = vmul.f32 0.5, %v1716_v15  ;;  %v1828_v6 = vmul.f32 %v1713_v31, %v4871_v35  ;;  %v2428_v55 = vpack.c.bf16 %v2412_v3, %v2412_v3  ;;  %v2365_v20 = vmul.f32 %v2349_v46, %v2093_v59  ;;  %vm1180_vm13 = vmor %vm1178_vm10, %vm1179_vm9  ;;  %v2350_v46 = vld [vmem:[%s6069_s12 + $0x38] sm:$0xff] }
 0x178   : > { %v1639_v39 = vmul.f32 %v4989_v10, %v1608_v18  ;;  %v1097_v37 = vmul.f32 %v4977_v29, %v1058_v47  ;;  %v2318_v61 = vpop.f32.mrf.mxu3  ;;  %v1175_v32 = vmul.f32 0.5, %v1174_v13  ;;  %vm1188_vm14 = vweird.f32 %v5243_v27 }
 0x179   : > { %v1718_v7 = vsub.f32 1.5, %v1717_v22  ;;  %v2094_v25 = vpop.f32.mrf.mxu1  ;;  %2445 = vst.msk [vmem:[%s6101_s29 + $0x14] sm:$0xf] %vm2439_vm7, %v2428_v55  ;;  %v2319_v36 = vadd.f32 %v2318_v61, %v2269_v26  ;;  %v1847_v52 = vmul.f32 %v5105_v2, %v1828_v6 }
 0x17a   : > { %v5265_v54 = vadd.f32 1e-06, %v1639_v39  ;;  %v5267_v4 = vadd.f32 1e-06, %v1097_v37  ;;  %v5272_v19 = vpop.eup %4266  ;;  %v1176_v35 = vsub.f32 1.5, %v1175_v32  ;;  %v2095_v15 = vadd.f32 %v2094_v25, %v2045_v48 }
 0x17b   : > { %v1719_v44 = vmul.f32 %v5236_v33, %v1718_v7  ;;  %v1725_v24 = vmul.f32 %v5272_v19, %v5234_v49  ;;  %v5288_v11 = vpop.eup %4268  ;;  %vm1731_vm15 = vweird.f32 %v5272_v19  ;;  %v2397_v18 = vmul.f32 %v2381_v42, %v2319_v36 }
 0x17c   : > { %4270 = vrsqrt.f32 %v5265_v54  ;;  %v1177_v57 = vmul.f32 %v5245_v0, %v1176_v35  ;;  %v1183_v9 = vmul.f32 %v5288_v11, %v5243_v27  ;;  %vm1189_vm0 = vweird.f32 %v5288_v11  ;;  %vm5338_vm2 = vmor %vm1730_vm12, %vm1731_vm15 }
 0x17d   : > { %4272 = vrsqrt.f32 %v5267_v4  ;;  %v1723_v63 = vsel %vm1722_vm11, %v5236_v33, %v1719_v44  ;;  %v1726_v28 = vmul.f32 %v5272_v19, %v1725_v24  ;;  %vm1740_vm1 = vweird.f32 %v5265_v54  ;;  %vm1190_vm4 = vmor %vm1188_vm14, %vm1189_vm0 }
 0x17e   : > { %v1829_v13 = vmul.f32 %v1723_v63, %v4877_v45  ;;  %v1181_v3 = vsel %vm1180_vm13, %v5245_v0, %v1177_v57  ;;  %v1184_v39 = vmul.f32 %v5288_v11, %v1183_v9  ;;  %v2271_v26 = vpop.f32.mrf.mxu2  ;;  %v2413_v45 = vadd.f32 %v2397_v18, %v2365_v20  ;;  %v2048_v32 = vpop.f32.mrf.mxu0  ;;  %v2382_v9 = vld [vmem:[%s6070_s13 + $0x38] sm:$0xff] }
 0x17f   : > { %v1061_v47 = vpop.xlane.xlu2 %1060  ;;  %v1610_v33 = vpop.xlane.xlu0 %1609  ;;  %v1287_v31 = vmul.f32 %v1181_v3, %v4875_v43  ;;  %v1727_v22 = vmul.f32 0.5, %v1726_v28  ;;  %vm1198_vm3 = vweird.f32 %v5267_v4 }
 0x180   : > { %v1098_v37 = vmul.f32 %v4977_v29, %v1061_v47  ;;  %v2320_v61 = vpop.f32.mrf.mxu3  ;;  %v1848_v6 = vmul.f32 %v5105_v2, %v1829_v13  ;;  %v1640_v0 = vmul.f32 %v4989_v10, %v1610_v33  ;;  %v1185_v48 = vmul.f32 0.5, %v1184_v39 }
 0x181   : > { %v1306_v59 = vmul.f32 %v5031_v41, %v1287_v31  ;;  %v1728_v43 = vsub.f32 1.5, %v1727_v22  ;;  %v2097_v25 = vpop.f32.mrf.mxu1  ;;  %v2429_v24 = vpack.c.bf16 %v2413_v45, %v2413_v45  ;;  %v2321_v42 = vadd.f32 %v2320_v61, %v2271_v26 }
 0x182   : > { %v5312_v55 = vpop.eup %4270  ;;  %v5315_v7 = vadd.f32 1e-06, %v1098_v37  ;;  %v4180_v36 = vpack.c.bf16 %v1848_v6, %v1847_v52  ;;  %v1186_v63 = vsub.f32 1.5, %v1185_v48  ;;  %v2366_v52 = vmul.f32 %v2350_v46, %v2095_v15 }
 0x183   : > { %v5320_v35 = vpop.eup %4272  ;;  %v1735_v44 = vmul.f32 %v5312_v55, %v5265_v54  ;;  %v1322_v57 = vpack.c.bf16 %v1306_v59, %v1306_v59  ;;  %v1729_v20 = vmul.f32 %v5272_v19, %v1728_v43  ;;  %v5345_v33 = vadd.f32 1e-06, %v1640_v0  ;;  %2446 = vst.msk [vmem:[%s6101_s29 + $0x18] sm:$0xf] %vm2439_vm7, %v2429_v24  ;;  %v2351_v59 = vld [vmem:[%s6069_s12 + $0x40] sm:$0xff] }
 0x184   : > { %v1193_v28 = vmul.f32 %v5320_v35, %v5267_v4  ;;  %4208 = vst [vmem:[#allocation3 + $0x18] sm:$0xff] %v4180_v36   ;;  %4274 = vrsqrt.f32 %v5315_v7  ;;  %v1187_v18 = vmul.f32 %v5288_v11, %v1186_v63  ;;  %vm1741_vm6 = vweird.f32 %v5312_v55 }
 0x185   : > { %v1736_v13 = vmul.f32 %v5312_v55, %v1735_v44  ;;  %1339 = vst.msk [vmem:[#allocation2 + $0x14] sm:$0xf] %vm1333_vm5, %v1322_v57  ;;  %v1733_v15 = vsel %vm5338_vm2, %v5272_v19, %v1729_v20  ;;  %v2398_v31 = vmul.f32 %v2382_v9, %v2321_v42  ;;  %4276 = vrsqrt.f32 %v5345_v33  ;;  %vm1742_vm9 = vmor %vm1740_vm1, %vm1741_vm6 }
 0x186   : > { %v1194_v47 = vmul.f32 %v5320_v35, %v1193_v28  ;;  %v1191_v37 = vsel %vm1190_vm4, %v5288_v11, %v1187_v18  ;;  %v2098_v19 = vadd.f32 %v2097_v25, %v2048_v32  ;;  %v2274_v61 = vpop.f32.mrf.mxu2  ;;  %vm1199_vm8 = vweird.f32 %v5320_v35  ;;  %v2050_v43 = vpop.f32.mrf.mxu0 }
 0x187   : > { %v1737_v49 = vmul.f32 0.5, %v1736_v13  ;;  %v1612_v22 = vpop.xlane.xlu1 %1611  ;;  %v1064_v39 = vpop.xlane.xlu0 %1063  ;;  %v1288_v6 = vmul.f32 %v1191_v37, %v4883_v51  ;;  %v2414_v0 = vadd.f32 %v2398_v31, %v2366_v52  ;;  %v1830_v48 = vmul.f32 %v1733_v15, %v4892_v60  ;;  %v2383_v51 = vld [vmem:[%s6070_s13 + $0x40] sm:$0xff]  ;;  %vm1200_vm10 = vmor %vm1198_vm3, %vm1199_vm8 }
 0x188   : > { %v1195_v26 = vmul.f32 0.5, %v1194_v47  ;;  %v2323_v27 = vpop.f32.mrf.mxu3  ;;  %v1641_v46 = vmul.f32 %v4989_v10, %v1612_v22  ;;  %v1099_v32 = vmul.f32 %v4977_v29, %v1064_v39  ;;  %v2367_v28 = vmul.f32 %v2351_v59, %v2098_v19 }
 0x189   : > { %v1738_v45 = vsub.f32 1.5, %v1737_v49  ;;  %v2099_v25 = vpop.f32.mrf.mxu1  ;;  %v1307_v44 = vmul.f32 %v5031_v41, %v1288_v6  ;;  %v2430_v42 = vpack.c.bf16 %v2414_v0, %v2414_v0  ;;  %v2324_v57 = vadd.f32 %v2323_v27, %v2274_v61 }
 0x18a   : > { %v1196_v11 = vsub.f32 1.5, %v1195_v26  ;;  %v5372_v36 = vpop.eup %4274  ;;  %v5383_v63 = vadd.f32 1e-06, %v1641_v46  ;;  %v5394_v54 = vadd.f32 1e-06, %v1099_v32  ;;  %v1849_v4 = vmul.f32 %v5105_v2, %v1830_v48 }
 0x18b   : > { %v1739_v24 = vmul.f32 %v5312_v55, %v1738_v45  ;;  %v1203_v20 = vmul.f32 %v5372_v36, %v5315_v7  ;;  %v1323_v9 = vpack.c.bf16 %v1307_v44, %v1307_v44  ;;  %2447 = vst.msk [vmem:[%s6101_s29 + $0x1c] sm:$0xf] %vm2439_vm7, %v2430_v42  ;;  %v2399_v52 = vmul.f32 %v2383_v51, %v2324_v57  ;;  %v5396_v3 = vpop.eup %4276  ;;  %v2352_v44 = vld [vmem:[%s6069_s12 + $0x48] sm:$0xff] }
 0x18c   : > { %v1197_v60 = vmul.f32 %v5320_v35, %v1196_v11  ;;  %4278 = vrsqrt.f32 %v5383_v63  ;;  %v1745_v49 = vmul.f32 %v5396_v3, %v5345_v33  ;;  %vm1209_vm11 = vweird.f32 %v5372_v36 }
 0x18d   : > { %v1743_v13 = vsel %vm1742_vm9, %v5312_v55, %v1739_v24  ;;  %v1204_v55 = vmul.f32 %v5372_v36, %v1203_v20  ;;  %1340 = vst.msk [vmem:[#allocation2 + $0x18] sm:$0xf] %vm1333_vm5, %v1323_v9  ;;  %4280 = vrsqrt.f32 %v5394_v54  ;;  %v2415_v61 = vadd.f32 %v2399_v52, %v2367_v28 }
 0x18e   : > { %v1831_v18 = vmul.f32 %v1743_v13, %v4901_v5  ;;  %v1201_v47 = vsel %vm1200_vm10, %v5320_v35, %v1197_v60  ;;  %v2276_v35 = vpop.f32.mrf.mxu2  ;;  %v1746_v19 = vmul.f32 %v5396_v3, %v1745_v49  ;;  %v2053_v27 = vpop.f32.mrf.mxu0  ;;  %v2100_v59 = vadd.f32 %v2099_v25, %v2050_v43 }
 0x18f   : > { %v1289_v15 = vmul.f32 %v1201_v47, %v4896_v38  ;;  %v1614_v31 = vpop.xlane.xlu2 %1613  ;;  %v1067_v22 = vpop.xlane.xlu1 %1066  ;;  %v1205_v5 = vmul.f32 0.5, %v1204_v55  ;;  %v2431_v32 = vpack.c.bf16 %v2415_v61, %v2415_v61  ;;  %vm1208_vm12 = vweird.f32 %v5315_v7  ;;  %v2384_v7 = vld [vmem:[%s6070_s13 + $0x48] sm:$0xff] }
 0x190   : > { %v1850_v39 = vmul.f32 %v5105_v2, %v1831_v18  ;;  %v2325_v37 = vpop.f32.mrf.mxu3  ;;  %v1642_v38 = vmul.f32 %v4989_v10, %v1614_v31  ;;  %v1100_v0 = vmul.f32 %v4977_v29, %v1067_v22  ;;  %v1747_v46 = vmul.f32 0.5, %v1746_v19  ;;  %vm1210_vm13 = vmor %vm1208_vm12, %vm1209_vm11 }
 0x191   : > { %v1308_v26 = vmul.f32 %v5031_v41, %v1289_v15  ;;  %v1206_v45 = vsub.f32 1.5, %v1205_v5  ;;  %v2102_v48 = vpop.f32.mrf.mxu1  ;;  %v2326_v43 = vadd.f32 %v2325_v37, %v2276_v35  ;;  %vm1751_vm14 = vweird.f32 %v5396_v3  ;;  %2448 = vst.msk [vmem:[%s6101_s29 + $0x20] sm:$0xf] %vm2439_vm7, %v2431_v32 }
 0x192   : > { %v4185_v6 = vpack.c.bf16 %v1850_v39, %v1849_v4  ;;  %v5414_v51 = vadd.f32 1e-06, %v1642_v38  ;;  %v5419_v24 = vpop.eup %4278  ;;  %v5423_v57 = vadd.f32 1e-06, %v1100_v0  ;;  %v1748_v25 = vsub.f32 1.5, %v1747_v46 }
 0x193   : > { %v1324_v11 = vpack.c.bf16 %v1308_v26, %v1308_v26  ;;  %v1207_v42 = vmul.f32 %v5372_v36, %v1206_v45  ;;  %v1755_v60 = vmul.f32 %v5419_v24, %v5383_v63  ;;  %v5435_v20 = vpop.eup %4280  ;;  %vm1750_vm15 = vweird.f32 %v5345_v33 }
 0x194   : > { %4209 = vst [vmem:[#allocation3 + $0x10] sm:$0xff] %v4185_v6   ;;  %4282 = vrsqrt.f32 %v5414_v51  ;;  %v2368_v9 = vmul.f32 %v2352_v44, %v2100_v59  ;;  %v1749_v52 = vmul.f32 %v5396_v3, %v1748_v25  ;;  %v1213_v47 = vmul.f32 %v5435_v20, %v5394_v54  ;;  %vm1752_vm0 = vmor %vm1750_vm15, %vm1751_vm14 }
 0x195   : > { %1341 = vst.msk [vmem:[#allocation2 + $0x1c] sm:$0xf] %vm1333_vm5, %v1324_v11  ;;  %v1211_v28 = vsel %vm1210_vm13, %v5372_v36, %v1207_v42  ;;  %4284 = vrsqrt.f32 %v5423_v57  ;;  %v1756_v18 = vmul.f32 %v5419_v24, %v1755_v60  ;;  %vm1760_vm1 = vweird.f32 %v5383_v63  ;;  %v2385_v63 = vld [vmem:[%s6070_s13 + $0x50] sm:$0xff] }
 0x196   : > { %v1290_v13 = vmul.f32 %v1211_v28, %v4905_v12  ;;  %v2400_v33 = vmul.f32 %v2384_v7, %v2326_v43  ;;  %v2279_v12 = vpop.f32.mrf.mxu2  ;;  %v1753_v22 = vsel %vm1752_vm0, %v5396_v3, %v1749_v52  ;;  %v1214_v5 = vmul.f32 %v5435_v20, %v1213_v47  ;;  %v2055_v35 = vpop.f32.mrf.mxu0  ;;  %v2353_v43 = vld [vmem:[%s6069_s12 + $0x50] sm:$0xff] }
 0x197   : > { %v1070_v36 = vpop.xlane.xlu2 %1069  ;;  %v1616_v55 = vpop.xlane.xlu0 %1615  ;;  %v1757_v39 = vmul.f32 0.5, %v1756_v18  ;;  %v1832_v37 = vmul.f32 %v1753_v22, %v4914_v21  ;;  %vm1761_vm2 = vweird.f32 %v5419_v24  ;;  %vm1218_vm3 = vweird.f32 %v5394_v54 }
 0x198   : > { %v1101_v4 = vmul.f32 %v4977_v29, %v1070_v36  ;;  %v1643_v15 = vmul.f32 %v4989_v10, %v1616_v55  ;;  %v2328_v49 = vpop.f32.mrf.mxu3  ;;  %v1309_v31 = vmul.f32 %v5031_v41, %v1290_v13  ;;  %v2416_v26 = vadd.f32 %v2400_v33, %v2368_v9  ;;  %vm1762_vm8 = vmor %vm1760_vm1, %vm1761_vm2 }
 0x199   : > { %v2104_v61 = vpop.f32.mrf.mxu1  ;;  %v1758_v45 = vsub.f32 1.5, %v1757_v39  ;;  %v1215_v0 = vmul.f32 0.5, %v1214_v5  ;;  %v2103_v46 = vadd.f32 %v2102_v48, %v2053_v27  ;;  %vm1219_vm4 = vweird.f32 %v5435_v20 }
 0x19a   : > { %v5459_v19 = vadd.f32 1e-06, %v1101_v4  ;;  %v5461_v38 = vpop.eup %4282  ;;  %v1325_v6 = vpack.c.bf16 %v1309_v31, %v1309_v31  ;;  %v5463_v59 = vadd.f32 1e-06, %v1643_v15  ;;  %v2432_v11 = vpack.c.bf16 %v2416_v26, %v2416_v26  ;;  %vm1220_vm10 = vmor %vm1218_vm3, %vm1219_vm4 }
 0x19b   : > { %v5465_v3 = vpop.eup %4284  ;;  %v1765_v21 = vmul.f32 %v5461_v38, %v5414_v51  ;;  %v1759_v32 = vmul.f32 %v5419_v24, %v1758_v45  ;;  %v1216_v44 = vsub.f32 1.5, %v1215_v0  ;;  %vm1228_vm6 = vweird.f32 %v5423_v57 }
 0x19c   : > { %1342 = vst.msk [vmem:[#allocation2 + $0x20] sm:$0xf] %vm1333_vm5, %v1325_v6  ;;  %v1223_v42 = vmul.f32 %v5465_v3, %v5423_v57  ;;  %v1851_v25 = vmul.f32 %v5105_v2, %v1832_v37  ;;  %vm1771_vm9 = vweird.f32 %v5461_v38  ;;  %4286 = vrsqrt.f32 %v5459_v19 }
 0x19d   : > { %v1766_v27 = vmul.f32 %v5461_v38, %v1765_v21  ;;  %2449 = vst.msk [vmem:[%s6101_s29 + $0x24] sm:$0xf] %vm2439_vm7, %v2432_v11  ;;  %v1763_v48 = vsel %vm1762_vm8, %v5419_v24, %v1759_v32  ;;  %v1217_v60 = vmul.f32 %v5435_v20, %v1216_v44  ;;  %4288 = vrsqrt.f32 %v5463_v59 }
 0x19e   : > { %v1224_v7 = vmul.f32 %v5465_v3, %v1223_v42  ;;  %v1833_v13 = vmul.f32 %v1763_v48, %v4923_v30  ;;  %v2369_v52 = vmul.f32 %v2353_v43, %v2103_v46  ;;  %v2329_v18 = vadd.f32 %v2328_v49, %v2279_v12  ;;  %v2281_v47 = vpop.f32.mrf.mxu2  ;;  %v2058_v31 = vpop.f32.mrf.mxu0 }
 0x19f   : > { %v1618_v28 = vpop.xlane.xlu1 %1617  ;;  %v1073_v9 = vpop.xlane.xlu0 %1072  ;;  %v1767_v24 = vmul.f32 0.5, %v1766_v27  ;;  %v1221_v55 = vsel %vm1220_vm10, %v5435_v20, %v1217_v60  ;;  %vm1229_vm11 = vweird.f32 %v5465_v3  ;;  %v2105_v0 = vadd.f32 %v2104_v61, %v2055_v35  ;;  %v2354_v35 = vld [vmem:[%s6069_s12 + $0x58] sm:$0xff] }
 0x1a0   : > { %v2330_v36 = vpop.f32.mrf.mxu3  ;;  %v1225_v33 = vmul.f32 0.5, %v1224_v7  ;;  %v1644_v4 = vmul.f32 %v4989_v10, %v1618_v28  ;;  %v1102_v15 = vmul.f32 %v4977_v29, %v1073_v9  ;;  %v1852_v30 = vmul.f32 %v5105_v2, %v1833_v13  ;;  %vm1230_vm12 = vmor %vm1228_vm6, %vm1229_vm11  ;;  %v5557_v28 = vld [vmem:[%s6100_s24] ss:$0 sm:$0xff] }
 0x1a1   : > { %v1291_v22 = vmul.f32 %v1221_v55, %v4918_v23  ;;  %v1768_v39 = vsub.f32 1.5, %v1767_v24  ;;  %v2401_v54 = vmul.f32 %v2385_v63, %v2329_v18  ;;  %v2107_v5 = vpop.f32.mrf.mxu1  ;;  %vm1770_vm13 = vweird.f32 %v5414_v51  ;;  %v2386_v24 = vld [vmem:[%s6070_s13 + $0x58] sm:$0xff] }
 0x1a2   : > { %v1226_v37 = vsub.f32 1.5, %v1225_v33  ;;  %v5509_v12 = vadd.f32 1e-06, %v1644_v4  ;;  %v5511_v49 = vadd.f32 1e-06, %v1102_v15  ;;  %v5513_v20 = vpop.eup %4286  ;;  %v4190_v26 = vpack.c.bf16 %v1852_v30, %v1851_v25  ;;  %vm5538_vm14 = vmor %vm1770_vm13, %vm1771_vm9  ;;  %v2355_v30 = vld [vmem:[%s6069_s12 + $0x60] sm:$0xff] }
 0x1a3   : > { %v1310_v6 = vmul.f32 %v5031_v41, %v1291_v22  ;;  %v2417_v45 = vadd.f32 %v2401_v54, %v2369_v52  ;;  %v5516_v21 = vpop.eup %4288  ;;  %v1769_v23 = vmul.f32 %v5461_v38, %v1768_v39  ;;  %v1233_v46 = vmul.f32 %v5513_v20, %v5459_v19  ;;  %v2387_v54 = vld [vmem:[%s6070_s13 + $0x60] sm:$0xff] }
 0x1a4   : > { %v1227_v11 = vmul.f32 %v5465_v3, %v1226_v37  ;;  %4290 = vrsqrt.f32 %v5509_v12  ;;  %4210 = vst [vmem:[#allocation3 + $0x8] sm:$0xff] %v4190_v26   ;;  %v1775_v41 = vmul.f32 %v5516_v21, %v5463_v59  ;;  %vm1238_vm15 = vweird.f32 %v5459_v19 }
 0x1a5   : > { %v1326_v32 = vpack.c.bf16 %v1310_v6, %v1310_v6  ;;  %v1234_v44 = vmul.f32 %v5513_v20, %v1233_v46  ;;  %v2433_v42 = vpack.c.bf16 %v2417_v45, %v2417_v45  ;;  %4292 = vrsqrt.f32 %v5511_v49 }
 0x1a6   : > { %v1231_v61 = vsel %vm1230_vm12, %v5465_v3, %v1227_v11  ;;  %v1776_v51 = vmul.f32 %v5516_v21, %v1775_v41  ;;  %v2284_v3 = vpop.f32.mrf.mxu2  ;;  %v1773_v48 = vsel %vm5538_vm14, %v5461_v38, %v1769_v23  ;;  %vm1239_vm0 = vweird.f32 %v5513_v20  ;;  %v2060_v63 = vpop.f32.mrf.mxu0 }
 0x1a7   : > { %v1076_v43 = vpop.xlane.xlu1 %1075  ;;  %1343 = vst.msk [vmem:[#allocation2 + $0x24] sm:$0xf] %vm1333_vm5, %v1326_v32  ;;  %v1292_v25 = vmul.f32 %v1231_v61, %v4927_v34  ;;  %v1235_v60 = vmul.f32 0.5, %v1234_v44  ;;  %v2370_v34 = vmul.f32 %v2354_v35, %v2105_v0  ;;  %v2331_v38 = vadd.f32 %v2330_v36, %v2281_v47  ;;  %vm1240_vm3 = vmor %vm1238_vm15, %vm1239_vm0 }
 0x1a8   : > { %v2333_v27 = vpop.f32.mrf.mxu3  ;;  %2450 = vst.msk [vmem:[%s6101_s29 + $0x28] sm:$0xf] %vm2439_vm7, %v2433_v42  ;;  %v1079_v7 = vpop.xlane.xlu2 %1078  ;;  %v1777_v13 = vmul.f32 0.5, %v1776_v51  ;;  %v1103_v52 = vmul.f32 %v4977_v29, %v1076_v43  ;;  %v2108_v15 = vadd.f32 %v2107_v5, %v2058_v31  ;;  %vm1781_vm1 = vweird.f32 %v5516_v21 }
 0x1a9   : > { %v1311_v9 = vmul.f32 %v5557_v28, %v1292_v25  ;;  %v2109_v18 = vpop.f32.mrf.mxu1  ;;  %v1236_v33 = vsub.f32 1.5, %v1235_v60  ;;  %v1104_v4 = vmul.f32 %v4977_v29, %v1079_v7  ;;  %v2334_v22 = vadd.f32 %v2333_v27, %v2284_v3  ;;  %v2356_v27 = vld [vmem:[%s6069_s12 + $0x68] sm:$0xff] }
 0x1aa   : > { %v5564_v55 = vpop.eup %4290  ;;  %v1778_v47 = vsub.f32 1.5, %v1777_v13  ;;  %vm1780_vm2 = vweird.f32 %v5463_v59  ;;  %v2402_v31 = vmul.f32 %v2386_v24, %v2331_v38  ;;  %v5578_v5 = vadd.f32 1e-06, %v1103_v52 }
 0x1ab   : > { %v1327_v39 = vpack.c.bf16 %v1311_v9, %v1311_v9  ;;  %v1785_v36 = vmul.f32 %v5564_v55, %v5509_v12  ;;  %v1237_v37 = vmul.f32 %v5513_v20, %v1236_v33  ;;  %v5580_v26 = vpop.eup %4292  ;;  %v1834_v6 = vmul.f32 %v1773_v48, %v4936_v62  ;;  %vm1782_vm4 = vmor %vm1780_vm2, %vm1781_vm1  ;;  %v2388_v33 = vld [vmem:[%s6070_s13 + $0x68] sm:$0xff] }
 0x1ac   : > { %v1779_v45 = vmul.f32 %v5516_v21, %v1778_v47  ;;  %v5589_v0 = vadd.f32 1e-06, %v1104_v4  ;;  %v2371_v23 = vmul.f32 %v2355_v30, %v2108_v15  ;;  %v1243_v62 = vmul.f32 %v5580_v26, %v5511_v49 }
 0x1ad   : > { %1344 = vst.msk [vmem:[#allocation2 + $0x28] sm:$0xf] %vm1333_vm5, %v1327_v39  ;;  %v1241_v59 = vsel %vm1240_vm3, %v5513_v20, %v1237_v37  ;;  %v2418_v11 = vadd.f32 %v2402_v31, %v2370_v34  ;;  %v2403_v46 = vmul.f32 %v2387_v54, %v2334_v22  ;;  %v1786_v41 = vmul.f32 %v5564_v55, %v1785_v36 }
 0x1ae   : > { %v1293_v32 = vmul.f32 %v1241_v59, %v4940_v50  ;;  %v1783_v19 = vsel %vm1782_vm4, %v5516_v21, %v1779_v45  ;;  %4294 = vrsqrt.f32 %v5578_v5  ;;  %v2286_v35 = vpop.f32.mrf.mxu2  ;;  %v1244_v44 = vmul.f32 %v5580_v26, %v1243_v62  ;;  %v2063_v48 = vpop.f32.mrf.mxu0 }
 0x1af   : > { %v1835_v20 = vmul.f32 %v1783_v19, %v4945_v58  ;;  %v2434_v42 = vpack.c.bf16 %v2418_v11, %v2418_v11  ;;  %v1853_v25 = vmul.f32 %v5105_v2, %v1834_v6  ;;  %vm1249_vm6 = vweird.f32 %v5580_v26 }
 0x1b0   : > { %v2335_v61 = vpop.f32.mrf.mxu3  ;;  %v1620_v43 = vpop.xlane.xlu2 %1619  ;;  %v1312_v51 = vmul.f32 %v5557_v28, %v1293_v32  ;;  %4296 = vrsqrt.f32 %v5589_v0  ;;  %v1245_v21 = vmul.f32 0.5, %v1244_v44  ;;  %v2419_v58 = vadd.f32 %v2403_v46, %v2371_v23  ;;  %v2357_v32 = vld [vmem:[%s6069_s12 + $0x70] sm:$0xff] }
 0x1b1   : > { %v1082_v57 = vpop.xlane.xlu0 %1081  ;;  %v1854_v50 = vmul.f32 %v5105_v2, %v1835_v20  ;;  %2451 = vst.msk [vmem:[%s6101_s29 + $0x2c] sm:$0xf] %vm2439_vm7, %v2434_v42  ;;  %v1645_v3 = vmul.f32 %v4989_v10, %v1620_v43  ;;  %v2112_v60 = vpop.f32.mrf.mxu1  ;;  %v5615_v7 = vmul.f32 0.5, %v1786_v41  ;;  %v2110_v9 = vadd.f32 %v2109_v18, %v2060_v63 }
 0x1b2   : > { %v1328_v34 = vpack.c.bf16 %v1312_v51, %v1312_v51  ;;  %v1105_v2 = vmul.f32 %v4977_v29, %v1082_v57  ;;  %v1246_v38 = vsub.f32 1.5, %v1245_v21  ;;  %v2435_v24 = vpack.c.bf16 %v2419_v58, %v2419_v58 }
 0x1b3   : > { %v4195_v13 = vpack.c.bf16 %v1854_v50, %v1853_v25  ;;  %v5618_v52 = vadd.f32 1e-06, %v1645_v3  ;;  %v2372_v30 = vmul.f32 %v2356_v27, %v2110_v9  ;;  %v2336_v22 = vadd.f32 %v2335_v61, %v2286_v35 }
 0x1b4   : > { %v5623_v4 = vpop.eup %4294  ;;  %1345 = vst.msk [vmem:[#allocation2 + $0x2c] sm:$0xf] %vm1333_vm5, %v1328_v34  ;;  %v5626_v15 = vadd.f32 1e-06, %v1105_v2  ;;  %v1247_v29 = vmul.f32 %v5580_v26, %v1246_v38  ;;  %vm1248_vm8 = vweird.f32 %v5511_v49  ;;  %vm1258_vm10 = vweird.f32 %v5578_v5 }
 0x1b5   : > { %4211 = vst [vmem:[#allocation3 + $0x20] sm:$0xff] %v4195_v13   ;;  %v1253_v63 = vmul.f32 %v5623_v4, %v5578_v5  ;;  %vm1250_vm9 = vmor %vm1248_vm8, %vm1249_vm6  ;;  %4298 = vrsqrt.f32 %v5618_v52  ;;  %v2404_v47 = vmul.f32 %v2388_v33, %v2336_v22  ;;  %v1788_v54 = vsub.f32 1.5, %v5615_v7 }
 0x1b6   : > { %v5632_v39 = vpop.eup %4296  ;;  %2452 = vst.msk [vmem:[%s6101_s29 + $0x30] sm:$0xf] %vm2439_vm7, %v2435_v24  ;;  %v2289_v49 = vpop.f32.mrf.mxu2  ;;  %vm1791_vm11 = vweird.f32 %v5564_v55  ;;  %v1251_v37 = vsel %vm1250_vm9, %v5580_v26, %v1247_v29  ;;  %vm1268_vm12 = vweird.f32 %v5589_v0  ;;  %4300 = vrsqrt.f32 %v5626_v15  ;;  %v2358_v24 = vld [vmem:[%s6069_s12 + $0x78] sm:$0xff] }
 0x1b7   : > { %v1624_v18 = vpop.xlane.xlu1 %1623  ;;  %v1254_v31 = vmul.f32 %v5623_v4, %v1253_v63  ;;  %v1263_v6 = vmul.f32 %v5632_v39, %v5589_v0  ;;  %v1294_v23 = vmul.f32 %v1251_v37, %v4949_v8  ;;  %v2420_v59 = vadd.f32 %v2404_v47, %v2372_v30  ;;  %v2389_v8 = vld [vmem:[%s6070_s13 + $0x70] sm:$0xff] }
 0x1b8   : > { %v2338_v36 = vpop.f32.mrf.mxu3  ;;  %v1647_v46 = vmul.f32 %v4989_v10, %v1624_v18  ;;  %v2113_v35 = vadd.f32 %v2112_v60, %v2063_v48  ;;  %vm1259_vm13 = vweird.f32 %v5623_v4  ;;  %vm1269_vm14 = vweird.f32 %v5632_v39  ;;  %v2390_v18 = vld [vmem:[%s6070_s13 + $0x78] sm:$0xff] }
 0x1b9   : > { %v1622_v45 = vpop.xlane.xlu0 %1621  ;;  %v1255_v62 = vmul.f32 0.5, %v1254_v31  ;;  %v1264_v11 = vmul.f32 %v5632_v39, %v1263_v6  ;;  %v1313_v19 = vmul.f32 %v5557_v28, %v1294_v23  ;;  %v2436_v41 = vpack.c.bf16 %v2420_v59, %v2420_v59  ;;  %v2114_v43 = vpop.f32.mrf.mxu1  ;;  %vm1260_vm15 = vmor %vm1258_vm10, %vm1259_vm13 }
 0x1ba   : > { %v1646_v26 = vmul.f32 %v4989_v10, %v1622_v45  ;;  %v2339_v61 = vadd.f32 %v2338_v36, %v2289_v49  ;;  %v5662_v42 = vadd.f32 1e-06, %v1647_v46  ;;  %v2065_v10 = vpop.f32.mrf.mxu0  ;;  %v2373_v50 = vmul.f32 %v2357_v32, %v2113_v35  ;;  %vm1270_vm0 = vmor %vm1268_vm12, %vm1269_vm14 }
 0x1bb   : > { %v1256_v20 = vsub.f32 1.5, %v1255_v62  ;;  %v1265_v44 = vmul.f32 0.5, %v1264_v11  ;;  %v5664_v57 = vpop.eup %4298  ;;  %v1329_v25 = vpack.c.bf16 %v1313_v19, %v1313_v19  ;;  %2453 = vst.msk [vmem:[%s6101_s29 + $0x34] sm:$0xf] %vm2439_vm7, %v2436_v41  ;;  %v1789_v60 = vmul.f32 %v5564_v55, %v1788_v54 }
 0x1bc   : > { %v5670_v51 = vadd.f32 1e-06, %v1646_v26  ;;  %v2405_v21 = vmul.f32 %v2389_v8, %v2339_v61  ;;  %v1795_v27 = vmul.f32 %v5664_v57, %v5618_v52  ;;  %v5676_v48 = vpop.eup %4300  ;;  %4302 = vrsqrt.f32 %v5662_v42  ;;  %v4307_v61 = vld [vmem:[%s6104_s3] ss:$0 sm:$0xff] }
 0x1bd   : > { %v1257_v58 = vmul.f32 %v5623_v4, %v1256_v20  ;;  %v1266_v3 = vsub.f32 1.5, %v1265_v44  ;;  %1346 = vst.msk [vmem:[#allocation2 + $0x30] sm:$0xf] %vm1333_vm5, %v1329_v25  ;;  %v2115_v7 = vadd.f32 %v2114_v43, %v2065_v10  ;;  %v1273_v38 = vmul.f32 %v5676_v48, %v5626_v15 }
 0x1be   : > { %v2421_v34 = vadd.f32 %v2405_v21, %v2373_v50  ;;  %v1796_v13 = vmul.f32 %v5664_v57, %v1795_v27  ;;  %v2291_v33 = vpop.f32.mrf.mxu2  ;;  %4304 = vrsqrt.f32 %v5670_v51  ;;  %vm1790_vm1 = vweird.f32 %v5509_v12 }
 0x1bf   : > { %v1261_v2 = vsel %vm1260_vm15, %v5623_v4, %v1257_v58  ;;  %v1267_v9 = vmul.f32 %v5632_v39, %v1266_v3  ;;  %v1274_v63 = vmul.f32 %v5676_v48, %v1273_v38  ;;  %vm5707_vm2 = vmor %vm1790_vm1, %vm1791_vm11  ;;  %v2374_v12 = vmul.f32 %v2358_v24, %v2115_v7 }
 0x1c0   : > { %v2340_v5 = vpop.f32.mrf.mxu3  ;;  %v1295_v30 = vmul.f32 %v1261_v2, %v4962_v53  ;;  %v2437_v4 = vpack.c.bf16 %v2421_v34, %v2421_v34  ;;  %v1797_v29 = vmul.f32 0.5, %v1796_v13  ;;  %v1793_v49 = vsel %vm5707_vm2, %v5564_v55, %v1789_v60 }
 0x1c1   : > { %v1271_v22 = vsel %vm1270_vm0, %v5632_v39, %v1267_v9  ;;  %v2341_v39 = vadd.f32 %v2340_v5, %v2291_v33  ;;  %vm1801_vm3 = vweird.f32 %v5664_v57  ;;  %v1275_v54 = vmul.f32 0.5, %v1274_v63 }
 0x1c2   : > { %v1314_v0 = vmul.f32 %v5557_v28, %v1295_v30  ;;  %v1296_v47 = vmul.f32 %v1271_v22, %v4967_v40  ;;  %2454 = vst.msk [vmem:[%s6101_s29 + $0x38] sm:$0xf] %vm2439_vm7, %v2437_v4  ;;  %v1798_v36 = vsub.f32 1.5, %v1797_v29  ;;  %v4303_v37 = vpop.eup %4302  ;;  %vm1800_vm4 = vweird.f32 %v5618_v52 }
 0x1c3   : > { %v2406_v40 = vmul.f32 %v2390_v18, %v2341_v39  ;;  %v1276_v23 = vsub.f32 1.5, %v1275_v54  ;;  %vm1279_vm6 = vweird.f32 %v5676_v48  ;;  %v1815_v59 = vmul.f32 %v4303_v37, %v5662_v42  ;;  %vm1802_vm8 = vmor %vm1800_vm4, %vm1801_vm3 }
 0x1c4   : > { %v1330_v31 = vpack.c.bf16 %v1314_v0, %v1314_v0  ;;  %v1315_v6 = vmul.f32 %v5557_v28, %v1296_v47  ;;  %v1799_v45 = vmul.f32 %v5664_v57, %v1798_v36  ;;  %v4305_v62 = vpop.eup %4304  ;;  %v1836_v55 = vmul.f32 %v1793_v49, %v4958_v14 }
 0x1c5   : > { %vm1278_vm9 = vweird.f32 %v5626_v15  ;;  %v2422_v52 = vadd.f32 %v2406_v40, %v2374_v12  ;;  %v1277_v26 = vmul.f32 %v5676_v48, %v1276_v23  ;;  %v1816_v32 = vmul.f32 %v4303_v37, %v1815_v59 }
 0x1c6   : > { %1347 = vst.msk [vmem:[#allocation2 + $0x34] sm:$0xf] %vm1333_vm5, %v1330_v31  ;;  %v1331_v11 = vpack.c.bf16 %v1315_v6, %v1315_v6  ;;  %v1803_v46 = vsel %vm1802_vm8, %v5664_v57, %v1799_v45  ;;  %v1805_v8 = vmul.f32 %v4305_v62, %v5670_v51  ;;  %vm1280_vm10 = vmor %vm1278_vm9, %vm1279_vm6  ;;  %v1855_v20 = vmul.f32 %v4307_v61, %v1836_v55 }
 0x1c7   : > { %v1837_v14 = vmul.f32 %v1803_v46, %v4979_v56  ;;  %v2438_v19 = vpack.c.bf16 %v2422_v52, %v2422_v52  ;;  %v1281_v41 = vsel %vm1280_vm10, %v5676_v48, %v1277_v26  ;;  %v1817_v35 = vmul.f32 0.5, %v1816_v32 }
 0x1c8   : > { %1348 = vst.msk [vmem:[#allocation2 + $0x38] sm:$0xf] %vm1333_vm5, %v1331_v11  ;;  %v1806_v15 = vmul.f32 %v4305_v62, %v1805_v8  ;;  %v1297_v10 = vmul.f32 %v1281_v41, %v4981_v1  ;;  %vm1821_vm11 = vweird.f32 %v4303_v37  ;;  %vm1820_vm12 = vweird.f32 %v5662_v42 }
 0x1c9   : > { %v1856_v44 = vmul.f32 %v4307_v61, %v1837_v14  ;;  %2455 = vst.msk [vmem:[%s6101_s29 + $0x3c] sm:$0xf] %vm2439_vm7, %v2438_v19  ;;  %v1818_v56 = vsub.f32 1.5, %v1817_v35  ;;  %vm1811_vm13 = vweird.f32 %v4305_v62  ;;  %vm1822_vm14 = vmor %vm1820_vm12, %vm1821_vm11  ;;  %vm1810_vm15 = vweird.f32 %v5670_v51 }
 0x1ca   : > { %v1807_v43 = vmul.f32 0.5, %v1806_v15  ;;  %v1316_v25 = vmul.f32 %v5557_v28, %v1297_v10  ;;  %vm1812_vm7 = vmor %vm1810_vm15, %vm1811_vm13 }
 0x1cb   : > { %v4200_v57 = vpack.c.bf16 %v1856_v44, %v1855_v20  ;;  %v1819_v50 = vmul.f32 %v4303_v37, %v1818_v56 }
 0x1cc   : > { %v1808_v21 = vsub.f32 1.5, %v1807_v43  ;;  %v1332_v58 = vpack.c.bf16 %v1316_v25, %v1316_v25 }
 0x1cd   : > { %4212 = vst [vmem:[#allocation3 + $0x28] sm:$0xff] %v4200_v57   ;;  %v1823_v1 = vsel %vm1822_vm14, %v4303_v37, %v1819_v50 }
 0x1ce   : > { %v1809_v3 = vmul.f32 %v4305_v62, %v1808_v21  ;;  %1349 = vst.msk [vmem:[#allocation2 + $0x3c] sm:$0xf] %vm1333_vm5, %v1332_v58  ;;  %v1839_v27 = vmul.f32 %v1823_v1, %v4993_v17 }
 0x1d0   : > { %v1813_v48 = vsel %vm1812_vm7, %v4305_v62, %v1809_v3  ;;  %v1858_v60 = vmul.f32 %v4307_v61, %v1839_v27 }
 0x1d1   : > { %v1838_v28 = vmul.f32 %v1813_v48, %v4991_v16 }
 0x1d3   : > { %v1857_v34 = vmul.f32 %v4307_v61, %v1838_v28 }
 0x1d5   : > { %v4205_v42 = vpack.c.bf16 %v1858_v60, %v1857_v34 }
 0x1d7   : > { %4213 = vst [vmem:[#allocation3 + $0x38] sm:$0xff] %v4205_v42  }
 0x1d8 PF: > { %v4142_v7 = vld [vmem:[%s4424_s20 + $0x18] sm:$0xff]  ;;  %v4141_v51 = vld [vmem:[%s4424_s20 + $0x10] sm:$0xff]  ;;  %v4140_v16 = vld [vmem:[%s4424_s20 + $0x8] sm:$0xff]  ;;  %vm2560_vm5 = vcmask 523264   ;;  %vm2650_vm0 = vcmask 519168   ;;  %vm2925_vm1 = vcmask 257024  }
 0x1d9   : > { %4214 = vmatpush.bf16.msra.mxu1 %v4142_v7  ;;  %4215 = vmatpush.bf16.msra.mxu2 %v4142_v7  ;;  %v4139_v17 = vld [vmem:[%s4424_s20] sm:$0xff]  ;;  %v4146_v2 = vld [vmem:[%s4429_s2 + $0x18] sm:$0xff]  ;;  %v5759_v13 = vld [vmem:[#allocation2 + $0x10] sm:$0xff] }
 0x1da   : > { %4216 = vmatpush.bf16.msra.mxu3 %v4142_v7  ;;  %2589 = vmatpush.bf16.msra.mxu0 %v4142_v7  ;;  %v4158_v9 = vld [vmem:[%s4439_s9 + $0x38] sm:$0xff]  ;;  %v5761_v38 = vld [vmem:[#allocation2 + $0x28] sm:$0xff]  ;;  %v5765_v5 = vld [vmem:[#allocation2] sm:$0xff] }
 0x1db   : > { %v4150_v24 = vld [vmem:[%s4434_s25 + $0x18] sm:$0xff]  ;;  %v4145_v30 = vld [vmem:[%s4429_s2 + $0x10] sm:$0xff]  ;;  %v4144_v18 = vld [vmem:[%s4429_s2 + $0x8] sm:$0xff] }
 0x1dc   : > { %v4166_v33 = vld [vmem:[%s4444_s19 + $0x38] sm:$0xff]  ;;  %v4157_v4 = vld [vmem:[%s4439_s9 + $0x30] sm:$0xff]  ;;  %v4156_v53 = vld [vmem:[%s4439_s9 + $0x28] sm:$0xff] }
 0x1dd   : > { %4217 = vmatpush.bf16.msra.mxu1 %v4141_v51  ;;  %4218 = vmatpush.bf16.msra.mxu2 %v4141_v51  ;;  %v5773_v22 = vld [vmem:[#allocation2 + $0x38] sm:$0xff]  ;;  %v4165_v29 = vld [vmem:[%s4444_s19 + $0x30] sm:$0xff]  ;;  %v4164_v0 = vld [vmem:[%s4444_s19 + $0x28] sm:$0xff] }
 0x1de   : > { %4219 = vmatpush.bf16.msra.mxu3 %v4141_v51  ;;  %2590 = vmatpush.bf16.msra.mxu0 %v4141_v51  ;;  %v4149_v63 = vld [vmem:[%s4434_s25 + $0x10] sm:$0xff]  ;;  %v4148_v47 = vld [vmem:[%s4434_s25 + $0x8] sm:$0xff]  ;;  %v4143_v12 = vld [vmem:[%s4429_s2] sm:$0xff] }
 0x1df   : > { %v4155_v39 = vld [vmem:[%s4439_s9 + $0x20] sm:$0xff]  ;;  %v4154_v54 = vld [vmem:[%s4439_s9 + $0x18] sm:$0xff]  ;;  %v5790_v31 = vld [vmem:[#allocation2 + $0x30] sm:$0xff] }
 0x1e0   : > { %v4163_v49 = vld [vmem:[%s4444_s19 + $0x20] sm:$0xff]  ;;  %v4126_v37 = vld [vmem:[#allocation2 + $0x18] sm:$0xff]  ;;  %v4124_v40 = vld [vmem:[#allocation2 + $0x8] sm:$0xff] }
 0x1e1   : > { %4220 = vmatpush.bf16.msra.mxu1 %v4140_v16  ;;  %4221 = vmatpush.bf16.msra.mxu2 %v4140_v16  ;;  %v4147_v36 = vld [vmem:[%s4434_s25] sm:$0xff]  ;;  %v4162_v6 = vld [vmem:[%s4444_s19 + $0x18] sm:$0xff]  ;;  %v4153_v45 = vld [vmem:[%s4439_s9 + $0x10] sm:$0xff] }
 0x1e2   : > { %4222 = vmatpush.bf16.msra.mxu3 %v4140_v16  ;;  %2591 = vmatpush.bf16.msra.mxu0 %v4140_v16  ;;  %v4161_v23 = vld [vmem:[%s4444_s19 + $0x10] sm:$0xff]  ;;  %v4152_v59 = vld [vmem:[%s4439_s9 + $0x8] sm:$0xff]  ;;  %v4151_v55 = vld [vmem:[%s4439_s9] sm:$0xff] }
 0x1e3   : > { %v4160_v62 = vld [vmem:[%s4444_s19 + $0x8] sm:$0xff]  ;;  %v4159_v11 = vld [vmem:[%s4444_s19] sm:$0xff]  ;;  %v4131_v52 = vld [vmem:[#allocation3 + $0x30] sm:$0xff] }
 0x1e4   : > { %v4127_v46 = vld [vmem:[#allocation2 + $0x20] sm:$0xff]  ;;  %v4133_v32 = vld [vmem:[#allocation3 + $0x18] sm:$0xff]  ;;  %v4134_v8 = vld [vmem:[#allocation3 + $0x10] sm:$0xff] }
 0x1e5   : > { %4223 = vmatpush.bf16.msra.mxu1 %v4139_v17  ;;  %4224 = vmatpush.bf16.msra.mxu2 %v4139_v17  ;;  %v4132_v26 = vld [vmem:[#allocation3] sm:$0xff]  ;;  %v4135_v14 = vld [vmem:[#allocation3 + $0x8] sm:$0xff]  ;;  %v4138_v58 = vld [vmem:[#allocation3 + $0x38] sm:$0xff] }
 0x1e6   : > { %4225 = vmatpush.bf16.msra.mxu3 %v4139_v17  ;;  %2592 = vmatpush.bf16.msra.mxu0 %v4139_v17  ;;  %v4136_v19 = vld [vmem:[#allocation3 + $0x20] sm:$0xff]  ;;  %v4137_v41 = vld [vmem:[#allocation3 + $0x28] sm:$0xff] }
 0x1e8   : > { %3882 = vmatmul.msk.bf16.vlgmr.msra.gmra.mxu1 %vm2560_vm5, %v5759_v13  ;;  %3885 = vmatmul.msk.bf16.vlgmr.msra.gmra.mxu2 %vm2560_vm5, %v5761_v38 }
 0x1e9   : > { %2703 = vmatpush.bf16.msrb.mxu1 %v4146_v2  ;;  %2784 = vmatpush.bf16.msrb.mxu2 %v4150_v24 }
 0x1ea   : > { %3054 = vmatpush.bf16.msrb.mxu3 %v4158_v9  ;;  %3199 = vmatpush.bf16.msrb.mxu0 %v4166_v33 }
 0x1eb   : > { %3880 = vmatmul.msk.bf16.vlgmr.msra.gmra.mxu0 %vm2560_vm5, %v5765_v5  ;;  %3887 = vmatmul.msk.bf16.vlgmr.msra.gmra.mxu3 %vm2560_vm5, %v5773_v22 }
 0x1ed   : > { %2704 = vmatpush.bf16.msrb.mxu1 %v4145_v30  ;;  %2785 = vmatpush.bf16.msrb.mxu2 %v4149_v63 }
 0x1ee   : > { %3055 = vmatpush.bf16.msrb.mxu3 %v4157_v4  ;;  %3200 = vmatpush.bf16.msrb.mxu0 %v4165_v29 }
 0x1f1   : > { %2705 = vmatpush.bf16.msrb.mxu1 %v4144_v18  ;;  %2786 = vmatpush.bf16.msrb.mxu2 %v4148_v47 }
 0x1f2   : > { %3056 = vmatpush.bf16.msrb.mxu3 %v4156_v53  ;;  %3201 = vmatpush.bf16.msrb.mxu0 %v4164_v0 }
 0x1f5   : > { %2706 = vmatpush.bf16.msrb.mxu1 %v4143_v12  ;;  %2787 = vmatpush.bf16.msrb.mxu2 %v4147_v36  ;;  %v2861_v12 = vld [vmem:[%s6070_s13] sm:$0xff] }
 0x1f6   : > { %3057 = vmatpush.bf16.msrb.mxu3 %v4155_v39  ;;  %3202 = vmatpush.bf16.msrb.mxu0 %v4163_v49  ;;  %v2829_v49 = vld [vmem:[%s6069_s12] sm:$0xff] }
 0x1f8   : > { %3883 = vmatmul.msk.bf16.gmra.mxu1 %vm2560_vm5, %v4126_v37  ;;  %3886 = vmatmul.msk.bf16.gmra.mxu2 %vm2560_vm5, %v5790_v31 }
 0x1fa   : > { %3058 = vmatpush.bf16.msrb.mxu3 %v4154_v54  ;;  %3203 = vmatpush.bf16.msrb.mxu0 %v4162_v6 }
 0x1fb   : > { %3881 = vmatmul.msk.bf16.gmra.mxu0 %vm2560_vm5, %v4124_v40 }
 0x1fe   : > { %3059 = vmatpush.bf16.msrb.mxu3 %v4153_v45  ;;  %3204 = vmatpush.bf16.msrb.mxu0 %v4161_v23 }
 0x202   : > { %3060 = vmatpush.bf16.msrb.mxu3 %v4152_v59  ;;  %3205 = vmatpush.bf16.msrb.mxu0 %v4160_v62 }
 0x206   : > { %3061 = vmatpush.bf16.msrb.mxu3 %v4151_v55  ;;  %3206 = vmatpush.bf16.msrb.mxu0 %v4159_v11  ;;  %v2862_v55 = vld [vmem:[%s6070_s13 + $0x8] sm:$0xff] }
 0x207   : > { %v2830_v11 = vld [vmem:[%s6069_s12 + $0x8] sm:$0xff] }
 0x208   : > { %3884 = vmatmul.msk.bf16.gmra.mxu1 %vm2560_vm5, %v4127_v46  ;;  %3928 = vmatmul.msk.bf16.vlgmr.msrb.gmra.mxu2 %vm2560_vm5, %v5765_v5 }
 0x209   : > { %3062 = vmatmul.bf16.vlgmr.msrb.gmra.mxu3 %v4131_v52 }
 0x20b   : > { %3207 = vmatmul.bf16.vlgmr.msrb.gmra.mxu0 %v4131_v52 }
 0x218   : > { %3904 = vmatmul.msk.bf16.vlgmr.msrb.gmra.mxu1 %vm2560_vm5, %v5765_v5  ;;  %3929 = vmatmul.msk.bf16.gmra.mxu2 %vm2560_vm5, %v4124_v40 }
 0x219   : > { %3067 = vmatmul.bf16.gmra.mxu3 %v4132_v26 }
 0x21b   : > { %3212 = vmatmul.bf16.gmra.mxu0 %v4132_v26 }
 0x228   : > { %3905 = vmatmul.msk.bf16.gmra.mxu1 %vm2560_vm5, %v4124_v40  ;;  %3930 = vmatmul.msk.bf16.gmra.mxu2 %vm2560_vm5, %v5759_v13 }
 0x229   : > { %3072 = vmatmul.bf16.gmra.mxu3 %v4133_v32 }
 0x22b   : > { %3217 = vmatmul.bf16.gmra.mxu0 %v4133_v32 }
 0x238   : > { %3906 = vmatmul.msk.bf16.gmra.mxu1 %vm2560_vm5, %v5759_v13  ;;  %3931 = vmatmul.msk.bf16.gmra.mxu2 %vm2560_vm5, %v4126_v37 }
 0x239   : > { %3077 = vmatmul.bf16.gmra.mxu3 %v4134_v8 }
 0x23b   : > { %3222 = vmatmul.bf16.gmra.mxu0 %v4134_v8 }
 0x248   : > { %3907 = vmatmul.msk.bf16.gmra.mxu1 %vm2560_vm5, %v4126_v37  ;;  %3932 = vmatmul.msk.bf16.gmra.mxu2 %vm2560_vm5, %v4127_v46 }
 0x249   : > { %3082 = vmatmul.bf16.gmra.mxu3 %v4135_v14 }
 0x24b   : > { %3227 = vmatmul.bf16.gmra.mxu0 %v4135_v14 }
 0x258   : > { %3908 = vmatmul.msk.bf16.gmra.mxu1 %vm2560_vm5, %v4127_v46  ;;  %3933 = vmatmul.msk.bf16.gmra.mxu2 %vm2560_vm5, %v5761_v38 }
 0x259   : > { %3087 = vmatmul.bf16.gmra.mxu3 %v4136_v19 }
 0x25b   : > { %3232 = vmatmul.bf16.gmra.mxu0 %v4136_v19 }
 0x265   : > { %v2604_v35 = vpop.f32.mrf.mxu1 }
 0x266   : > { %v2638_v15 = vpack.c.bf16 %v2604_v35, %v2604_v35 }
 0x268   : > { %v2594_v61 = vpop.f32.mrf.mxu0  ;;  %2655 = vst.msk [vmem:[%s4449_s21 + $0x10] sm:$0xf] %vm2650_vm0, %v2638_v15  ;;  %3909 = vmatmul.msk.bf16.gmra.mxu1 %vm2560_vm5, %v5761_v38  ;;  %3934 = vmatmul.msk.bf16.gmra.mxu2 %vm2560_vm5, %v5790_v31 }
 0x269   : > { %3092 = vmatmul.bf16.gmra.mxu3 %v4137_v41  ;;  %v2634_v20 = vpack.c.bf16 %v2594_v61, %v2594_v61 }
 0x26b   : > { %2651 = vst.msk [vmem:[%s4449_s21] sm:$0xf] %vm2650_vm0, %v2634_v20  ;;  %3237 = vmatmul.bf16.gmra.mxu0 %v4137_v41  ;;  %v2619_v44 = vpop.f32.mrf.mxu2  ;;  %v2863_v41 = vld [vmem:[%s6070_s13 + $0x10] sm:$0xff] }
 0x26c   : > { %v2644_v10 = vpack.c.bf16 %v2619_v44, %v2619_v44  ;;  %v2831_v20 = vld [vmem:[%s6069_s12 + $0x10] sm:$0xff] }
 0x26d   : > { %v2606_v56 = vpop.f32.mrf.mxu1 }
 0x26e   : > { %v2639_v43 = vpack.c.bf16 %v2606_v56, %v2606_v56  ;;  %2661 = vst.msk [vmem:[%s4449_s21 + $0x28] sm:$0xf] %vm2650_vm0, %v2644_v10  ;;  %v2629_v25 = vpop.f32.mrf.mxu3 }
 0x26f   : > { %v2648_v21 = vpack.c.bf16 %v2629_v25, %v2629_v25 }
 0x270   : > { %v2596_v57 = vpop.f32.mrf.mxu0  ;;  %2656 = vst.msk [vmem:[%s4449_s21 + $0x14] sm:$0xf] %vm2650_vm0, %v2639_v43 }
 0x271   : > { %v2635_v50 = vpack.c.bf16 %v2596_v57, %v2596_v57  ;;  %2665 = vst.msk [vmem:[%s4449_s21 + $0x38] sm:$0xf] %vm2650_vm0, %v2648_v21 }
 0x273   : > { %2652 = vst.msk [vmem:[%s4449_s21 + $0x4] sm:$0xf] %vm2650_vm0, %v2635_v50  ;;  %v2621_v1 = vpop.f32.mrf.mxu2 }
 0x274   : > { %v2645_v3 = vpack.c.bf16 %v2621_v1, %v2621_v1 }
 0x275   : > { %v2609_v27 = vpop.f32.mrf.mxu1 }
 0x276   : > { %v2640_v48 = vpack.c.bf16 %v2609_v27, %v2609_v27  ;;  %2662 = vst.msk [vmem:[%s4449_s21 + $0x2c] sm:$0xf] %vm2650_vm0, %v2645_v3  ;;  %v2631_v60 = vpop.f32.mrf.mxu3  ;;  %v2864_v3 = vld [vmem:[%s6070_s13 + $0x18] sm:$0xff] }
 0x277   : > { %v2649_v42 = vpack.c.bf16 %v2631_v60, %v2631_v60  ;;  %v2832_v27 = vld [vmem:[%s6069_s12 + $0x18] sm:$0xff] }
 0x278   : > { %v2599_v28 = vpop.f32.mrf.mxu0  ;;  %2657 = vst.msk [vmem:[%s4449_s21 + $0x18] sm:$0xf] %vm2650_vm0, %v2640_v48  ;;  %3910 = vmatmul.msk.bf16.gmra.mxu1 %vm2560_vm5, %v5790_v31  ;;  %3935 = vmatmul.msk.bf16.gmra.mxu2 %vm2560_vm5, %v5773_v22 }
 0x279   : > { %3097 = vmatmul.bf16.gmra.mxu3 %v4138_v58  ;;  %v2636_v34 = vpack.c.bf16 %v2599_v28, %v2599_v28  ;;  %2666 = vst.msk [vmem:[%s4449_s21 + $0x3c] sm:$0xf] %vm2650_vm0, %v2649_v42 }
 0x27b   : > { %2653 = vst.msk [vmem:[%s4449_s21 + $0x8] sm:$0xf] %vm2650_vm0, %v2636_v34  ;;  %3242 = vmatmul.bf16.gmra.mxu0 %v4138_v58  ;;  %v2624_v7 = vpop.f32.mrf.mxu2 }
 0x27c   : > { %v2646_v51 = vpack.c.bf16 %v2624_v7, %v2624_v7 }
 0x27d   : > { %v2611_v16 = vpop.f32.mrf.mxu1 }
 0x27e   : > { %v2641_v17 = vpack.c.bf16 %v2611_v16, %v2611_v16  ;;  %2663 = vst.msk [vmem:[%s4449_s21 + $0x30] sm:$0xf] %vm2650_vm0, %v2646_v51  ;;  %v2865_v16 = vld [vmem:[%s6070_s13 + $0x20] sm:$0xff] }
 0x280   : > { %v2601_v2 = vpop.f32.mrf.mxu0  ;;  %2658 = vst.msk [vmem:[%s4449_s21 + $0x1c] sm:$0xf] %vm2650_vm0, %v2641_v17 }
 0x281   : > { %v2637_v9 = vpack.c.bf16 %v2601_v2, %v2601_v2 }
 0x283   : > { %2654 = vst.msk [vmem:[%s4449_s21 + $0xc] sm:$0xf] %vm2650_vm0, %v2637_v9  ;;  %v2626_v13 = vpop.f32.mrf.mxu2 }
 0x284   : > { %v2647_v38 = vpack.c.bf16 %v2626_v13, %v2626_v13  ;;  %v2833_v13 = vld [vmem:[%s6069_s12 + $0x20] sm:$0xff] }
 0x285   : > { %v2614_v24 = vpop.f32.mrf.mxu1 }
 0x286   : > { %v2642_v33 = vpack.c.bf16 %v2614_v24, %v2614_v24  ;;  %2664 = vst.msk [vmem:[%s4449_s21 + $0x34] sm:$0xf] %vm2650_vm0, %v2647_v38 }
 0x288   : > { %v3208_v5 = vpop.f32.mrf.mxu0  ;;  %2659 = vst.msk [vmem:[%s4449_s21 + $0x20] sm:$0xf] %vm2650_vm0, %v2642_v33  ;;  %3911 = vmatmul.msk.bf16.gmra.mxu1 %vm2560_vm5, %v5773_v22 }
 0x289   : > { %v3248_v30 = vpack.c.bf16 %v3208_v5, %v3208_v5 }
 0x28b   : > { %3264 = vst.msk [vmem:[%s4464_s18] sm:$0xf] %vm2650_vm0, %v3248_v30  ;;  %v2789_v63 = vpop.f32.mrf.mxu2 }
 0x28c   : > { %v3063_v4 = vpop.f32.mrf.mxu3  ;;  %v2877_v54 = vmul.f32 %v2861_v12, %v2789_v63 }
 0x28d   : > { %v3103_v29 = vpack.c.bf16 %v3063_v4, %v3063_v4  ;;  %v2616_v18 = vpop.f32.mrf.mxu1 }
 0x28e   : > { %v2643_v53 = vpack.c.bf16 %v2616_v18, %v2616_v18 }
 0x28f   : > { %3119 = vst.msk [vmem:[%s4459_s27] sm:$0xf] %vm2650_vm0, %v3103_v29 }
 0x290   : > { %v3210_v0 = vpop.f32.mrf.mxu0  ;;  %2660 = vst.msk [vmem:[%s4449_s21 + $0x24] sm:$0xf] %vm2650_vm0, %v2643_v53 }
 0x291   : > { %v3249_v47 = vpack.c.bf16 %v3210_v0, %v3210_v0  ;;  %v2866_v0 = vld [vmem:[%s6070_s13 + $0x28] sm:$0xff] }
 0x293   : > { %3265 = vst.msk [vmem:[%s4464_s18 + $0x4] sm:$0xf] %vm2650_vm0, %v3249_v47  ;;  %v2791_v36 = vpop.f32.mrf.mxu2  ;;  %v2834_v47 = vld [vmem:[%s6069_s12 + $0x28] sm:$0xff] }
 0x294   : > { %v3065_v22 = vpop.f32.mrf.mxu3  ;;  %v2878_v26 = vmul.f32 %v2862_v55, %v2791_v36 }
 0x295   : > { %v3104_v39 = vpack.c.bf16 %v3065_v22, %v3065_v22  ;;  %v2708_v37 = vpop.f32.mrf.mxu1 }
 0x296   : > { %v2845_v31 = vmul.f32 %v2829_v49, %v2708_v37 }
 0x297   : > { %3120 = vst.msk [vmem:[%s4459_s27 + $0x4] sm:$0xf] %vm2650_vm0, %v3104_v39 }
 0x298   : > { %v3213_v6 = vpop.f32.mrf.mxu0  ;;  %v2893_v40 = vadd.f32 %v2877_v54, %v2845_v31  ;;  %v2867_v31 = vld [vmem:[%s6070_s13 + $0x30] sm:$0xff] }
 0x299   : > { %v3250_v45 = vpack.c.bf16 %v3213_v6, %v3213_v6 }
 0x29a   : > { %v2909_v59 = vpack.c.bf16 %v2893_v40, %v2893_v40 }
 0x29b   : > { %3266 = vst.msk [vmem:[%s4464_s18 + $0x8] sm:$0xf] %vm2650_vm0, %v3250_v45  ;;  %v2794_v52 = vpop.f32.mrf.mxu2 }
 0x29c   : > { %v3068_v23 = vpop.f32.mrf.mxu3  ;;  %2926 = vst.msk [vmem:[%s4454_s30] sm:$0xf] %vm2925_vm1, %v2909_v59  ;;  %v2879_v10 = vmul.f32 %v2863_v41, %v2794_v52  ;;  %v2836_v41 = vld [vmem:[%s6069_s12 + $0x38] sm:$0xff] }
 0x29d   : > { %v3105_v62 = vpack.c.bf16 %v3068_v23, %v3068_v23  ;;  %v2710_v46 = vpop.f32.mrf.mxu1  ;;  %v2835_v23 = vld [vmem:[%s6069_s12 + $0x30] sm:$0xff] }
 0x29e   : > { %v2846_v32 = vmul.f32 %v2830_v11, %v2710_v46 }
 0x29f   : > { %3121 = vst.msk [vmem:[%s4459_s27 + $0x8] sm:$0xf] %vm2650_vm0, %v3105_v62 }
 0x2a0   : > { %v3215_v8 = vpop.f32.mrf.mxu0  ;;  %v2894_v14 = vadd.f32 %v2878_v26, %v2846_v32 }
 0x2a1   : > { %v3251_v19 = vpack.c.bf16 %v3215_v8, %v3215_v8 }
 0x2a2   : > { %v2910_v15 = vpack.c.bf16 %v2894_v14, %v2894_v14 }
 0x2a3   : > { %3267 = vst.msk [vmem:[%s4464_s18 + $0xc] sm:$0xf] %vm2650_vm0, %v3251_v19  ;;  %v2796_v44 = vpop.f32.mrf.mxu2  ;;  %v2868_v19 = vld [vmem:[%s6070_s13 + $0x38] sm:$0xff] }
 0x2a4   : > { %v3070_v35 = vpop.f32.mrf.mxu3  ;;  %2927 = vst.msk [vmem:[%s4454_s30 + $0x4] sm:$0xf] %vm2925_vm1, %v2910_v15  ;;  %v2880_v60 = vmul.f32 %v2864_v3, %v2796_v44 }
 0x2a5   : > { %v3106_v61 = vpack.c.bf16 %v3070_v35, %v3070_v35  ;;  %v2713_v56 = vpop.f32.mrf.mxu1 }
 0x2a6   : > { %v2847_v43 = vmul.f32 %v2831_v20, %v2713_v56 }
 0x2a7   : > { %3122 = vst.msk [vmem:[%s4459_s27 + $0xc] sm:$0xf] %vm2650_vm0, %v3106_v61 }
 0x2a8   : > { %v3218_v57 = vpop.f32.mrf.mxu0  ;;  %v2895_v25 = vadd.f32 %v2879_v10, %v2847_v43  ;;  %v2869_v43 = vld [vmem:[%s6070_s13 + $0x40] sm:$0xff] }
 0x2a9   : > { %v3252_v50 = vpack.c.bf16 %v3218_v57, %v3218_v57 }
 0x2aa   : > { %v2911_v58 = vpack.c.bf16 %v2895_v25, %v2895_v25 }
 0x2ab   : > { %3268 = vst.msk [vmem:[%s4464_s18 + $0x10] sm:$0xf] %vm2650_vm0, %v3252_v50  ;;  %v2799_v48 = vpop.f32.mrf.mxu2 }
 0x2ac   : > { %v3073_v21 = vpop.f32.mrf.mxu3  ;;  %2928 = vst.msk [vmem:[%s4454_s30 + $0x8] sm:$0xf] %vm2925_vm1, %v2911_v58  ;;  %v2881_v24 = vmul.f32 %v2865_v16, %v2799_v48  ;;  %v2838_v16 = vld [vmem:[%s6069_s12 + $0x48] sm:$0xff] }
 0x2ad   : > { %v3107_v1 = vpack.c.bf16 %v3073_v21, %v3073_v21  ;;  %v2715_v28 = vpop.f32.mrf.mxu1  ;;  %v2837_v21 = vld [vmem:[%s6069_s12 + $0x40] sm:$0xff] }
 0x2ae   : > { %v2848_v34 = vmul.f32 %v2832_v27, %v2715_v28 }
 0x2af   : > { %3123 = vst.msk [vmem:[%s4459_s27 + $0x10] sm:$0xf] %vm2650_vm0, %v3107_v1 }
 0x2b0   : > { %v3220_v42 = vpop.f32.mrf.mxu0  ;;  %v2896_v7 = vadd.f32 %v2880_v60, %v2848_v34 }
 0x2b1   : > { %v3253_v51 = vpack.c.bf16 %v3220_v42, %v3220_v42 }
 0x2b2   : > { %v2912_v2 = vpack.c.bf16 %v2896_v7, %v2896_v7 }
 0x2b3   : > { %3269 = vst.msk [vmem:[%s4464_s18 + $0x14] sm:$0xf] %vm2650_vm0, %v3253_v51  ;;  %v2801_v38 = vpop.f32.mrf.mxu2  ;;  %v2870_v51 = vld [vmem:[%s6070_s13 + $0x48] sm:$0xff] }
 0x2b4   : > { %v3075_v17 = vpop.f32.mrf.mxu3  ;;  %2929 = vst.msk [vmem:[%s4454_s30 + $0xc] sm:$0xf] %vm2925_vm1, %v2912_v2  ;;  %v2882_v39 = vmul.f32 %v2866_v0, %v2801_v38 }
 0x2b5   : > { %v3108_v9 = vpack.c.bf16 %v3075_v17, %v3075_v17  ;;  %v2718_v33 = vpop.f32.mrf.mxu1 }
 0x2b6   : > { %v2849_v5 = vmul.f32 %v2833_v13, %v2718_v33 }
 0x2b7   : > { %3124 = vst.msk [vmem:[%s4459_s27 + $0x14] sm:$0xf] %vm2650_vm0, %v3108_v9 }
 0x2b8   : > { %v3223_v30 = vpop.f32.mrf.mxu0  ;;  %v2897_v4 = vadd.f32 %v2881_v24, %v2849_v5  ;;  %v2871_v5 = vld [vmem:[%s6070_s13 + $0x50] sm:$0xff] }
 0x2b9   : > { %v3254_v29 = vpack.c.bf16 %v3223_v30, %v3223_v30 }
 0x2ba   : > { %v2913_v18 = vpack.c.bf16 %v2897_v4, %v2897_v4 }
 0x2bb   : > { %3270 = vst.msk [vmem:[%s4464_s18 + $0x18] sm:$0xf] %vm2650_vm0, %v3254_v29  ;;  %v2804_v12 = vpop.f32.mrf.mxu2 }
 0x2bc   : > { %v3078_v63 = vpop.f32.mrf.mxu3  ;;  %2930 = vst.msk [vmem:[%s4454_s30 + $0x10] sm:$0xf] %vm2925_vm1, %v2913_v18  ;;  %v2883_v62 = vmul.f32 %v2867_v31, %v2804_v12  ;;  %v2840_v31 = vld [vmem:[%s6069_s12 + $0x58] sm:$0xff] }
 0x2bd   : > { %v3109_v53 = vpack.c.bf16 %v3078_v63, %v3078_v63  ;;  %v2720_v22 = vpop.f32.mrf.mxu1  ;;  %v2839_v63 = vld [vmem:[%s6069_s12 + $0x50] sm:$0xff] }
 0x2be   : > { %v2850_v49 = vmul.f32 %v2834_v47, %v2720_v22 }
 0x2bf   : > { %3125 = vst.msk [vmem:[%s4459_s27 + $0x18] sm:$0xf] %vm2650_vm0, %v3109_v53 }
 0x2c0   : > { %v3225_v36 = vpop.f32.mrf.mxu0  ;;  %v2898_v54 = vadd.f32 %v2882_v39, %v2850_v49 }
 0x2c1   : > { %v3255_v37 = vpack.c.bf16 %v3225_v36, %v3225_v36 }
 0x2c2   : > { %v2914_v40 = vpack.c.bf16 %v2898_v54, %v2898_v54 }
 0x2c3   : > { %3271 = vst.msk [vmem:[%s4464_s18 + $0x1c] sm:$0xf] %vm2650_vm0, %v3255_v37  ;;  %v2806_v59 = vpop.f32.mrf.mxu2  ;;  %v2872_v37 = vld [vmem:[%s6070_s13 + $0x58] sm:$0xff] }
 0x2c4   : > { %v3080_v6 = vpop.f32.mrf.mxu3  ;;  %2931 = vst.msk [vmem:[%s4454_s30 + $0x14] sm:$0xf] %vm2925_vm1, %v2914_v40  ;;  %v2884_v61 = vmul.f32 %v2868_v19, %v2806_v59 }
 0x2c5   : > { %v3110_v45 = vpack.c.bf16 %v3080_v6, %v3080_v6  ;;  %v2723_v55 = vpop.f32.mrf.mxu1 }
 0x2c6   : > { %v2851_v11 = vmul.f32 %v2835_v23, %v2723_v55 }
 0x2c7   : > { %3126 = vst.msk [vmem:[%s4459_s27 + $0x1c] sm:$0xf] %vm2650_vm0, %v3110_v45 }
 0x2c8   : > { %v3228_v52 = vpop.f32.mrf.mxu0  ;;  %v2899_v46 = vadd.f32 %v2883_v62, %v2851_v11  ;;  %v2873_v11 = vld [vmem:[%s6070_s13 + $0x60] sm:$0xff] }
 0x2c9   : > { %v3256_v26 = vpack.c.bf16 %v3228_v52, %v3228_v52 }
 0x2ca   : > { %v2915_v8 = vpack.c.bf16 %v2899_v46, %v2899_v46 }
 0x2cb   : > { %3272 = vst.msk [vmem:[%s4464_s18 + $0x20] sm:$0xf] %vm2650_vm0, %v3256_v26  ;;  %v2809_v35 = vpop.f32.mrf.mxu2 }
 0x2cc   : > { %v3083_v32 = vpop.f32.mrf.mxu3  ;;  %2932 = vst.msk [vmem:[%s4454_s30 + $0x18] sm:$0xf] %vm2925_vm1, %v2915_v8  ;;  %v2885_v1 = vmul.f32 %v2869_v43, %v2809_v35  ;;  %v2842_v43 = vld [vmem:[%s6069_s12 + $0x68] sm:$0xff] }
 0x2cd   : > { %v3111_v14 = vpack.c.bf16 %v3083_v32, %v3083_v32  ;;  %v2725_v15 = vpop.f32.mrf.mxu1  ;;  %v2841_v32 = vld [vmem:[%s6069_s12 + $0x60] sm:$0xff] }
 0x2ce   : > { %v2852_v20 = vmul.f32 %v2836_v41, %v2725_v15 }
 0x2cf   : > { %3127 = vst.msk [vmem:[%s4459_s27 + $0x20] sm:$0xf] %vm2650_vm0, %v3111_v14 }
 0x2d0   : > { %v3230_v44 = vpop.f32.mrf.mxu0  ;;  %v2900_v10 = vadd.f32 %v2884_v61, %v2852_v20 }
 0x2d1   : > { %v3257_v56 = vpack.c.bf16 %v3230_v44, %v3230_v44 }
 0x2d2   : > { %v2916_v25 = vpack.c.bf16 %v2900_v10, %v2900_v10 }
 0x2d3   : > { %3273 = vst.msk [vmem:[%s4464_s18 + $0x24] sm:$0xf] %vm2650_vm0, %v3257_v56  ;;  %v2811_v58 = vpop.f32.mrf.mxu2  ;;  %v2874_v56 = vld [vmem:[%s6070_s13 + $0x68] sm:$0xff] }
 0x2d4   : > { %v3085_v57 = vpop.f32.mrf.mxu3  ;;  %2933 = vst.msk [vmem:[%s4454_s30 + $0x1c] sm:$0xf] %vm2925_vm1, %v2916_v25  ;;  %v2886_v9 = vmul.f32 %v2870_v51, %v2811_v58 }
 0x2d5   : > { %v3112_v50 = vpack.c.bf16 %v3085_v57, %v3085_v57  ;;  %v2728_v3 = vpop.f32.mrf.mxu1 }
 0x2d6   : > { %v2853_v27 = vmul.f32 %v2837_v21, %v2728_v3 }
 0x2d7   : > { %3128 = vst.msk [vmem:[%s4459_s27 + $0x24] sm:$0xf] %vm2650_vm0, %v3112_v50 }
 0x2d8   : > { %v3233_v48 = vpop.f32.mrf.mxu0  ;;  %v2901_v28 = vadd.f32 %v2885_v1, %v2853_v27  ;;  %v2875_v27 = vld [vmem:[%s6070_s13 + $0x70] sm:$0xff] }
 0x2d9   : > { %v3258_v60 = vpack.c.bf16 %v3233_v48, %v3233_v48 }
 0x2da   : > { %v2917_v42 = vpack.c.bf16 %v2901_v28, %v2901_v28 }
 0x2db   : > { %3274 = vst.msk [vmem:[%s4464_s18 + $0x28] sm:$0xf] %vm2650_vm0, %v3258_v60  ;;  %v2814_v17 = vpop.f32.mrf.mxu2 }
 0x2dc   : > { %v3088_v34 = vpop.f32.mrf.mxu3  ;;  %2934 = vst.msk [vmem:[%s4454_s30 + $0x20] sm:$0xf] %vm2925_vm1, %v2917_v42  ;;  %v2887_v53 = vmul.f32 %v2871_v5, %v2814_v17 }
 0x2dd   : > { %v3113_v7 = vpack.c.bf16 %v3088_v34, %v3088_v34  ;;  %v2730_v2 = vpop.f32.mrf.mxu1  ;;  %v2843_v34 = vld [vmem:[%s6069_s12 + $0x70] sm:$0xff] }
 0x2de   : > { %v2854_v13 = vmul.f32 %v2838_v16, %v2730_v2 }
 0x2df   : > { %3129 = vst.msk [vmem:[%s4459_s27 + $0x28] sm:$0xf] %vm2650_vm0, %v3113_v7 }
 0x2e0   : > { %v3235_v38 = vpop.f32.mrf.mxu0  ;;  %v2902_v24 = vadd.f32 %v2886_v9, %v2854_v13  ;;  %v2876_v9 = vld [vmem:[%s6070_s13 + $0x78] sm:$0xff] }
 0x2e1   : > { %v3259_v33 = vpack.c.bf16 %v3235_v38, %v3235_v38  ;;  %v2844_v13 = vld [vmem:[%s6069_s12 + $0x78] sm:$0xff] }
 0x2e2   : > { %v2918_v4 = vpack.c.bf16 %v2902_v24, %v2902_v24 }
 0x2e3   : > { %3275 = vst.msk [vmem:[%s4464_s18 + $0x2c] sm:$0xf] %vm2650_vm0, %v3259_v33  ;;  %v2816_v18 = vpop.f32.mrf.mxu2 }
 0x2e4   : > { %v3090_v30 = vpop.f32.mrf.mxu3  ;;  %2935 = vst.msk [vmem:[%s4454_s30 + $0x24] sm:$0xf] %vm2925_vm1, %v2918_v4  ;;  %v2888_v45 = vmul.f32 %v2872_v37, %v2816_v18 }
 0x2e5   : > { %v3114_v29 = vpack.c.bf16 %v3090_v30, %v3090_v30  ;;  %v2733_v0 = vpop.f32.mrf.mxu1 }
 0x2e6   : > { %v2855_v47 = vmul.f32 %v2839_v63, %v2733_v0 }
 0x2e7   : > { %3130 = vst.msk [vmem:[%s4459_s27 + $0x2c] sm:$0xf] %vm2650_vm0, %v3114_v29 }
 0x2e8   : > { %v3238_v12 = vpop.f32.mrf.mxu0  ;;  %v2903_v22 = vadd.f32 %v2887_v53, %v2855_v47 }
 0x2e9   : > { %v3260_v39 = vpack.c.bf16 %v3238_v12, %v3238_v12 }
 0x2ea   : > { %v2919_v36 = vpack.c.bf16 %v2903_v22, %v2903_v22 }
 0x2eb   : > { %3276 = vst.msk [vmem:[%s4464_s18 + $0x30] sm:$0xf] %vm2650_vm0, %v3260_v39  ;;  %v2819_v40 = vpop.f32.mrf.mxu2 }
 0x2ec   : > { %v3093_v49 = vpop.f32.mrf.mxu3  ;;  %2936 = vst.msk [vmem:[%s4454_s30 + $0x28] sm:$0xf] %vm2925_vm1, %v2919_v36  ;;  %v2889_v8 = vmul.f32 %v2873_v11, %v2819_v40 }
 0x2ed   : > { %v3115_v54 = vpack.c.bf16 %v3093_v49, %v3093_v49  ;;  %v2735_v6 = vpop.f32.mrf.mxu1 }
 0x2ee   : > { %v2856_v23 = vmul.f32 %v2840_v31, %v2735_v6 }
 0x2ef   : > { %3131 = vst.msk [vmem:[%s4459_s27 + $0x30] sm:$0xf] %vm2650_vm0, %v3115_v54 }
 0x2f0   : > { %v3240_v59 = vpop.f32.mrf.mxu0  ;;  %v2904_v62 = vadd.f32 %v2888_v45, %v2856_v23 }
 0x2f1   : > { %v3261_v55 = vpack.c.bf16 %v3240_v59, %v3240_v59 }
 0x2f2   : > { %v2920_v46 = vpack.c.bf16 %v2904_v62, %v2904_v62 }
 0x2f3   : > { %3277 = vst.msk [vmem:[%s4464_s18 + $0x34] sm:$0xf] %vm2650_vm0, %v3261_v55  ;;  %v2821_v41 = vpop.f32.mrf.mxu2 }
 0x2f4   : > { %v3095_v52 = vpop.f32.mrf.mxu3  ;;  %2937 = vst.msk [vmem:[%s4454_s30 + $0x2c] sm:$0xf] %vm2925_vm1, %v2920_v46  ;;  %v2890_v25 = vmul.f32 %v2874_v56, %v2821_v41 }
 0x2f5   : > { %v3116_v26 = vpack.c.bf16 %v3095_v52, %v3095_v52  ;;  %v2738_v14 = vpop.f32.mrf.mxu1 }
 0x2f6   : > { %v2857_v19 = vmul.f32 %v2841_v32, %v2738_v14 }
 0x2f7   : > { %3132 = vst.msk [vmem:[%s4459_s27 + $0x34] sm:$0xf] %vm2650_vm0, %v3116_v26 }
 0x2f8   : > { %v3243_v35 = vpop.f32.mrf.mxu0  ;;  %v2905_v15 = vadd.f32 %v2889_v8, %v2857_v19 }
 0x2f9   : > { %v3262_v61 = vpack.c.bf16 %v3243_v35, %v3243_v35 }
 0x2fa   : > { %v2921_v44 = vpack.c.bf16 %v2905_v15, %v2905_v15 }
 0x2fb   : > { %3278 = vst.msk [vmem:[%s4464_s18 + $0x38] sm:$0xf] %vm2650_vm0, %v3262_v61  ;;  %v2824_v3 = vpop.f32.mrf.mxu2 }
 0x2fc   : > { %v3098_v20 = vpop.f32.mrf.mxu3  ;;  %2938 = vst.msk [vmem:[%s4454_s30 + $0x30] sm:$0xf] %vm2925_vm1, %v2921_v44  ;;  %v2891_v42 = vmul.f32 %v2875_v27, %v2824_v3 }
 0x2fd   : > { %v3117_v10 = vpack.c.bf16 %v3098_v20, %v3098_v20  ;;  %v2740_v57 = vpop.f32.mrf.mxu1 }
 0x2fe   : > { %v2858_v50 = vmul.f32 %v2842_v43, %v2740_v57 }
 0x2ff   : > { %3133 = vst.msk [vmem:[%s4459_s27 + $0x38] sm:$0xf] %vm2650_vm0, %v3117_v10 }
 0x300   : > { %v3245_v21 = vpop.f32.mrf.mxu0  ;;  %v2906_v58 = vadd.f32 %v2890_v25, %v2858_v50 }
 0x301   : > { %v3263_v1 = vpack.c.bf16 %v3245_v21, %v3245_v21 }
 0x302   : > { %v2922_v28 = vpack.c.bf16 %v2906_v58, %v2906_v58 }
 0x303   : > { %3279 = vst.msk [vmem:[%s4464_s18 + $0x3c] sm:$0xf] %vm2650_vm0, %v3263_v1  ;;  %v2826_v2 = vpop.f32.mrf.mxu2 }
 0x304   : > { %v3100_v48 = vpop.f32.mrf.mxu3  ;;  %2939 = vst.msk [vmem:[%s4454_s30 + $0x34] sm:$0xf] %vm2925_vm1, %v2922_v28  ;;  %v2892_v24 = vmul.f32 %v2876_v9, %v2826_v2 }
 0x305   : > { %v3118_v60 = vpack.c.bf16 %v3100_v48, %v3100_v48  ;;  %v2743_v7 = vpop.f32.mrf.mxu1 }
 0x306   : > { %v2859_v51 = vmul.f32 %v2843_v34, %v2743_v7 }
 0x307   : > { %3134 = vst.msk [vmem:[%s4459_s27 + $0x3c] sm:$0xf] %vm2650_vm0, %v3118_v60 }
 0x308   : > { %v2907_v16 = vadd.f32 %v2891_v42, %v2859_v51 }
 0x30a   : > { %v2923_v17 = vpack.c.bf16 %v2907_v16, %v2907_v16 }
 0x30c   : > { %2940 = vst.msk [vmem:[%s4454_s30 + $0x38] sm:$0xf] %vm2925_vm1, %v2923_v17 }
 0x30d   : > { %v2745_v38 = vpop.f32.mrf.mxu1 }
 0x30e   : > { %v2860_v33 = vmul.f32 %v2844_v13, %v2745_v38 }
 0x310   : > { %v2908_v5 = vadd.f32 %v2892_v24, %v2860_v33 }
 0x312   : > { %v2924_v30 = vpack.c.bf16 %v2908_v5, %v2908_v5 }
 0x314   : > { %2941 = vst.msk [vmem:[%s4454_s30 + $0x3c] sm:$0xf] %vm2925_vm1, %v2924_v30 }
 0x315 PF: > { %s6115_s27 = sld [smem:[#allocation4_spill]] }
 0x31b   : > { %s29_s27 = sadd.s32 1, %s6115_s27  }
 0x31c   : > { %p26_p5 = scmp.ge.s32.totalorder %s29_s27, 6  }
 0x31e   :  { %28 = sbr.rel (!%p26_p5) target bundleno = 11 (0xb), region = 166 }

</bundles_post_ra>
